<compile_context>
chip_gen: v5e
topology: v5e:2x2
jax: 0.10.0
libtpu: 0.0.40
codegen_flags: <defaults>
</compile_context>

<pallas_src>
import functools
import math

import jax
import jax.numpy as jnp
from jax.experimental import pallas as pl
from jax.experimental.pallas import tpu as pltpu

VMEM_SPEC = pl.BlockSpec(memory_space=pltpu.MemorySpace.VMEM)


# ------------------------------ fused kernel --------------------------------
def _fused_kernel(*refs, num_layers, H, T, B):
    # refs layout:
    #   inputs : x2, en2, w1x, w1e, b1, [wih, whh_f, whh_b, b] * num_layers, fc2_w, fc2_b
    #   outputs: out
    #   scratch: act (T*B, 2H), xw (T*B, 8H)
    x_ref, en_ref, w1x_ref, w1e_ref, b1_ref = refs[:5]
    layer_refs = refs[5:5 + 4 * num_layers]
    fc2w_ref, fc2b_ref, out_ref, act_ref, xw_ref = refs[5 + 4 * num_layers:]

    H3 = 3 * H
    H4 = 4 * H

    # ---- fc1 + ReLU (x/en concat replaced by split weights) ----
    h2d = jnp.dot(x_ref[...], w1x_ref[...], preferred_element_type=jnp.float32)
    h2d = h2d + jnp.dot(en_ref[...], w1e_ref[...], preferred_element_type=jnp.float32)
    h2d = jnp.maximum(h2d + b1_ref[...], 0.0)                     # (T*B, H)

    # ---- BiLSTM stack ----
    for layer in range(num_layers):
        wih_ref, whhf_ref, whhb_ref, b_ref = layer_refs[4 * layer: 4 * layer + 4]
        whh_f = whhf_ref[...]                                     # (H, 4H)
        whh_b = whhb_ref[...]                                     # (H, 4H)

        # Hoisted input projection for BOTH directions: one big matmul off the
        # serialized recurrence critical path, stored to VMEM scratch.
        xw_ref[...] = (jnp.dot(h2d, wih_ref[...], preferred_element_type=jnp.float32)
                       + b_ref[...])                              # (T*B, 8H)

        h_f = jnp.zeros((B, H), jnp.float32)
        c_f = jnp.zeros((B, H), jnp.float32)
        h_b = jnp.zeros((B, H), jnp.float32)
        c_b = jnp.zeros((B, H), jnp.float32)

        # Merged, fully unrolled forward/backward recurrence.
        for t in range(T):
            tb = T - 1 - t
            g_f = (xw_ref[t * B:(t + 1) * B, 0:H4]
                   + jnp.dot(h_f, whh_f, preferred_element_type=jnp.float32))
            g_b = (xw_ref[tb * B:(tb + 1) * B, H4:2 * H4]
                   + jnp.dot(h_b, whh_b, preferred_element_type=jnp.float32))
            # packed gate order [i, f, o, g]: one wide sigmoid + one tanh each.
            s_f = jax.nn.sigmoid(g_f[:, :H3])
            s_b = jax.nn.sigmoid(g_b[:, :H3])
            gg_f = jnp.tanh(g_f[:, H3:])
            gg_b = jnp.tanh(g_b[:, H3:])
            c_f = s_f[:, H:2 * H] * c_f + s_f[:, :H] * gg_f
            c_b = s_b[:, H:2 * H] * c_b + s_b[:, :H] * gg_b
            h_f = s_f[:, 2 * H:] * jnp.tanh(c_f)
            h_b = s_b[:, 2 * H:] * jnp.tanh(c_b)
            # bidirectional output slab: [h_forward(t) | h_backward(t)]
            act_ref[t * B:(t + 1) * B, 0:H] = h_f
            act_ref[tb * B:(tb + 1) * B, H:2 * H] = h_b

        h2d = act_ref[...]                                        # (T*B, 2H)

    # ---- fc2 (output padded to a lane multiple; wrapper slices) ----
    out = jnp.dot(h2d, fc2w_ref[...], preferred_element_type=jnp.float32) + fc2b_ref[...]
    out_ref[...] = out.astype(out_ref.dtype)


# ------------------------------ python wrapper -------------------------------
def rnn_pos_all_forward(x, en, params):
    T, B, Dx = x.shape
    De = en.shape[-1]
    H = params["hidden_size"]
    num_layers = len(params["layers"])
    out_pad = params["fc2_w"].shape[1]

    x2 = x.reshape(T * B, Dx).astype(jnp.float32)
    en2 = en.reshape(T * B, De).astype(jnp.float32)

    inputs = [x2, en2, params["w1x"], params["w1e"], params["b1"]]
    for lp in params["layers"]:
        inputs += [lp["wih"], lp["whh_f"], lp["whh_b"], lp["b"]]
    inputs += [params["fc2_w"], params["fc2_b"]]

    out = pl.pallas_call(
        functools.partial(_fused_kernel, num_layers=num_layers, H=H, T=T, B=B),
        out_shape=jax.ShapeDtypeStruct((T * B, out_pad), jnp.float32),
        in_specs=[VMEM_SPEC] * len(inputs),
        out_specs=VMEM_SPEC,
        scratch_shapes=[pltpu.VMEM((T * B, 2 * H), jnp.float32),   # layer activations
                        pltpu.VMEM((T * B, 8 * H), jnp.float32)],  # hoisted input proj
    )(*inputs)
    return out[:, :params["output_size"]].reshape(T, B, params["output_size"])


# --------------------------- deterministic init ------------------------------
def _xavier_normal(key, out_f, in_f):
    std = math.sqrt(2.0 / (in_f + out_f))
    return std * jax.random.normal(key, (out_f, in_f), dtype=jnp.float32)


def _reorder_ifog(w, H):
    # PyTorch packs LSTM gates as [i, f, g, o]; repack to [i, f, o, g] so the
    # kernel runs one wide sigmoid over [i|f|o] and one tanh over [g].
    return jnp.concatenate([w[:2 * H], w[3 * H:4 * H], w[2 * H:3 * H]], axis=0)


def init_params(key, dx, de, output_size, hidden_size, num_layers, out_pad=128):
    H = hidden_size
    input_size = dx + de
    n_keys = 2 + num_layers * 2 * 4
    keys = iter(jax.random.split(key, n_keys))

    params = {"hidden_size": H, "output_size": output_size}

    # fc1: Linear(input_size, H), xavier_normal weight, bias = 0.1.
    # Split along input features so the kernel avoids the x/en lane concat.
    w1 = _xavier_normal(next(keys), H, input_size).T              # (input_size, H)
    params["w1x"] = w1[:dx]
    params["w1e"] = w1[dx:]
    params["b1"] = jnp.full((1, H), 0.1, jnp.float32)

    # LSTM layers: PyTorch default uniform(-1/sqrt(H), 1/sqrt(H)); biases folded.
    k = 1.0 / math.sqrt(H)
    layers = []
    for layer in range(num_layers):
        in_l = H if layer == 0 else 2 * H
        packed = {}
        for tag in ("f", "b"):                                    # fwd / reverse
            wih = jax.random.uniform(next(keys), (4 * H, in_l), jnp.float32, -k, k)
            whh = jax.random.uniform(next(keys), (4 * H, H), jnp.float32, -k, k)
            bih = jax.random.uniform(next(keys), (4 * H,), jnp.float32, -k, k)
            bhh = jax.random.uniform(next(keys), (4 * H,), jnp.float32, -k, k)
            packed[tag] = (_reorder_ifog(wih, H).T,               # (in_l, 4H)
                           _reorder_ifog(whh, H).T,               # (H, 4H)
                           _reorder_ifog(bih + bhh, H))           # (4H,)
        wih_f, whh_f, b_f = packed["f"]
        wih_b, whh_b, b_b = packed["b"]
        layers.append({
            "wih": jnp.concatenate([wih_f, wih_b], axis=1),       # (in_l, 8H)
            "whh_f": whh_f,
            "whh_b": whh_b,
            "b": jnp.concatenate([b_f, b_b])[None, :],            # (1, 8H)
        })
    params["layers"] = layers

    # fc2: Linear(2H, output_size), xavier_normal weight, bias = 0.1,
    # zero-padded to a lane multiple so the kernel's final store is unmasked.
    w2 = _xavier_normal(next(keys), output_size, 2 * H).T         # (2H, output_size)
    params["fc2_w"] = jnp.zeros((2 * H, out_pad), jnp.float32).at[:, :output_size].set(w2)
    params["fc2_b"] = jnp.zeros((1, out_pad), jnp.float32).at[:, :output_size].set(0.1)
    return params


# ----------------------------- pure-JAX reference ----------------------------
def reference_forward(x, en, params):
    T, B, _ = x.shape
    H = params["hidden_size"]
    x2 = x.reshape(T * B, -1)
    en2 = en.reshape(T * B, -1)
    h = jnp.maximum(x2 @ params["w1x"] + en2 @ params["w1e"] + params["b1"], 0.0)
    h = h.reshape(T, B, H)

    def cell(h_, c_, xw_t, whh):
        g = xw_t + h_ @ whh
        s = jax.nn.sigmoid(g[:, :3 * H])
        gg = jnp.tanh(g[:, 3 * H:])
        c_ = s[:, H:2 * H] * c_ + s[:, :H] * gg
        h_ = s[:, 2 * H:] * jnp.tanh(c_)
        return h_, c_

    for lp in params["layers"]:
        xw = jnp.einsum("tbi,io->tbo", h, lp["wih"]) + lp["b"]
        hf = jnp.zeros((B, H), jnp.float32); cf = jnp.zeros((B, H), jnp.float32)
        hb = jnp.zeros((B, H), jnp.float32); cb = jnp.zeros((B, H), jnp.float32)
        outs_f = [None] * T
        outs_b = [None] * T
        for t in range(T):
            hf, cf = cell(hf, cf, xw[t, :, :4 * H], lp["whh_f"])
            outs_f[t] = hf
            tb = T - 1 - t
            hb, cb = cell(hb, cb, xw[tb, :, 4 * H:], lp["whh_b"])
            outs_b[tb] = hb
        h = jnp.concatenate([jnp.stack(outs_f), jnp.stack(outs_b)], axis=-1)

    out = h.reshape(T * B, -1) @ params["fc2_w"] + params["fc2_b"]
    return out[:, :params["output_size"]].reshape(T, B, -1)


if __name__ == "__main__":
    # Small shapes consistent with the module's forward (seq-major inputs).
    T, B = 8, 2
    Dx, De = 6, 4                     # x features + en features -> input_size = 10
    hidden_size = 32
    num_layers = 2
    output_size = 5

    key = jax.random.PRNGKey(0)
    kx, ken, kp = jax.random.split(key, 3)
    x = jax.random.normal(kx, (T, B, Dx), jnp.float32)
    en = jax.random.normal(ken, (T, B, De), jnp.float32)
    params = init_params(kp, Dx, De, output_size, hidden_size, num_layers)

    out = jax.block_until_ready(rnn_pos_all_forward(x, en, params))
    assert out.shape == (T, B, output_size), out.shape
    assert bool(jnp.all(jnp.isfinite(out)))

    ref = jax.block_until_ready(reference_forward(x, en, params))
    assert bool(jnp.allclose(out, ref, rtol=1e-3, atol=1e-3)), \
        float(jnp.max(jnp.abs(out - ref)))

    print("KERNEL_OK")
</pallas_src>

<mosaic_0001>
module attributes {stable_mosaic.version = 11 : i64} {
  func.func @_fused_kernel(%arg0: memref<16x6xf32, #tpu.memory_space<vmem>>, %arg1: memref<16x4xf32, #tpu.memory_space<vmem>>, %arg2: memref<6x32xf32, #tpu.memory_space<vmem>>, %arg3: memref<4x32xf32, #tpu.memory_space<vmem>>, %arg4: memref<1x32xf32, #tpu.memory_space<vmem>>, %arg5: memref<32x256xf32, #tpu.memory_space<vmem>>, %arg6: memref<32x128xf32, #tpu.memory_space<vmem>>, %arg7: memref<32x128xf32, #tpu.memory_space<vmem>>, %arg8: memref<1x256xf32, #tpu.memory_space<vmem>>, %arg9: memref<64x256xf32, #tpu.memory_space<vmem>>, %arg10: memref<32x128xf32, #tpu.memory_space<vmem>>, %arg11: memref<32x128xf32, #tpu.memory_space<vmem>>, %arg12: memref<1x256xf32, #tpu.memory_space<vmem>>, %arg13: memref<64x128xf32, #tpu.memory_space<vmem>>, %arg14: memref<1x128xf32, #tpu.memory_space<vmem>>, %arg15: memref<16x128xf32, #tpu.memory_space<vmem>>, %arg16: memref<16x64xf32, #tpu.memory_space<vmem>>, %arg17: memref<16x256xf32, #tpu.memory_space<vmem>>) attributes {dimension_semantics = [], scalar_prefetch = 0 : i64, scratch_operands = 2 : i64, tpu.core_type = #tpu.core_type<tc>} {
    %c0 = arith.constant 0 : index
    %c0_0 = arith.constant 0 : index
    %0 = vector.load %arg0[%c0, %c0_0] : memref<16x6xf32, #tpu.memory_space<vmem>>, vector<16x6xf32>
    %c0_1 = arith.constant 0 : index
    %c0_2 = arith.constant 0 : index
    %1 = vector.load %arg2[%c0_1, %c0_2] : memref<6x32xf32, #tpu.memory_space<vmem>>, vector<6x32xf32>
    %cst = arith.constant dense<0.000000e+00> : vector<16x32xf32>
    %2 = tpu.matmul %0, %1, %cst {dimension_numbers = #tpu.dot_dimension_numbers<[1], [0], [0], [1], [0, 0, 1, 1], [], []>} : vector<16x6xf32>, vector<6x32xf32>, vector<16x32xf32> -> vector<16x32xf32>
    %c0_3 = arith.constant 0 : index
    %c0_4 = arith.constant 0 : index
    %3 = vector.load %arg1[%c0_3, %c0_4] : memref<16x4xf32, #tpu.memory_space<vmem>>, vector<16x4xf32>
    %c0_5 = arith.constant 0 : index
    %c0_6 = arith.constant 0 : index
    %4 = vector.load %arg3[%c0_5, %c0_6] : memref<4x32xf32, #tpu.memory_space<vmem>>, vector<4x32xf32>
    %cst_7 = arith.constant dense<0.000000e+00> : vector<16x32xf32>
    %5 = tpu.matmul %3, %4, %cst_7 {dimension_numbers = #tpu.dot_dimension_numbers<[1], [0], [0], [1], [0, 0, 1, 1], [], []>} : vector<16x4xf32>, vector<4x32xf32>, vector<16x32xf32> -> vector<16x32xf32>
    %6 = arith.addf %2, %5 : vector<16x32xf32>
    %c0_8 = arith.constant 0 : index
    %c0_9 = arith.constant 0 : index
    %7 = vector.load %arg4[%c0_8, %c0_9] : memref<1x32xf32, #tpu.memory_space<vmem>>, vector<1x32xf32>
    %8 = vector.broadcast %7 : vector<1x32xf32> to vector<16x32xf32>
    %9 = arith.addf %6, %8 : vector<16x32xf32>
    %cst_10 = arith.constant 0.000000e+00 : f32
    %10 = vector.broadcast %cst_10 : f32 to vector<16x32xf32>
    %11 = arith.maximumf %9, %10 : vector<16x32xf32>
    %c0_11 = arith.constant 0 : index
    %c0_12 = arith.constant 0 : index
    %12 = vector.load %arg6[%c0_11, %c0_12] : memref<32x128xf32, #tpu.memory_space<vmem>>, vector<32x128xf32>
    %c0_13 = arith.constant 0 : index
    %c0_14 = arith.constant 0 : index
    %13 = vector.load %arg7[%c0_13, %c0_14] : memref<32x128xf32, #tpu.memory_space<vmem>>, vector<32x128xf32>
    %c0_15 = arith.constant 0 : index
    %c0_16 = arith.constant 0 : index
    %14 = vector.load %arg5[%c0_15, %c0_16] : memref<32x256xf32, #tpu.memory_space<vmem>>, vector<32x256xf32>
    %cst_17 = arith.constant dense<0.000000e+00> : vector<16x256xf32>
    %15 = tpu.matmul %11, %14, %cst_17 {dimension_numbers = #tpu.dot_dimension_numbers<[1], [0], [0], [1], [0, 0, 1, 1], [], []>} : vector<16x32xf32>, vector<32x256xf32>, vector<16x256xf32> -> vector<16x256xf32>
    %c0_18 = arith.constant 0 : index
    %c0_19 = arith.constant 0 : index
    %16 = vector.load %arg8[%c0_18, %c0_19] : memref<1x256xf32, #tpu.memory_space<vmem>>, vector<1x256xf32>
    %17 = vector.broadcast %16 : vector<1x256xf32> to vector<16x256xf32>
    %18 = arith.addf %15, %17 : vector<16x256xf32>
    %c0_20 = arith.constant 0 : index
    %c0_21 = arith.constant 0 : index
    %19 = vector.load %arg17[%c0_20, %c0_21] : memref<16x256xf32, #tpu.memory_space<vmem>>, vector<16x256xf32>
    tpu.vector_store %arg17[%c0_20, %c0_21], %18 {strides = array<i32>} : memref<16x256xf32, #tpu.memory_space<vmem>>, vector<16x256xf32>,
    %cst_22 = arith.constant 0.000000e+00 : f32
    %20 = vector.broadcast %cst_22 : f32 to vector<2x32xf32>
    %cst_23 = arith.constant 0.000000e+00 : f32
    %21 = vector.broadcast %cst_23 : f32 to vector<2x32xf32>
    %cst_24 = arith.constant 0.000000e+00 : f32
    %22 = vector.broadcast %cst_24 : f32 to vector<2x32xf32>
    %cst_25 = arith.constant 0.000000e+00 : f32
    %23 = vector.broadcast %cst_25 : f32 to vector<2x32xf32>
    %c0_26 = arith.constant 0 : index
    %c0_27 = arith.constant 0 : index
    %24 = vector.load %arg17[%c0_26, %c0_27] : memref<16x256xf32, #tpu.memory_space<vmem>>, vector<2x128xf32>
    %cst_28 = arith.constant dense<0.000000e+00> : vector<2x128xf32>
    %25 = tpu.matmul %20, %12, %cst_28 {dimension_numbers = #tpu.dot_dimension_numbers<[1], [0], [0], [1], [0, 0, 1, 1], [], []>} : vector<2x32xf32>, vector<32x128xf32>, vector<2x128xf32> -> vector<2x128xf32>
    %26 = arith.addf %24, %25 : vector<2x128xf32>
    %c14 = arith.constant 14 : index
    %c128 = arith.constant 128 : index
    %27 = vector.load %arg17[%c14, %c128] : memref<16x256xf32, #tpu.memory_space<vmem>>, vector<2x128xf32>
    %cst_29 = arith.constant dense<0.000000e+00> : vector<2x128xf32>
    %28 = tpu.matmul %22, %13, %cst_29 {dimension_numbers = #tpu.dot_dimension_numbers<[1], [0], [0], [1], [0, 0, 1, 1], [], []>} : vector<2x32xf32>, vector<32x128xf32>, vector<2x128xf32> -> vector<2x128xf32>
    %29 = arith.addf %27, %28 : vector<2x128xf32>
    %30 = vector.extract_strided_slice %26 {offsets = [0, 0], sizes = [2, 96], strides = [1, 1]} : vector<2x128xf32> to vector<2x96xf32>
    %31 = arith.negf %30 : vector<2x96xf32>
    %32 = math.exp %31 : vector<2x96xf32>
    %cst_30 = arith.constant 1.000000e+00 : f32
    %33 = vector.broadcast %cst_30 : f32 to vector<2x96xf32>
    %34 = arith.addf %33, %32 : vector<2x96xf32>
    %35 = arith.divf %33, %34 : vector<2x96xf32>
    %36 = vector.extract_strided_slice %29 {offsets = [0, 0], sizes = [2, 96], strides = [1, 1]} : vector<2x128xf32> to vector<2x96xf32>
    %37 = arith.negf %36 : vector<2x96xf32>
    %38 = math.exp %37 : vector<2x96xf32>
    %cst_31 = arith.constant 1.000000e+00 : f32
    %39 = vector.broadcast %cst_31 : f32 to vector<2x96xf32>
    %40 = arith.addf %39, %38 : vector<2x96xf32>
    %41 = arith.divf %39, %40 : vector<2x96xf32>
    %42 = vector.extract_strided_slice %26 {offsets = [0, 96], sizes = [2, 32], strides = [1, 1]} : vector<2x128xf32> to vector<2x32xf32>
    %43 = math.tanh %42 : vector<2x32xf32>
    %44 = vector.extract_strided_slice %29 {offsets = [0, 96], sizes = [2, 32], strides = [1, 1]} : vector<2x128xf32> to vector<2x32xf32>
    %45 = math.tanh %44 : vector<2x32xf32>
    %46 = vector.extract_strided_slice %35 {offsets = [0, 32], sizes = [2, 32], strides = [1, 1]} : vector<2x96xf32> to vector<2x32xf32>
    %47 = arith.mulf %46, %21 : vector<2x32xf32>
    %48 = vector.extract_strided_slice %35 {offsets = [0, 0], sizes = [2, 32], strides = [1, 1]} : vector<2x96xf32> to vector<2x32xf32>
    %49 = arith.mulf %48, %43 : vector<2x32xf32>
    %50 = arith.addf %47, %49 : vector<2x32xf32>
    %51 = vector.extract_strided_slice %41 {offsets = [0, 32], sizes = [2, 32], strides = [1, 1]} : vector<2x96xf32> to vector<2x32xf32>
    %52 = arith.mulf %51, %23 : vector<2x32xf32>
    %53 = vector.extract_strided_slice %41 {offsets = [0, 0], sizes = [2, 32], strides = [1, 1]} : vector<2x96xf32> to vector<2x32xf32>
    %54 = arith.mulf %53, %45 : vector<2x32xf32>
    %55 = arith.addf %52, %54 : vector<2x32xf32>
    %56 = vector.extract_strided_slice %35 {offsets = [0, 64], sizes = [2, 32], strides = [1, 1]} : vector<2x96xf32> to vector<2x32xf32>
    %57 = math.tanh %50 : vector<2x32xf32>
    %58 = arith.mulf %56, %57 : vector<2x32xf32>
    %59 = vector.extract_strided_slice %41 {offsets = [0, 64], sizes = [2, 32], strides = [1, 1]} : vector<2x96xf32> to vector<2x32xf32>
    %60 = math.tanh %55 : vector<2x32xf32>
    %61 = arith.mulf %59, %60 : vector<2x32xf32>
    %c0_32 = arith.constant 0 : index
    %c0_33 = arith.constant 0 : index
    %62 = vector.load %arg16[%c0_32, %c0_33] : memref<16x64xf32, #tpu.memory_space<vmem>>, vector<2x32xf32>
    tpu.vector_store %arg16[%c0_32, %c0_33], %58 {strides = array<i32>} : memref<16x64xf32, #tpu.memory_space<vmem>>, vector<2x32xf32>,
    %c14_34 = arith.constant 14 : index
    %c32 = arith.constant 32 : index
    %63 = vector.load %arg16[%c14_34, %c32] : memref<16x64xf32, #tpu.memory_space<vmem>>, vector<2x32xf32>
    tpu.vector_store %arg16[%c14_34, %c32], %61 {strides = array<i32>} : memref<16x64xf32, #tpu.memory_space<vmem>>, vector<2x32xf32>,
    %c2 = arith.constant 2 : index
    %c0_35 = arith.constant 0 : index
    %64 = vector.load %arg17[%c2, %c0_35] : memref<16x256xf32, #tpu.memory_space<vmem>>, vector<2x128xf32>
    %cst_36 = arith.constant dense<0.000000e+00> : vector<2x128xf32>
    %65 = tpu.matmul %58, %12, %cst_36 {dimension_numbers = #tpu.dot_dimension_numbers<[1], [0], [0], [1], [0, 0, 1, 1], [], []>} : vector<2x32xf32>, vector<32x128xf32>, vector<2x128xf32> -> vector<2x128xf32>
    %66 = arith.addf %64, %65 : vector<2x128xf32>
    %c12 = arith.constant 12 : index
    %c128_37 = arith.constant 128 : index
    %67 = vector.load %arg17[%c12, %c128_37] : memref<16x256xf32, #tpu.memory_space<vmem>>, vector<2x128xf32>
    %cst_38 = arith.constant dense<0.000000e+00> : vector<2x128xf32>
    %68 = tpu.matmul %61, %13, %cst_38 {dimension_numbers = #tpu.dot_dimension_numbers<[1], [0], [0], [1], [0, 0, 1, 1], [], []>} : vector<2x32xf32>, vector<32x128xf32>, vector<2x128xf32> -> vector<2x128xf32>
    %69 = arith.addf %67, %68 : vector<2x128xf32>
    %70 = vector.extract_strided_slice %66 {offsets = [0, 0], sizes = [2, 96], strides = [1, 1]} : vector<2x128xf32> to vector<2x96xf32>
    %71 = arith.negf %70 : vector<2x96xf32>
    %72 = math.exp %71 : vector<2x96xf32>
    %cst_39 = arith.constant 1.000000e+00 : f32
    %73 = vector.broadcast %cst_39 : f32 to vector<2x96xf32>
    %74 = arith.addf %73, %72 : vector<2x96xf32>
    %75 = arith.divf %73, %74 : vector<2x96xf32>
    %76 = vector.extract_strided_slice %69 {offsets = [0, 0], sizes = [2, 96], strides = [1, 1]} : vector<2x128xf32> to vector<2x96xf32>
    %77 = arith.negf %76 : vector<2x96xf32>
    %78 = math.exp %77 : vector<2x96xf32>
    %cst_40 = arith.constant 1.000000e+00 : f32
    %79 = vector.broadcast %cst_40 : f32 to vector<2x96xf32>
    %80 = arith.addf %79, %78 : vector<2x96xf32>
    %81 = arith.divf %79, %80 : vector<2x96xf32>
    %82 = vector.extract_strided_slice %66 {offsets = [0, 96], sizes = [2, 32], strides = [1, 1]} : vector<2x128xf32> to vector<2x32xf32>
    %83 = math.tanh %82 : vector<2x32xf32>
    %84 = vector.extract_strided_slice %69 {offsets = [0, 96], sizes = [2, 32], strides = [1, 1]} : vector<2x128xf32> to vector<2x32xf32>
    %85 = math.tanh %84 : vector<2x32xf32>
    %86 = vector.extract_strided_slice %75 {offsets = [0, 32], sizes = [2, 32], strides = [1, 1]} : vector<2x96xf32> to vector<2x32xf32>
    %87 = arith.mulf %86, %50 : vector<2x32xf32>
    %88 = vector.extract_strided_slice %75 {offsets = [0, 0], sizes = [2, 32], strides = [1, 1]} : vector<2x96xf32> to vector<2x32xf32>
    %89 = arith.mulf %88, %83 : vector<2x32xf32>
    %90 = arith.addf %87, %89 : vector<2x32xf32>
    %91 = vector.extract_strided_slice %81 {offsets = [0, 32], sizes = [2, 32], strides = [1, 1]} : vector<2x96xf32> to vector<2x32xf32>
    %92 = arith.mulf %91, %55 : vector<2x32xf32>
    %93 = vector.extract_strided_slice %81 {offsets = [0, 0], sizes = [2, 32], strides = [1, 1]} : vector<2x96xf32> to vector<2x32xf32>
    %94 = arith.mulf %93, %85 : vector<2x32xf32>
    %95 = arith.addf %92, %94 : vector<2x32xf32>
    %96 = vector.extract_strided_slice %75 {offsets = [0, 64], sizes = [2, 32], strides = [1, 1]} : vector<2x96xf32> to vector<2x32xf32>
    %97 = math.tanh %90 : vector<2x32xf32>
    %98 = arith.mulf %96, %97 : vector<2x32xf32>
    %99 = vector.extract_strided_slice %81 {offsets = [0, 64], sizes = [2, 32], strides = [1, 1]} : vector<2x96xf32> to vector<2x32xf32>
    %100 = math.tanh %95 : vector<2x32xf32>
    %101 = arith.mulf %99, %100 : vector<2x32xf32>
    %c2_41 = arith.constant 2 : index
    %c0_42 = arith.constant 0 : index
    %102 = vector.load %arg16[%c2_41, %c0_42] : memref<16x64xf32, #tpu.memory_space<vmem>>, vector<2x32xf32>
    tpu.vector_store %arg16[%c2_41, %c0_42], %98 {strides = array<i32>} : memref<16x64xf32, #tpu.memory_space<vmem>>, vector<2x32xf32>,
    %c12_43 = arith.constant 12 : index
    %c32_44 = arith.constant 32 : index
    %103 = vector.load %arg16[%c12_43, %c32_44] : memref<16x64xf32, #tpu.memory_space<vmem>>, vector<2x32xf32>
    tpu.vector_store %arg16[%c12_43, %c32_44], %101 {strides = array<i32>} : memref<16x64xf32, #tpu.memory_space<vmem>>, vector<2x32xf32>,
    %c4 = arith.constant 4 : index
    %c0_45 = arith.constant 0 : index
    %104 = vector.load %arg17[%c4, %c0_45] : memref<16x256xf32, #tpu.memory_space<vmem>>, vector<2x128xf32>
    %cst_46 = arith.constant dense<0.000000e+00> : vector<2x128xf32>
    %105 = tpu.matmul %98, %12, %cst_46 {dimension_numbers = #tpu.dot_dimension_numbers<[1], [0], [0], [1], [0, 0, 1, 1], [], []>} : vector<2x32xf32>, vector<32x128xf32>, vector<2x128xf32> -> vector<2x128xf32>
    %106 = arith.addf %104, %105 : vector<2x128xf32>
    %c10 = arith.constant 10 : index
    %c128_47 = arith.constant 128 : index
    %107 = vector.load %arg17[%c10, %c128_47] : memref<16x256xf32, #tpu.memory_space<vmem>>, vector<2x128xf32>
    %cst_48 = arith.constant dense<0.000000e+00> : vector<2x128xf32>
    %108 = tpu.matmul %101, %13, %cst_48 {dimension_numbers = #tpu.dot_dimension_numbers<[1], [0], [0], [1], [0, 0, 1, 1], [], []>} : vector<2x32xf32>, vector<32x128xf32>, vector<2x128xf32> -> vector<2x128xf32>
    %109 = arith.addf %107, %108 : vector<2x128xf32>
    %110 = vector.extract_strided_slice %106 {offsets = [0, 0], sizes = [2, 96], strides = [1, 1]} : vector<2x128xf32> to vector<2x96xf32>
    %111 = arith.negf %110 : vector<2x96xf32>
    %112 = math.exp %111 : vector<2x96xf32>
    %cst_49 = arith.constant 1.000000e+00 : f32
    %113 = vector.broadcast %cst_49 : f32 to vector<2x96xf32>
    %114 = arith.addf %113, %112 : vector<2x96xf32>
    %115 = arith.divf %113, %114 : vector<2x96xf32>
    %116 = vector.extract_strided_slice %109 {offsets = [0, 0], sizes = [2, 96], strides = [1, 1]} : vector<2x128xf32> to vector<2x96xf32>
    %117 = arith.negf %116 : vector<2x96xf32>
    %118 = math.exp %117 : vector<2x96xf32>
    %cst_50 = arith.constant 1.000000e+00 : f32
    %119 = vector.broadcast %cst_50 : f32 to vector<2x96xf32>
    %120 = arith.addf %119, %118 : vector<2x96xf32>
    %121 = arith.divf %119, %120 : vector<2x96xf32>
    %122 = vector.extract_strided_slice %106 {offsets = [0, 96], sizes = [2, 32], strides = [1, 1]} : vector<2x128xf32> to vector<2x32xf32>
    %123 = math.tanh %122 : vector<2x32xf32>
    %124 = vector.extract_strided_slice %109 {offsets = [0, 96], sizes = [2, 32], strides = [1, 1]} : vector<2x128xf32> to vector<2x32xf32>
    %125 = math.tanh %124 : vector<2x32xf32>
    %126 = vector.extract_strided_slice %115 {offsets = [0, 32], sizes = [2, 32], strides = [1, 1]} : vector<2x96xf32> to vector<2x32xf32>
    %127 = arith.mulf %126, %90 : vector<2x32xf32>
    %128 = vector.extract_strided_slice %115 {offsets = [0, 0], sizes = [2, 32], strides = [1, 1]} : vector<2x96xf32> to vector<2x32xf32>
    %129 = arith.mulf %128, %123 : vector<2x32xf32>
    %130 = arith.addf %127, %129 : vector<2x32xf32>
    %131 = vector.extract_strided_slice %121 {offsets = [0, 32], sizes = [2, 32], strides = [1, 1]} : vector<2x96xf32> to vector<2x32xf32>
    %132 = arith.mulf %131, %95 : vector<2x32xf32>
    %133 = vector.extract_strided_slice %121 {offsets = [0, 0], sizes = [2, 32], strides = [1, 1]} : vector<2x96xf32> to vector<2x32xf32>
    %134 = arith.mulf %133, %125 : vector<2x32xf32>
    %135 = arith.addf %132, %134 : vector<2x32xf32>
    %136 = vector.extract_strided_slice %115 {offsets = [0, 64], sizes = [2, 32], strides = [1, 1]} : vector<2x96xf32> to vector<2x32xf32>
    %137 = math.tanh %130 : vector<2x32xf32>
    %138 = arith.mulf %136, %137 : vector<2x32xf32>
    %139 = vector.extract_strided_slice %121 {offsets = [0, 64], sizes = [2, 32], strides = [1, 1]} : vector<2x96xf32> to vector<2x32xf32>
    %140 = math.tanh %135 : vector<2x32xf32>
    %141 = arith.mulf %139, %140 : vector<2x32xf32>
    %c4_51 = arith.constant 4 : index
    %c0_52 = arith.constant 0 : index
    %142 = vector.load %arg16[%c4_51, %c0_52] : memref<16x64xf32, #tpu.memory_space<vmem>>, vector<2x32xf32>
    tpu.vector_store %arg16[%c4_51, %c0_52], %138 {strides = array<i32>} : memref<16x64xf32, #tpu.memory_space<vmem>>, vector<2x32xf32>,
    %c10_53 = arith.constant 10 : index
    %c32_54 = arith.constant 32 : index
    %143 = vector.load %arg16[%c10_53, %c32_54] : memref<16x64xf32, #tpu.memory_space<vmem>>, vector<2x32xf32>
    tpu.vector_store %arg16[%c10_53, %c32_54], %141 {strides = array<i32>} : memref<16x64xf32, #tpu.memory_space<vmem>>, vector<2x32xf32>,
    %c6 = arith.constant 6 : index
    %c0_55 = arith.constant 0 : index
    %144 = vector.load %arg17[%c6, %c0_55] : memref<16x256xf32, #tpu.memory_space<vmem>>, vector<2x128xf32>
    %cst_56 = arith.constant dense<0.000000e+00> : vector<2x128xf32>
    %145 = tpu.matmul %138, %12, %cst_56 {dimension_numbers = #tpu.dot_dimension_numbers<[1], [0], [0], [1], [0, 0, 1, 1], [], []>} : vector<2x32xf32>, vector<32x128xf32>, vector<2x128xf32> -> vector<2x128xf32>
    %146 = arith.addf %144, %145 : vector<2x128xf32>
    %c8 = arith.constant 8 : index
    %c128_57 = arith.constant 128 : index
    %147 = vector.load %arg17[%c8, %c128_57] : memref<16x256xf32, #tpu.memory_space<vmem>>, vector<2x128xf32>
    %cst_58 = arith.constant dense<0.000000e+00> : vector<2x128xf32>
    %148 = tpu.matmul %141, %13, %cst_58 {dimension_numbers = #tpu.dot_dimension_numbers<[1], [0], [0], [1], [0, 0, 1, 1], [], []>} : vector<2x32xf32>, vector<32x128xf32>, vector<2x128xf32> -> vector<2x128xf32>
    %149 = arith.addf %147, %148 : vector<2x128xf32>
    %150 = vector.extract_strided_slice %146 {offsets = [0, 0], sizes = [2, 96], strides = [1, 1]} : vector<2x128xf32> to vector<2x96xf32>
    %151 = arith.negf %150 : vector<2x96xf32>
    %152 = math.exp %151 : vector<2x96xf32>
    %cst_59 = arith.constant 1.000000e+00 : f32
    %153 = vector.broadcast %cst_59 : f32 to vector<2x96xf32>
    %154 = arith.addf %153, %152 : vector<2x96xf32>
    %155 = arith.divf %153, %154 : vector<2x96xf32>
    %156 = vector.extract_strided_slice %149 {offsets = [0, 0], sizes = [2, 96], strides = [1, 1]} : vector<2x128xf32> to vector<2x96xf32>
    %157 = arith.negf %156 : vector<2x96xf32>
    %158 = math.exp %157 : vector<2x96xf32>
    %cst_60 = arith.constant 1.000000e+00 : f32
    %159 = vector.broadcast %cst_60 : f32 to vector<2x96xf32>
    %160 = arith.addf %159, %158 : vector<2x96xf32>
    %161 = arith.divf %159, %160 : vector<2x96xf32>
    %162 = vector.extract_strided_slice %146 {offsets = [0, 96], sizes = [2, 32], strides = [1, 1]} : vector<2x128xf32> to vector<2x32xf32>
    %163 = math.tanh %162 : vector<2x32xf32>
    %164 = vector.extract_strided_slice %149 {offsets = [0, 96], sizes = [2, 32], strides = [1, 1]} : vector<2x128xf32> to vector<2x32xf32>
    %165 = math.tanh %164 : vector<2x32xf32>
    %166 = vector.extract_strided_slice %155 {offsets = [0, 32], sizes = [2, 32], strides = [1, 1]} : vector<2x96xf32> to vector<2x32xf32>
    %167 = arith.mulf %166, %130 : vector<2x32xf32>
    %168 = vector.extract_strided_slice %155 {offsets = [0, 0], sizes = [2, 32], strides = [1, 1]} : vector<2x96xf32> to vector<2x32xf32>
    %169 = arith.mulf %168, %163 : vector<2x32xf32>
    %170 = arith.addf %167, %169 : vector<2x32xf32>
    %171 = vector.extract_strided_slice %161 {offsets = [0, 32], sizes = [2, 32], strides = [1, 1]} : vector<2x96xf32> to vector<2x32xf32>
    %172 = arith.mulf %171, %135 : vector<2x32xf32>
    %173 = vector.extract_strided_slice %161 {offsets = [0, 0], sizes = [2, 32], strides = [1, 1]} : vector<2x96xf32> to vector<2x32xf32>
    %174 = arith.mulf %173, %165 : vector<2x32xf32>
    %175 = arith.addf %172, %174 : vector<2x32xf32>
    %176 = vector.extract_strided_slice %155 {offsets = [0, 64], sizes = [2, 32], strides = [1, 1]} : vector<2x96xf32> to vector<2x32xf32>
    %177 = math.tanh %170 : vector<2x32xf32>
    %178 = arith.mulf %176, %177 : vector<2x32xf32>
    %179 = vector.extract_strided_slice %161 {offsets = [0, 64], sizes = [2, 32], strides = [1, 1]} : vector<2x96xf32> to vector<2x32xf32>
    %180 = math.tanh %175 : vector<2x32xf32>
    %181 = arith.mulf %179, %180 : vector<2x32xf32>
    %c6_61 = arith.constant 6 : index
    %c0_62 = arith.constant 0 : index
    %182 = vector.load %arg16[%c6_61, %c0_62] : memref<16x64xf32, #tpu.memory_space<vmem>>, vector<2x32xf32>
    tpu.vector_store %arg16[%c6_61, %c0_62], %178 {strides = array<i32>} : memref<16x64xf32, #tpu.memory_space<vmem>>, vector<2x32xf32>,
    %c8_63 = arith.constant 8 : index
    %c32_64 = arith.constant 32 : index
    %183 = vector.load %arg16[%c8_63, %c32_64] : memref<16x64xf32, #tpu.memory_space<vmem>>, vector<2x32xf32>
    tpu.vector_store %arg16[%c8_63, %c32_64], %181 {strides = array<i32>} : memref<16x64xf32, #tpu.memory_space<vmem>>, vector<2x32xf32>,
    %c8_65 = arith.constant 8 : index
    %c0_66 = arith.constant 0 : index
    %184 = vector.load %arg17[%c8_65, %c0_66] : memref<16x256xf32, #tpu.memory_space<vmem>>, vector<2x128xf32>
    %cst_67 = arith.constant dense<0.000000e+00> : vector<2x128xf32>
    %185 = tpu.matmul %178, %12, %cst_67 {dimension_numbers = #tpu.dot_dimension_numbers<[1], [0], [0], [1], [0, 0, 1, 1], [], []>} : vector<2x32xf32>, vector<32x128xf32>, vector<2x128xf32> -> vector<2x128xf32>
    %186 = arith.addf %184, %185 : vector<2x128xf32>
    %c6_68 = arith.constant 6 : index
    %c128_69 = arith.constant 128 : index
    %187 = vector.load %arg17[%c6_68, %c128_69] : memref<16x256xf32, #tpu.memory_space<vmem>>, vector<2x128xf32>
    %cst_70 = arith.constant dense<0.000000e+00> : vector<2x128xf32>
    %188 = tpu.matmul %181, %13, %cst_70 {dimension_numbers = #tpu.dot_dimension_numbers<[1], [0], [0], [1], [0, 0, 1, 1], [], []>} : vector<2x32xf32>, vector<32x128xf32>, vector<2x128xf32> -> vector<2x128xf32>
    %189 = arith.addf %187, %188 : vector<2x128xf32>
    %190 = vector.extract_strided_slice %186 {offsets = [0, 0], sizes = [2, 96], strides = [1, 1]} : vector<2x128xf32> to vector<2x96xf32>
    %191 = arith.negf %190 : vector<2x96xf32>
    %192 = math.exp %191 : vector<2x96xf32>
    %cst_71 = arith.constant 1.000000e+00 : f32
    %193 = vector.broadcast %cst_71 : f32 to vector<2x96xf32>
    %194 = arith.addf %193, %192 : vector<2x96xf32>
    %195 = arith.divf %193, %194 : vector<2x96xf32>
    %196 = vector.extract_strided_slice %189 {offsets = [0, 0], sizes = [2, 96], strides = [1, 1]} : vector<2x128xf32> to vector<2x96xf32>
    %197 = arith.negf %196 : vector<2x96xf32>
    %198 = math.exp %197 : vector<2x96xf32>
    %cst_72 = arith.constant 1.000000e+00 : f32
    %199 = vector.broadcast %cst_72 : f32 to vector<2x96xf32>
    %200 = arith.addf %199, %198 : vector<2x96xf32>
    %201 = arith.divf %199, %200 : vector<2x96xf32>
    %202 = vector.extract_strided_slice %186 {offsets = [0, 96], sizes = [2, 32], strides = [1, 1]} : vector<2x128xf32> to vector<2x32xf32>
    %203 = math.tanh %202 : vector<2x32xf32>
    %204 = vector.extract_strided_slice %189 {offsets = [0, 96], sizes = [2, 32], strides = [1, 1]} : vector<2x128xf32> to vector<2x32xf32>
    %205 = math.tanh %204 : vector<2x32xf32>
    %206 = vector.extract_strided_slice %195 {offsets = [0, 32], sizes = [2, 32], strides = [1, 1]} : vector<2x96xf32> to vector<2x32xf32>
    %207 = arith.mulf %206, %170 : vector<2x32xf32>
    %208 = vector.extract_strided_slice %195 {offsets = [0, 0], sizes = [2, 32], strides = [1, 1]} : vector<2x96xf32> to vector<2x32xf32>
    %209 = arith.mulf %208, %203 : vector<2x32xf32>
    %210 = arith.addf %207, %209 : vector<2x32xf32>
    %211 = vector.extract_strided_slice %201 {offsets = [0, 32], sizes = [2, 32], strides = [1, 1]} : vector<2x96xf32> to vector<2x32xf32>
    %212 = arith.mulf %211, %175 : vector<2x32xf32>
    %213 = vector.extract_strided_slice %201 {offsets = [0, 0], sizes = [2, 32], strides = [1, 1]} : vector<2x96xf32> to vector<2x32xf32>
    %214 = arith.mulf %213, %205 : vector<2x32xf32>
    %215 = arith.addf %212, %214 : vector<2x32xf32>
    %216 = vector.extract_strided_slice %195 {offsets = [0, 64], sizes = [2, 32], strides = [1, 1]} : vector<2x96xf32> to vector<2x32xf32>
    %217 = math.tanh %210 : vector<2x32xf32>
    %218 = arith.mulf %216, %217 : vector<2x32xf32>
    %219 = vector.extract_strided_slice %201 {offsets = [0, 64], sizes = [2, 32], strides = [1, 1]} : vector<2x96xf32> to vector<2x32xf32>
    %220 = math.tanh %215 : vector<2x32xf32>
    %221 = arith.mulf %219, %220 : vector<2x32xf32>
    %c8_73 = arith.constant 8 : index
    %c0_74 = arith.constant 0 : index
    %222 = vector.load %arg16[%c8_73, %c0_74] : memref<16x64xf32, #tpu.memory_space<vmem>>, vector<2x32xf32>
    tpu.vector_store %arg16[%c8_73, %c0_74], %218 {strides = array<i32>} : memref<16x64xf32, #tpu.memory_space<vmem>>, vector<2x32xf32>,
    %c6_75 = arith.constant 6 : index
    %c32_76 = arith.constant 32 : index
    %223 = vector.load %arg16[%c6_75, %c32_76] : memref<16x64xf32, #tpu.memory_space<vmem>>, vector<2x32xf32>
    tpu.vector_store %arg16[%c6_75, %c32_76], %221 {strides = array<i32>} : memref<16x64xf32, #tpu.memory_space<vmem>>, vector<2x32xf32>,
    %c10_77 = arith.constant 10 : index
    %c0_78 = arith.constant 0 : index
    %224 = vector.load %arg17[%c10_77, %c0_78] : memref<16x256xf32, #tpu.memory_space<vmem>>, vector<2x128xf32>
    %cst_79 = arith.constant dense<0.000000e+00> : vector<2x128xf32>
    %225 = tpu.matmul %218, %12, %cst_79 {dimension_numbers = #tpu.dot_dimension_numbers<[1], [0], [0], [1], [0, 0, 1, 1], [], []>} : vector<2x32xf32>, vector<32x128xf32>, vector<2x128xf32> -> vector<2x128xf32>
    %226 = arith.addf %224, %225 : vector<2x128xf32>
    %c4_80 = arith.constant 4 : index
    %c128_81 = arith.constant 128 : index
    %227 = vector.load %arg17[%c4_80, %c128_81] : memref<16x256xf32, #tpu.memory_space<vmem>>, vector<2x128xf32>
    %cst_82 = arith.constant dense<0.000000e+00> : vector<2x128xf32>
    %228 = tpu.matmul %221, %13, %cst_82 {dimension_numbers = #tpu.dot_dimension_numbers<[1], [0], [0], [1], [0, 0, 1, 1], [], []>} : vector<2x32xf32>, vector<32x128xf32>, vector<2x128xf32> -> vector<2x128xf32>
    %229 = arith.addf %227, %228 : vector<2x128xf32>
    %230 = vector.extract_strided_slice %226 {offsets = [0, 0], sizes = [2, 96], strides = [1, 1]} : vector<2x128xf32> to vector<2x96xf32>
    %231 = arith.negf %230 : vector<2x96xf32>
    %232 = math.exp %231 : vector<2x96xf32>
    %cst_83 = arith.constant 1.000000e+00 : f32
    %233 = vector.broadcast %cst_83 : f32 to vector<2x96xf32>
    %234 = arith.addf %233, %232 : vector<2x96xf32>
    %235 = arith.divf %233, %234 : vector<2x96xf32>
    %236 = vector.extract_strided_slice %229 {offsets = [0, 0], sizes = [2, 96], strides = [1, 1]} : vector<2x128xf32> to vector<2x96xf32>
    %237 = arith.negf %236 : vector<2x96xf32>
    %238 = math.exp %237 : vector<2x96xf32>
    %cst_84 = arith.constant 1.000000e+00 : f32
    %239 = vector.broadcast %cst_84 : f32 to vector<2x96xf32>
    %240 = arith.addf %239, %238 : vector<2x96xf32>
    %241 = arith.divf %239, %240 : vector<2x96xf32>
    %242 = vector.extract_strided_slice %226 {offsets = [0, 96], sizes = [2, 32], strides = [1, 1]} : vector<2x128xf32> to vector<2x32xf32>
    %243 = math.tanh %242 : vector<2x32xf32>
    %244 = vector.extract_strided_slice %229 {offsets = [0, 96], sizes = [2, 32], strides = [1, 1]} : vector<2x128xf32> to vector<2x32xf32>
    %245 = math.tanh %244 : vector<2x32xf32>
    %246 = vector.extract_strided_slice %235 {offsets = [0, 32], sizes = [2, 32], strides = [1, 1]} : vector<2x96xf32> to vector<2x32xf32>
    %247 = arith.mulf %246, %210 : vector<2x32xf32>
    %248 = vector.extract_strided_slice %235 {offsets = [0, 0], sizes = [2, 32], strides = [1, 1]} : vector<2x96xf32> to vector<2x32xf32>
    %249 = arith.mulf %248, %243 : vector<2x32xf32>
    %250 = arith.addf %247, %249 : vector<2x32xf32>
    %251 = vector.extract_strided_slice %241 {offsets = [0, 32], sizes = [2, 32], strides = [1, 1]} : vector<2x96xf32> to vector<2x32xf32>
    %252 = arith.mulf %251, %215 : vector<2x32xf32>
    %253 = vector.extract_strided_slice %241 {offsets = [0, 0], sizes = [2, 32], strides = [1, 1]} : vector<2x96xf32> to vector<2x32xf32>
    %254 = arith.mulf %253, %245 : vector<2x32xf32>
    %255 = arith.addf %252, %254 : vector<2x32xf32>
    %256 = vector.extract_strided_slice %235 {offsets = [0, 64], sizes = [2, 32], strides = [1, 1]} : vector<2x96xf32> to vector<2x32xf32>
    %257 = math.tanh %250 : vector<2x32xf32>
    %258 = arith.mulf %256, %257 : vector<2x32xf32>
    %259 = vector.extract_strided_slice %241 {offsets = [0, 64], sizes = [2, 32], strides = [1, 1]} : vector<2x96xf32> to vector<2x32xf32>
    %260 = math.tanh %255 : vector<2x32xf32>
    %261 = arith.mulf %259, %260 : vector<2x32xf32>
    %c10_85 = arith.constant 10 : index
    %c0_86 = arith.constant 0 : index
    %262 = vector.load %arg16[%c10_85, %c0_86] : memref<16x64xf32, #tpu.memory_space<vmem>>, vector<2x32xf32>
    tpu.vector_store %arg16[%c10_85, %c0_86], %258 {strides = array<i32>} : memref<16x64xf32, #tpu.memory_space<vmem>>, vector<2x32xf32>,
    %c4_87 = arith.constant 4 : index
    %c32_88 = arith.constant 32 : index
    %263 = vector.load %arg16[%c4_87, %c32_88] : memref<16x64xf32, #tpu.memory_space<vmem>>, vector<2x32xf32>
    tpu.vector_store %arg16[%c4_87, %c32_88], %261 {strides = array<i32>} : memref<16x64xf32, #tpu.memory_space<vmem>>, vector<2x32xf32>,
    %c12_89 = arith.constant 12 : index
    %c0_90 = arith.constant 0 : index
    %264 = vector.load %arg17[%c12_89, %c0_90] : memref<16x256xf32, #tpu.memory_space<vmem>>, vector<2x128xf32>
    %cst_91 = arith.constant dense<0.000000e+00> : vector<2x128xf32>
    %265 = tpu.matmul %258, %12, %cst_91 {dimension_numbers = #tpu.dot_dimension_numbers<[1], [0], [0], [1], [0, 0, 1, 1], [], []>} : vector<2x32xf32>, vector<32x128xf32>, vector<2x128xf32> -> vector<2x128xf32>
    %266 = arith.addf %264, %265 : vector<2x128xf32>
    %c2_92 = arith.constant 2 : index
    %c128_93 = arith.constant 128 : index
    %267 = vector.load %arg17[%c2_92, %c128_93] : memref<16x256xf32, #tpu.memory_space<vmem>>, vector<2x128xf32>
    %cst_94 = arith.constant dense<0.000000e+00> : vector<2x128xf32>
    %268 = tpu.matmul %261, %13, %cst_94 {dimension_numbers = #tpu.dot_dimension_numbers<[1], [0], [0], [1], [0, 0, 1, 1], [], []>} : vector<2x32xf32>, vector<32x128xf32>, vector<2x128xf32> -> vector<2x128xf32>
    %269 = arith.addf %267, %268 : vector<2x128xf32>
    %270 = vector.extract_strided_slice %266 {offsets = [0, 0], sizes = [2, 96], strides = [1, 1]} : vector<2x128xf32> to vector<2x96xf32>
    %271 = arith.negf %270 : vector<2x96xf32>
    %272 = math.exp %271 : vector<2x96xf32>
    %cst_95 = arith.constant 1.000000e+00 : f32
    %273 = vector.broadcast %cst_95 : f32 to vector<2x96xf32>
    %274 = arith.addf %273, %272 : vector<2x96xf32>
    %275 = arith.divf %273, %274 : vector<2x96xf32>
    %276 = vector.extract_strided_slice %269 {offsets = [0, 0], sizes = [2, 96], strides = [1, 1]} : vector<2x128xf32> to vector<2x96xf32>
    %277 = arith.negf %276 : vector<2x96xf32>
    %278 = math.exp %277 : vector<2x96xf32>
    %cst_96 = arith.constant 1.000000e+00 : f32
    %279 = vector.broadcast %cst_96 : f32 to vector<2x96xf32>
    %280 = arith.addf %279, %278 : vector<2x96xf32>
    %281 = arith.divf %279, %280 : vector<2x96xf32>
    %282 = vector.extract_strided_slice %266 {offsets = [0, 96], sizes = [2, 32], strides = [1, 1]} : vector<2x128xf32> to vector<2x32xf32>
    %283 = math.tanh %282 : vector<2x32xf32>
    %284 = vector.extract_strided_slice %269 {offsets = [0, 96], sizes = [2, 32], strides = [1, 1]} : vector<2x128xf32> to vector<2x32xf32>
    %285 = math.tanh %284 : vector<2x32xf32>
    %286 = vector.extract_strided_slice %275 {offsets = [0, 32], sizes = [2, 32], strides = [1, 1]} : vector<2x96xf32> to vector<2x32xf32>
    %287 = arith.mulf %286, %250 : vector<2x32xf32>
    %288 = vector.extract_strided_slice %275 {offsets = [0, 0], sizes = [2, 32], strides = [1, 1]} : vector<2x96xf32> to vector<2x32xf32>
    %289 = arith.mulf %288, %283 : vector<2x32xf32>
    %290 = arith.addf %287, %289 : vector<2x32xf32>
    %291 = vector.extract_strided_slice %281 {offsets = [0, 32], sizes = [2, 32], strides = [1, 1]} : vector<2x96xf32> to vector<2x32xf32>
    %292 = arith.mulf %291, %255 : vector<2x32xf32>
    %293 = vector.extract_strided_slice %281 {offsets = [0, 0], sizes = [2, 32], strides = [1, 1]} : vector<2x96xf32> to vector<2x32xf32>
    %294 = arith.mulf %293, %285 : vector<2x32xf32>
    %295 = arith.addf %292, %294 : vector<2x32xf32>
    %296 = vector.extract_strided_slice %275 {offsets = [0, 64], sizes = [2, 32], strides = [1, 1]} : vector<2x96xf32> to vector<2x32xf32>
    %297 = math.tanh %290 : vector<2x32xf32>
    %298 = arith.mulf %296, %297 : vector<2x32xf32>
    %299 = vector.extract_strided_slice %281 {offsets = [0, 64], sizes = [2, 32], strides = [1, 1]} : vector<2x96xf32> to vector<2x32xf32>
    %300 = math.tanh %295 : vector<2x32xf32>
    %301 = arith.mulf %299, %300 : vector<2x32xf32>
    %c12_97 = arith.constant 12 : index
    %c0_98 = arith.constant 0 : index
    %302 = vector.load %arg16[%c12_97, %c0_98] : memref<16x64xf32, #tpu.memory_space<vmem>>, vector<2x32xf32>
    tpu.vector_store %arg16[%c12_97, %c0_98], %298 {strides = array<i32>} : memref<16x64xf32, #tpu.memory_space<vmem>>, vector<2x32xf32>,
    %c2_99 = arith.constant 2 : index
    %c32_100 = arith.constant 32 : index
    %303 = vector.load %arg16[%c2_99, %c32_100] : memref<16x64xf32, #tpu.memory_space<vmem>>, vector<2x32xf32>
    tpu.vector_store %arg16[%c2_99, %c32_100], %301 {strides = array<i32>} : memref<16x64xf32, #tpu.memory_space<vmem>>, vector<2x32xf32>,
    %c14_101 = arith.constant 14 : index
    %c0_102 = arith.constant 0 : index
    %304 = vector.load %arg17[%c14_101, %c0_102] : memref<16x256xf32, #tpu.memory_space<vmem>>, vector<2x128xf32>
    %cst_103 = arith.constant dense<0.000000e+00> : vector<2x128xf32>
    %305 = tpu.matmul %298, %12, %cst_103 {dimension_numbers = #tpu.dot_dimension_numbers<[1], [0], [0], [1], [0, 0, 1, 1], [], []>} : vector<2x32xf32>, vector<32x128xf32>, vector<2x128xf32> -> vector<2x128xf32>
    %306 = arith.addf %304, %305 : vector<2x128xf32>
    %c0_104 = arith.constant 0 : index
    %c128_105 = arith.constant 128 : index
    %307 = vector.load %arg17[%c0_104, %c128_105] : memref<16x256xf32, #tpu.memory_space<vmem>>, vector<2x128xf32>
    %cst_106 = arith.constant dense<0.000000e+00> : vector<2x128xf32>
    %308 = tpu.matmul %301, %13, %cst_106 {dimension_numbers = #tpu.dot_dimension_numbers<[1], [0], [0], [1], [0, 0, 1, 1], [], []>} : vector<2x32xf32>, vector<32x128xf32>, vector<2x128xf32> -> vector<2x128xf32>
    %309 = arith.addf %307, %308 : vector<2x128xf32>
    %310 = vector.extract_strided_slice %306 {offsets = [0, 0], sizes = [2, 96], strides = [1, 1]} : vector<2x128xf32> to vector<2x96xf32>
    %311 = arith.negf %310 : vector<2x96xf32>
    %312 = math.exp %311 : vector<2x96xf32>
    %cst_107 = arith.constant 1.000000e+00 : f32
    %313 = vector.broadcast %cst_107 : f32 to vector<2x96xf32>
    %314 = arith.addf %313, %312 : vector<2x96xf32>
    %315 = arith.divf %313, %314 : vector<2x96xf32>
    %316 = vector.extract_strided_slice %309 {offsets = [0, 0], sizes = [2, 96], strides = [1, 1]} : vector<2x128xf32> to vector<2x96xf32>
    %317 = arith.negf %316 : vector<2x96xf32>
    %318 = math.exp %317 : vector<2x96xf32>
    %cst_108 = arith.constant 1.000000e+00 : f32
    %319 = vector.broadcast %cst_108 : f32 to vector<2x96xf32>
    %320 = arith.addf %319, %318 : vector<2x96xf32>
    %321 = arith.divf %319, %320 : vector<2x96xf32>
    %322 = vector.extract_strided_slice %306 {offsets = [0, 96], sizes = [2, 32], strides = [1, 1]} : vector<2x128xf32> to vector<2x32xf32>
    %323 = math.tanh %322 : vector<2x32xf32>
    %324 = vector.extract_strided_slice %309 {offsets = [0, 96], sizes = [2, 32], strides = [1, 1]} : vector<2x128xf32> to vector<2x32xf32>
    %325 = math.tanh %324 : vector<2x32xf32>
    %326 = vector.extract_strided_slice %315 {offsets = [0, 32], sizes = [2, 32], strides = [1, 1]} : vector<2x96xf32> to vector<2x32xf32>
    %327 = arith.mulf %326, %290 : vector<2x32xf32>
    %328 = vector.extract_strided_slice %315 {offsets = [0, 0], sizes = [2, 32], strides = [1, 1]} : vector<2x96xf32> to vector<2x32xf32>
    %329 = arith.mulf %328, %323 : vector<2x32xf32>
    %330 = arith.addf %327, %329 : vector<2x32xf32>
    %331 = vector.extract_strided_slice %321 {offsets = [0, 32], sizes = [2, 32], strides = [1, 1]} : vector<2x96xf32> to vector<2x32xf32>
    %332 = arith.mulf %331, %295 : vector<2x32xf32>
    %333 = vector.extract_strided_slice %321 {offsets = [0, 0], sizes = [2, 32], strides = [1, 1]} : vector<2x96xf32> to vector<2x32xf32>
    %334 = arith.mulf %333, %325 : vector<2x32xf32>
    %335 = arith.addf %332, %334 : vector<2x32xf32>
    %336 = vector.extract_strided_slice %315 {offsets = [0, 64], sizes = [2, 32], strides = [1, 1]} : vector<2x96xf32> to vector<2x32xf32>
    %337 = math.tanh %330 : vector<2x32xf32>
    %338 = arith.mulf %336, %337 : vector<2x32xf32>
    %339 = vector.extract_strided_slice %321 {offsets = [0, 64], sizes = [2, 32], strides = [1, 1]} : vector<2x96xf32> to vector<2x32xf32>
    %340 = math.tanh %335 : vector<2x32xf32>
    %341 = arith.mulf %339, %340 : vector<2x32xf32>
    %c14_109 = arith.constant 14 : index
    %c0_110 = arith.constant 0 : index
    %342 = vector.load %arg16[%c14_109, %c0_110] : memref<16x64xf32, #tpu.memory_space<vmem>>, vector<2x32xf32>
    tpu.vector_store %arg16[%c14_109, %c0_110], %338 {strides = array<i32>} : memref<16x64xf32, #tpu.memory_space<vmem>>, vector<2x32xf32>,
    %c0_111 = arith.constant 0 : index
    %c32_112 = arith.constant 32 : index
    %343 = vector.load %arg16[%c0_111, %c32_112] : memref<16x64xf32, #tpu.memory_space<vmem>>, vector<2x32xf32>
    tpu.vector_store %arg16[%c0_111, %c32_112], %341 {strides = array<i32>} : memref<16x64xf32, #tpu.memory_space<vmem>>, vector<2x32xf32>,
    %c0_113 = arith.constant 0 : index
    %c0_114 = arith.constant 0 : index
    %344 = vector.load %arg16[%c0_113, %c0_114] : memref<16x64xf32, #tpu.memory_space<vmem>>, vector<16x64xf32>
    %c0_115 = arith.constant 0 : index
    %c0_116 = arith.constant 0 : index
    %345 = vector.load %arg10[%c0_115, %c0_116] : memref<32x128xf32, #tpu.memory_space<vmem>>, vector<32x128xf32>
    %c0_117 = arith.constant 0 : index
    %c0_118 = arith.constant 0 : index
    %346 = vector.load %arg11[%c0_117, %c0_118] : memref<32x128xf32, #tpu.memory_space<vmem>>, vector<32x128xf32>
    %c0_119 = arith.constant 0 : index
    %c0_120 = arith.constant 0 : index
    %347 = vector.load %arg9[%c0_119, %c0_120] : memref<64x256xf32, #tpu.memory_space<vmem>>, vector<64x256xf32>
    %cst_121 = arith.constant dense<0.000000e+00> : vector<16x256xf32>
    %348 = tpu.matmul %344, %347, %cst_121 {dimension_numbers = #tpu.dot_dimension_numbers<[1], [0], [0], [1], [0, 0, 1, 1], [], []>} : vector<16x64xf32>, vector<64x256xf32>, vector<16x256xf32> -> vector<16x256xf32>
    %c0_122 = arith.constant 0 : index
    %c0_123 = arith.constant 0 : index
    %349 = vector.load %arg12[%c0_122, %c0_123] : memref<1x256xf32, #tpu.memory_space<vmem>>, vector<1x256xf32>
    %350 = vector.broadcast %349 : vector<1x256xf32> to vector<16x256xf32>
    %351 = arith.addf %348, %350 : vector<16x256xf32>
    %c0_124 = arith.constant 0 : index
    %c0_125 = arith.constant 0 : index
    %352 = vector.load %arg17[%c0_124, %c0_125] : memref<16x256xf32, #tpu.memory_space<vmem>>, vector<16x256xf32>
    tpu.vector_store %arg17[%c0_124, %c0_125], %351 {strides = array<i32>} : memref<16x256xf32, #tpu.memory_space<vmem>>, vector<16x256xf32>,
    %cst_126 = arith.constant 0.000000e+00 : f32
    %353 = vector.broadcast %cst_126 : f32 to vector<2x32xf32>
    %cst_127 = arith.constant 0.000000e+00 : f32
    %354 = vector.broadcast %cst_127 : f32 to vector<2x32xf32>
    %cst_128 = arith.constant 0.000000e+00 : f32
    %355 = vector.broadcast %cst_128 : f32 to vector<2x32xf32>
    %cst_129 = arith.constant 0.000000e+00 : f32
    %356 = vector.broadcast %cst_129 : f32 to vector<2x32xf32>
    %c0_130 = arith.constant 0 : index
    %c0_131 = arith.constant 0 : index
    %357 = vector.load %arg17[%c0_130, %c0_131] : memref<16x256xf32, #tpu.memory_space<vmem>>, vector<2x128xf32>
    %cst_132 = arith.constant dense<0.000000e+00> : vector<2x128xf32>
    %358 = tpu.matmul %353, %345, %cst_132 {dimension_numbers = #tpu.dot_dimension_numbers<[1], [0], [0], [1], [0, 0, 1, 1], [], []>} : vector<2x32xf32>, vector<32x128xf32>, vector<2x128xf32> -> vector<2x128xf32>
    %359 = arith.addf %357, %358 : vector<2x128xf32>
    %c14_133 = arith.constant 14 : index
    %c128_134 = arith.constant 128 : index
    %360 = vector.load %arg17[%c14_133, %c128_134] : memref<16x256xf32, #tpu.memory_space<vmem>>, vector<2x128xf32>
    %cst_135 = arith.constant dense<0.000000e+00> : vector<2x128xf32>
    %361 = tpu.matmul %355, %346, %cst_135 {dimension_numbers = #tpu.dot_dimension_numbers<[1], [0], [0], [1], [0, 0, 1, 1], [], []>} : vector<2x32xf32>, vector<32x128xf32>, vector<2x128xf32> -> vector<2x128xf32>
    %362 = arith.addf %360, %361 : vector<2x128xf32>
    %363 = vector.extract_strided_slice %359 {offsets = [0, 0], sizes = [2, 96], strides = [1, 1]} : vector<2x128xf32> to vector<2x96xf32>
    %364 = arith.negf %363 : vector<2x96xf32>
    %365 = math.exp %364 : vector<2x96xf32>
    %cst_136 = arith.constant 1.000000e+00 : f32
    %366 = vector.broadcast %cst_136 : f32 to vector<2x96xf32>
    %367 = arith.addf %366, %365 : vector<2x96xf32>
    %368 = arith.divf %366, %367 : vector<2x96xf32>
    %369 = vector.extract_strided_slice %362 {offsets = [0, 0], sizes = [2, 96], strides = [1, 1]} : vector<2x128xf32> to vector<2x96xf32>
    %370 = arith.negf %369 : vector<2x96xf32>
    %371 = math.exp %370 : vector<2x96xf32>
    %cst_137 = arith.constant 1.000000e+00 : f32
    %372 = vector.broadcast %cst_137 : f32 to vector<2x96xf32>
    %373 = arith.addf %372, %371 : vector<2x96xf32>
    %374 = arith.divf %372, %373 : vector<2x96xf32>
    %375 = vector.extract_strided_slice %359 {offsets = [0, 96], sizes = [2, 32], strides = [1, 1]} : vector<2x128xf32> to vector<2x32xf32>
    %376 = math.tanh %375 : vector<2x32xf32>
    %377 = vector.extract_strided_slice %362 {offsets = [0, 96], sizes = [2, 32], strides = [1, 1]} : vector<2x128xf32> to vector<2x32xf32>
    %378 = math.tanh %377 : vector<2x32xf32>
    %379 = vector.extract_strided_slice %368 {offsets = [0, 32], sizes = [2, 32], strides = [1, 1]} : vector<2x96xf32> to vector<2x32xf32>
    %380 = arith.mulf %379, %354 : vector<2x32xf32>
    %381 = vector.extract_strided_slice %368 {offsets = [0, 0], sizes = [2, 32], strides = [1, 1]} : vector<2x96xf32> to vector<2x32xf32>
    %382 = arith.mulf %381, %376 : vector<2x32xf32>
    %383 = arith.addf %380, %382 : vector<2x32xf32>
    %384 = vector.extract_strided_slice %374 {offsets = [0, 32], sizes = [2, 32], strides = [1, 1]} : vector<2x96xf32> to vector<2x32xf32>
    %385 = arith.mulf %384, %356 : vector<2x32xf32>
    %386 = vector.extract_strided_slice %374 {offsets = [0, 0], sizes = [2, 32], strides = [1, 1]} : vector<2x96xf32> to vector<2x32xf32>
    %387 = arith.mulf %386, %378 : vector<2x32xf32>
    %388 = arith.addf %385, %387 : vector<2x32xf32>
    %389 = vector.extract_strided_slice %368 {offsets = [0, 64], sizes = [2, 32], strides = [1, 1]} : vector<2x96xf32> to vector<2x32xf32>
    %390 = math.tanh %383 : vector<2x32xf32>
    %391 = arith.mulf %389, %390 : vector<2x32xf32>
    %392 = vector.extract_strided_slice %374 {offsets = [0, 64], sizes = [2, 32], strides = [1, 1]} : vector<2x96xf32> to vector<2x32xf32>
    %393 = math.tanh %388 : vector<2x32xf32>
    %394 = arith.mulf %392, %393 : vector<2x32xf32>
    %c0_138 = arith.constant 0 : index
    %c0_139 = arith.constant 0 : index
    %395 = vector.load %arg16[%c0_138, %c0_139] : memref<16x64xf32, #tpu.memory_space<vmem>>, vector<2x32xf32>
    tpu.vector_store %arg16[%c0_138, %c0_139], %391 {strides = array<i32>} : memref<16x64xf32, #tpu.memory_space<vmem>>, vector<2x32xf32>,
    %c14_140 = arith.constant 14 : index
    %c32_141 = arith.constant 32 : index
    %396 = vector.load %arg16[%c14_140, %c32_141] : memref<16x64xf32, #tpu.memory_space<vmem>>, vector<2x32xf32>
    tpu.vector_store %arg16[%c14_140, %c32_141], %394 {strides = array<i32>} : memref<16x64xf32, #tpu.memory_space<vmem>>, vector<2x32xf32>,
    %c2_142 = arith.constant 2 : index
    %c0_143 = arith.constant 0 : index
    %397 = vector.load %arg17[%c2_142, %c0_143] : memref<16x256xf32, #tpu.memory_space<vmem>>, vector<2x128xf32>
    %cst_144 = arith.constant dense<0.000000e+00> : vector<2x128xf32>
    %398 = tpu.matmul %391, %345, %cst_144 {dimension_numbers = #tpu.dot_dimension_numbers<[1], [0], [0], [1], [0, 0, 1, 1], [], []>} : vector<2x32xf32>, vector<32x128xf32>, vector<2x128xf32> -> vector<2x128xf32>
    %399 = arith.addf %397, %398 : vector<2x128xf32>
    %c12_145 = arith.constant 12 : index
    %c128_146 = arith.constant 128 : index
    %400 = vector.load %arg17[%c12_145, %c128_146] : memref<16x256xf32, #tpu.memory_space<vmem>>, vector<2x128xf32>
    %cst_147 = arith.constant dense<0.000000e+00> : vector<2x128xf32>
    %401 = tpu.matmul %394, %346, %cst_147 {dimension_numbers = #tpu.dot_dimension_numbers<[1], [0], [0], [1], [0, 0, 1, 1], [], []>} : vector<2x32xf32>, vector<32x128xf32>, vector<2x128xf32> -> vector<2x128xf32>
    %402 = arith.addf %400, %401 : vector<2x128xf32>
    %403 = vector.extract_strided_slice %399 {offsets = [0, 0], sizes = [2, 96], strides = [1, 1]} : vector<2x128xf32> to vector<2x96xf32>
    %404 = arith.negf %403 : vector<2x96xf32>
    %405 = math.exp %404 : vector<2x96xf32>
    %cst_148 = arith.constant 1.000000e+00 : f32
    %406 = vector.broadcast %cst_148 : f32 to vector<2x96xf32>
    %407 = arith.addf %406, %405 : vector<2x96xf32>
    %408 = arith.divf %406, %407 : vector<2x96xf32>
    %409 = vector.extract_strided_slice %402 {offsets = [0, 0], sizes = [2, 96], strides = [1, 1]} : vector<2x128xf32> to vector<2x96xf32>
    %410 = arith.negf %409 : vector<2x96xf32>
    %411 = math.exp %410 : vector<2x96xf32>
    %cst_149 = arith.constant 1.000000e+00 : f32
    %412 = vector.broadcast %cst_149 : f32 to vector<2x96xf32>
    %413 = arith.addf %412, %411 : vector<2x96xf32>
    %414 = arith.divf %412, %413 : vector<2x96xf32>
    %415 = vector.extract_strided_slice %399 {offsets = [0, 96], sizes = [2, 32], strides = [1, 1]} : vector<2x128xf32> to vector<2x32xf32>
    %416 = math.tanh %415 : vector<2x32xf32>
    %417 = vector.extract_strided_slice %402 {offsets = [0, 96], sizes = [2, 32], strides = [1, 1]} : vector<2x128xf32> to vector<2x32xf32>
    %418 = math.tanh %417 : vector<2x32xf32>
    %419 = vector.extract_strided_slice %408 {offsets = [0, 32], sizes = [2, 32], strides = [1, 1]} : vector<2x96xf32> to vector<2x32xf32>
    %420 = arith.mulf %419, %383 : vector<2x32xf32>
    %421 = vector.extract_strided_slice %408 {offsets = [0, 0], sizes = [2, 32], strides = [1, 1]} : vector<2x96xf32> to vector<2x32xf32>
    %422 = arith.mulf %421, %416 : vector<2x32xf32>
    %423 = arith.addf %420, %422 : vector<2x32xf32>
    %424 = vector.extract_strided_slice %414 {offsets = [0, 32], sizes = [2, 32], strides = [1, 1]} : vector<2x96xf32> to vector<2x32xf32>
    %425 = arith.mulf %424, %388 : vector<2x32xf32>
    %426 = vector.extract_strided_slice %414 {offsets = [0, 0], sizes = [2, 32], strides = [1, 1]} : vector<2x96xf32> to vector<2x32xf32>
    %427 = arith.mulf %426, %418 : vector<2x32xf32>
    %428 = arith.addf %425, %427 : vector<2x32xf32>
    %429 = vector.extract_strided_slice %408 {offsets = [0, 64], sizes = [2, 32], strides = [1, 1]} : vector<2x96xf32> to vector<2x32xf32>
    %430 = math.tanh %423 : vector<2x32xf32>
    %431 = arith.mulf %429, %430 : vector<2x32xf32>
    %432 = vector.extract_strided_slice %414 {offsets = [0, 64], sizes = [2, 32], strides = [1, 1]} : vector<2x96xf32> to vector<2x32xf32>
    %433 = math.tanh %428 : vector<2x32xf32>
    %434 = arith.mulf %432, %433 : vector<2x32xf32>
    %c2_150 = arith.constant 2 : index
    %c0_151 = arith.constant 0 : index
    %435 = vector.load %arg16[%c2_150, %c0_151] : memref<16x64xf32, #tpu.memory_space<vmem>>, vector<2x32xf32>
    tpu.vector_store %arg16[%c2_150, %c0_151], %431 {strides = array<i32>} : memref<16x64xf32, #tpu.memory_space<vmem>>, vector<2x32xf32>,
    %c12_152 = arith.constant 12 : index
    %c32_153 = arith.constant 32 : index
    %436 = vector.load %arg16[%c12_152, %c32_153] : memref<16x64xf32, #tpu.memory_space<vmem>>, vector<2x32xf32>
    tpu.vector_store %arg16[%c12_152, %c32_153], %434 {strides = array<i32>} : memref<16x64xf32, #tpu.memory_space<vmem>>, vector<2x32xf32>,
    %c4_154 = arith.constant 4 : index
    %c0_155 = arith.constant 0 : index
    %437 = vector.load %arg17[%c4_154, %c0_155] : memref<16x256xf32, #tpu.memory_space<vmem>>, vector<2x128xf32>
    %cst_156 = arith.constant dense<0.000000e+00> : vector<2x128xf32>
    %438 = tpu.matmul %431, %345, %cst_156 {dimension_numbers = #tpu.dot_dimension_numbers<[1], [0], [0], [1], [0, 0, 1, 1], [], []>} : vector<2x32xf32>, vector<32x128xf32>, vector<2x128xf32> -> vector<2x128xf32>
    %439 = arith.addf %437, %438 : vector<2x128xf32>
    %c10_157 = arith.constant 10 : index
    %c128_158 = arith.constant 128 : index
    %440 = vector.load %arg17[%c10_157, %c128_158] : memref<16x256xf32, #tpu.memory_space<vmem>>, vector<2x128xf32>
    %cst_159 = arith.constant dense<0.000000e+00> : vector<2x128xf32>
    %441 = tpu.matmul %434, %346, %cst_159 {dimension_numbers = #tpu.dot_dimension_numbers<[1], [0], [0], [1], [0, 0, 1, 1], [], []>} : vector<2x32xf32>, vector<32x128xf32>, vector<2x128xf32> -> vector<2x128xf32>
    %442 = arith.addf %440, %441 : vector<2x128xf32>
    %443 = vector.extract_strided_slice %439 {offsets = [0, 0], sizes = [2, 96], strides = [1, 1]} : vector<2x128xf32> to vector<2x96xf32>
    %444 = arith.negf %443 : vector<2x96xf32>
    %445 = math.exp %444 : vector<2x96xf32>
    %cst_160 = arith.constant 1.000000e+00 : f32
    %446 = vector.broadcast %cst_160 : f32 to vector<2x96xf32>
    %447 = arith.addf %446, %445 : vector<2x96xf32>
    %448 = arith.divf %446, %447 : vector<2x96xf32>
    %449 = vector.extract_strided_slice %442 {offsets = [0, 0], sizes = [2, 96], strides = [1, 1]} : vector<2x128xf32> to vector<2x96xf32>
    %450 = arith.negf %449 : vector<2x96xf32>
    %451 = math.exp %450 : vector<2x96xf32>
    %cst_161 = arith.constant 1.000000e+00 : f32
    %452 = vector.broadcast %cst_161 : f32 to vector<2x96xf32>
    %453 = arith.addf %452, %451 : vector<2x96xf32>
    %454 = arith.divf %452, %453 : vector<2x96xf32>
    %455 = vector.extract_strided_slice %439 {offsets = [0, 96], sizes = [2, 32], strides = [1, 1]} : vector<2x128xf32> to vector<2x32xf32>
    %456 = math.tanh %455 : vector<2x32xf32>
    %457 = vector.extract_strided_slice %442 {offsets = [0, 96], sizes = [2, 32], strides = [1, 1]} : vector<2x128xf32> to vector<2x32xf32>
    %458 = math.tanh %457 : vector<2x32xf32>
    %459 = vector.extract_strided_slice %448 {offsets = [0, 32], sizes = [2, 32], strides = [1, 1]} : vector<2x96xf32> to vector<2x32xf32>
    %460 = arith.mulf %459, %423 : vector<2x32xf32>
    %461 = vector.extract_strided_slice %448 {offsets = [0, 0], sizes = [2, 32], strides = [1, 1]} : vector<2x96xf32> to vector<2x32xf32>
    %462 = arith.mulf %461, %456 : vector<2x32xf32>
    %463 = arith.addf %460, %462 : vector<2x32xf32>
    %464 = vector.extract_strided_slice %454 {offsets = [0, 32], sizes = [2, 32], strides = [1, 1]} : vector<2x96xf32> to vector<2x32xf32>
    %465 = arith.mulf %464, %428 : vector<2x32xf32>
    %466 = vector.extract_strided_slice %454 {offsets = [0, 0], sizes = [2, 32], strides = [1, 1]} : vector<2x96xf32> to vector<2x32xf32>
    %467 = arith.mulf %466, %458 : vector<2x32xf32>
    %468 = arith.addf %465, %467 : vector<2x32xf32>
    %469 = vector.extract_strided_slice %448 {offsets = [0, 64], sizes = [2, 32], strides = [1, 1]} : vector<2x96xf32> to vector<2x32xf32>
    %470 = math.tanh %463 : vector<2x32xf32>
    %471 = arith.mulf %469, %470 : vector<2x32xf32>
    %472 = vector.extract_strided_slice %454 {offsets = [0, 64], sizes = [2, 32], strides = [1, 1]} : vector<2x96xf32> to vector<2x32xf32>
    %473 = math.tanh %468 : vector<2x32xf32>
    %474 = arith.mulf %472, %473 : vector<2x32xf32>
    %c4_162 = arith.constant 4 : index
    %c0_163 = arith.constant 0 : index
    %475 = vector.load %arg16[%c4_162, %c0_163] : memref<16x64xf32, #tpu.memory_space<vmem>>, vector<2x32xf32>
    tpu.vector_store %arg16[%c4_162, %c0_163], %471 {strides = array<i32>} : memref<16x64xf32, #tpu.memory_space<vmem>>, vector<2x32xf32>,
    %c10_164 = arith.constant 10 : index
    %c32_165 = arith.constant 32 : index
    %476 = vector.load %arg16[%c10_164, %c32_165] : memref<16x64xf32, #tpu.memory_space<vmem>>, vector<2x32xf32>
    tpu.vector_store %arg16[%c10_164, %c32_165], %474 {strides = array<i32>} : memref<16x64xf32, #tpu.memory_space<vmem>>, vector<2x32xf32>,
    %c6_166 = arith.constant 6 : index
    %c0_167 = arith.constant 0 : index
    %477 = vector.load %arg17[%c6_166, %c0_167] : memref<16x256xf32, #tpu.memory_space<vmem>>, vector<2x128xf32>
    %cst_168 = arith.constant dense<0.000000e+00> : vector<2x128xf32>
    %478 = tpu.matmul %471, %345, %cst_168 {dimension_numbers = #tpu.dot_dimension_numbers<[1], [0], [0], [1], [0, 0, 1, 1], [], []>} : vector<2x32xf32>, vector<32x128xf32>, vector<2x128xf32> -> vector<2x128xf32>
    %479 = arith.addf %477, %478 : vector<2x128xf32>
    %c8_169 = arith.constant 8 : index
    %c128_170 = arith.constant 128 : index
    %480 = vector.load %arg17[%c8_169, %c128_170] : memref<16x256xf32, #tpu.memory_space<vmem>>, vector<2x128xf32>
    %cst_171 = arith.constant dense<0.000000e+00> : vector<2x128xf32>
    %481 = tpu.matmul %474, %346, %cst_171 {dimension_numbers = #tpu.dot_dimension_numbers<[1], [0], [0], [1], [0, 0, 1, 1], [], []>} : vector<2x32xf32>, vector<32x128xf32>, vector<2x128xf32> -> vector<2x128xf32>
    %482 = arith.addf %480, %481 : vector<2x128xf32>
    %483 = vector.extract_strided_slice %479 {offsets = [0, 0], sizes = [2, 96], strides = [1, 1]} : vector<2x128xf32> to vector<2x96xf32>
    %484 = arith.negf %483 : vector<2x96xf32>
    %485 = math.exp %484 : vector<2x96xf32>
    %cst_172 = arith.constant 1.000000e+00 : f32
    %486 = vector.broadcast %cst_172 : f32 to vector<2x96xf32>
    %487 = arith.addf %486, %485 : vector<2x96xf32>
    %488 = arith.divf %486, %487 : vector<2x96xf32>
    %489 = vector.extract_strided_slice %482 {offsets = [0, 0], sizes = [2, 96], strides = [1, 1]} : vector<2x128xf32> to vector<2x96xf32>
    %490 = arith.negf %489 : vector<2x96xf32>
    %491 = math.exp %490 : vector<2x96xf32>
    %cst_173 = arith.constant 1.000000e+00 : f32
    %492 = vector.broadcast %cst_173 : f32 to vector<2x96xf32>
    %493 = arith.addf %492, %491 : vector<2x96xf32>
    %494 = arith.divf %492, %493 : vector<2x96xf32>
    %495 = vector.extract_strided_slice %479 {offsets = [0, 96], sizes = [2, 32], strides = [1, 1]} : vector<2x128xf32> to vector<2x32xf32>
    %496 = math.tanh %495 : vector<2x32xf32>
    %497 = vector.extract_strided_slice %482 {offsets = [0, 96], sizes = [2, 32], strides = [1, 1]} : vector<2x128xf32> to vector<2x32xf32>
    %498 = math.tanh %497 : vector<2x32xf32>
    %499 = vector.extract_strided_slice %488 {offsets = [0, 32], sizes = [2, 32], strides = [1, 1]} : vector<2x96xf32> to vector<2x32xf32>
    %500 = arith.mulf %499, %463 : vector<2x32xf32>
    %501 = vector.extract_strided_slice %488 {offsets = [0, 0], sizes = [2, 32], strides = [1, 1]} : vector<2x96xf32> to vector<2x32xf32>
    %502 = arith.mulf %501, %496 : vector<2x32xf32>
    %503 = arith.addf %500, %502 : vector<2x32xf32>
    %504 = vector.extract_strided_slice %494 {offsets = [0, 32], sizes = [2, 32], strides = [1, 1]} : vector<2x96xf32> to vector<2x32xf32>
    %505 = arith.mulf %504, %468 : vector<2x32xf32>
    %506 = vector.extract_strided_slice %494 {offsets = [0, 0], sizes = [2, 32], strides = [1, 1]} : vector<2x96xf32> to vector<2x32xf32>
    %507 = arith.mulf %506, %498 : vector<2x32xf32>
    %508 = arith.addf %505, %507 : vector<2x32xf32>
    %509 = vector.extract_strided_slice %488 {offsets = [0, 64], sizes = [2, 32], strides = [1, 1]} : vector<2x96xf32> to vector<2x32xf32>
    %510 = math.tanh %503 : vector<2x32xf32>
    %511 = arith.mulf %509, %510 : vector<2x32xf32>
    %512 = vector.extract_strided_slice %494 {offsets = [0, 64], sizes = [2, 32], strides = [1, 1]} : vector<2x96xf32> to vector<2x32xf32>
    %513 = math.tanh %508 : vector<2x32xf32>
    %514 = arith.mulf %512, %513 : vector<2x32xf32>
    %c6_174 = arith.constant 6 : index
    %c0_175 = arith.constant 0 : index
    %515 = vector.load %arg16[%c6_174, %c0_175] : memref<16x64xf32, #tpu.memory_space<vmem>>, vector<2x32xf32>
    tpu.vector_store %arg16[%c6_174, %c0_175], %511 {strides = array<i32>} : memref<16x64xf32, #tpu.memory_space<vmem>>, vector<2x32xf32>,
    %c8_176 = arith.constant 8 : index
    %c32_177 = arith.constant 32 : index
    %516 = vector.load %arg16[%c8_176, %c32_177] : memref<16x64xf32, #tpu.memory_space<vmem>>, vector<2x32xf32>
    tpu.vector_store %arg16[%c8_176, %c32_177], %514 {strides = array<i32>} : memref<16x64xf32, #tpu.memory_space<vmem>>, vector<2x32xf32>,
    %c8_178 = arith.constant 8 : index
    %c0_179 = arith.constant 0 : index
    %517 = vector.load %arg17[%c8_178, %c0_179] : memref<16x256xf32, #tpu.memory_space<vmem>>, vector<2x128xf32>
    %cst_180 = arith.constant dense<0.000000e+00> : vector<2x128xf32>
    %518 = tpu.matmul %511, %345, %cst_180 {dimension_numbers = #tpu.dot_dimension_numbers<[1], [0], [0], [1], [0, 0, 1, 1], [], []>} : vector<2x32xf32>, vector<32x128xf32>, vector<2x128xf32> -> vector<2x128xf32>
    %519 = arith.addf %517, %518 : vector<2x128xf32>
    %c6_181 = arith.constant 6 : index
    %c128_182 = arith.constant 128 : index
    %520 = vector.load %arg17[%c6_181, %c128_182] : memref<16x256xf32, #tpu.memory_space<vmem>>, vector<2x128xf32>
    %cst_183 = arith.constant dense<0.000000e+00> : vector<2x128xf32>
    %521 = tpu.matmul %514, %346, %cst_183 {dimension_numbers = #tpu.dot_dimension_numbers<[1], [0], [0], [1], [0, 0, 1, 1], [], []>} : vector<2x32xf32>, vector<32x128xf32>, vector<2x128xf32> -> vector<2x128xf32>
    %522 = arith.addf %520, %521 : vector<2x128xf32>
    %523 = vector.extract_strided_slice %519 {offsets = [0, 0], sizes = [2, 96], strides = [1, 1]} : vector<2x128xf32> to vector<2x96xf32>
    %524 = arith.negf %523 : vector<2x96xf32>
    %525 = math.exp %524 : vector<2x96xf32>
    %cst_184 = arith.constant 1.000000e+00 : f32
    %526 = vector.broadcast %cst_184 : f32 to vector<2x96xf32>
    %527 = arith.addf %526, %525 : vector<2x96xf32>
    %528 = arith.divf %526, %527 : vector<2x96xf32>
    %529 = vector.extract_strided_slice %522 {offsets = [0, 0], sizes = [2, 96], strides = [1, 1]} : vector<2x128xf32> to vector<2x96xf32>
    %530 = arith.negf %529 : vector<2x96xf32>
    %531 = math.exp %530 : vector<2x96xf32>
    %cst_185 = arith.constant 1.000000e+00 : f32
    %532 = vector.broadcast %cst_185 : f32 to vector<2x96xf32>
    %533 = arith.addf %532, %531 : vector<2x96xf32>
    %534 = arith.divf %532, %533 : vector<2x96xf32>
    %535 = vector.extract_strided_slice %519 {offsets = [0, 96], sizes = [2, 32], strides = [1, 1]} : vector<2x128xf32> to vector<2x32xf32>
    %536 = math.tanh %535 : vector<2x32xf32>
    %537 = vector.extract_strided_slice %522 {offsets = [0, 96], sizes = [2, 32], strides = [1, 1]} : vector<2x128xf32> to vector<2x32xf32>
    %538 = math.tanh %537 : vector<2x32xf32>
    %539 = vector.extract_strided_slice %528 {offsets = [0, 32], sizes = [2, 32], strides = [1, 1]} : vector<2x96xf32> to vector<2x32xf32>
    %540 = arith.mulf %539, %503 : vector<2x32xf32>
    %541 = vector.extract_strided_slice %528 {offsets = [0, 0], sizes = [2, 32], strides = [1, 1]} : vector<2x96xf32> to vector<2x32xf32>
    %542 = arith.mulf %541, %536 : vector<2x32xf32>
    %543 = arith.addf %540, %542 : vector<2x32xf32>
    %544 = vector.extract_strided_slice %534 {offsets = [0, 32], sizes = [2, 32], strides = [1, 1]} : vector<2x96xf32> to vector<2x32xf32>
    %545 = arith.mulf %544, %508 : vector<2x32xf32>
    %546 = vector.extract_strided_slice %534 {offsets = [0, 0], sizes = [2, 32], strides = [1, 1]} : vector<2x96xf32> to vector<2x32xf32>
    %547 = arith.mulf %546, %538 : vector<2x32xf32>
    %548 = arith.addf %545, %547 : vector<2x32xf32>
    %549 = vector.extract_strided_slice %528 {offsets = [0, 64], sizes = [2, 32], strides = [1, 1]} : vector<2x96xf32> to vector<2x32xf32>
    %550 = math.tanh %543 : vector<2x32xf32>
    %551 = arith.mulf %549, %550 : vector<2x32xf32>
    %552 = vector.extract_strided_slice %534 {offsets = [0, 64], sizes = [2, 32], strides = [1, 1]} : vector<2x96xf32> to vector<2x32xf32>
    %553 = math.tanh %548 : vector<2x32xf32>
    %554 = arith.mulf %552, %553 : vector<2x32xf32>
    %c8_186 = arith.constant 8 : index
    %c0_187 = arith.constant 0 : index
    %555 = vector.load %arg16[%c8_186, %c0_187] : memref<16x64xf32, #tpu.memory_space<vmem>>, vector<2x32xf32>
    tpu.vector_store %arg16[%c8_186, %c0_187], %551 {strides = array<i32>} : memref<16x64xf32, #tpu.memory_space<vmem>>, vector<2x32xf32>,
    %c6_188 = arith.constant 6 : index
    %c32_189 = arith.constant 32 : index
    %556 = vector.load %arg16[%c6_188, %c32_189] : memref<16x64xf32, #tpu.memory_space<vmem>>, vector<2x32xf32>
    tpu.vector_store %arg16[%c6_188, %c32_189], %554 {strides = array<i32>} : memref<16x64xf32, #tpu.memory_space<vmem>>, vector<2x32xf32>,
    %c10_190 = arith.constant 10 : index
    %c0_191 = arith.constant 0 : index
    %557 = vector.load %arg17[%c10_190, %c0_191] : memref<16x256xf32, #tpu.memory_space<vmem>>, vector<2x128xf32>
    %cst_192 = arith.constant dense<0.000000e+00> : vector<2x128xf32>
    %558 = tpu.matmul %551, %345, %cst_192 {dimension_numbers = #tpu.dot_dimension_numbers<[1], [0], [0], [1], [0, 0, 1, 1], [], []>} : vector<2x32xf32>, vector<32x128xf32>, vector<2x128xf32> -> vector<2x128xf32>
    %559 = arith.addf %557, %558 : vector<2x128xf32>
    %c4_193 = arith.constant 4 : index
    %c128_194 = arith.constant 128 : index
    %560 = vector.load %arg17[%c4_193, %c128_194] : memref<16x256xf32, #tpu.memory_space<vmem>>, vector<2x128xf32>
    %cst_195 = arith.constant dense<0.000000e+00> : vector<2x128xf32>
    %561 = tpu.matmul %554, %346, %cst_195 {dimension_numbers = #tpu.dot_dimension_numbers<[1], [0], [0], [1], [0, 0, 1, 1], [], []>} : vector<2x32xf32>, vector<32x128xf32>, vector<2x128xf32> -> vector<2x128xf32>
    %562 = arith.addf %560, %561 : vector<2x128xf32>
    %563 = vector.extract_strided_slice %559 {offsets = [0, 0], sizes = [2, 96], strides = [1, 1]} : vector<2x128xf32> to vector<2x96xf32>
    %564 = arith.negf %563 : vector<2x96xf32>
    %565 = math.exp %564 : vector<2x96xf32>
    %cst_196 = arith.constant 1.000000e+00 : f32
    %566 = vector.broadcast %cst_196 : f32 to vector<2x96xf32>
    %567 = arith.addf %566, %565 : vector<2x96xf32>
    %568 = arith.divf %566, %567 : vector<2x96xf32>
    %569 = vector.extract_strided_slice %562 {offsets = [0, 0], sizes = [2, 96], strides = [1, 1]} : vector<2x128xf32> to vector<2x96xf32>
    %570 = arith.negf %569 : vector<2x96xf32>
    %571 = math.exp %570 : vector<2x96xf32>
    %cst_197 = arith.constant 1.000000e+00 : f32
    %572 = vector.broadcast %cst_197 : f32 to vector<2x96xf32>
    %573 = arith.addf %572, %571 : vector<2x96xf32>
    %574 = arith.divf %572, %573 : vector<2x96xf32>
    %575 = vector.extract_strided_slice %559 {offsets = [0, 96], sizes = [2, 32], strides = [1, 1]} : vector<2x128xf32> to vector<2x32xf32>
    %576 = math.tanh %575 : vector<2x32xf32>
    %577 = vector.extract_strided_slice %562 {offsets = [0, 96], sizes = [2, 32], strides = [1, 1]} : vector<2x128xf32> to vector<2x32xf32>
    %578 = math.tanh %577 : vector<2x32xf32>
    %579 = vector.extract_strided_slice %568 {offsets = [0, 32], sizes = [2, 32], strides = [1, 1]} : vector<2x96xf32> to vector<2x32xf32>
    %580 = arith.mulf %579, %543 : vector<2x32xf32>
    %581 = vector.extract_strided_slice %568 {offsets = [0, 0], sizes = [2, 32], strides = [1, 1]} : vector<2x96xf32> to vector<2x32xf32>
    %582 = arith.mulf %581, %576 : vector<2x32xf32>
    %583 = arith.addf %580, %582 : vector<2x32xf32>
    %584 = vector.extract_strided_slice %574 {offsets = [0, 32], sizes = [2, 32], strides = [1, 1]} : vector<2x96xf32> to vector<2x32xf32>
    %585 = arith.mulf %584, %548 : vector<2x32xf32>
    %586 = vector.extract_strided_slice %574 {offsets = [0, 0], sizes = [2, 32], strides = [1, 1]} : vector<2x96xf32> to vector<2x32xf32>
    %587 = arith.mulf %586, %578 : vector<2x32xf32>
    %588 = arith.addf %585, %587 : vector<2x32xf32>
    %589 = vector.extract_strided_slice %568 {offsets = [0, 64], sizes = [2, 32], strides = [1, 1]} : vector<2x96xf32> to vector<2x32xf32>
    %590 = math.tanh %583 : vector<2x32xf32>
    %591 = arith.mulf %589, %590 : vector<2x32xf32>
    %592 = vector.extract_strided_slice %574 {offsets = [0, 64], sizes = [2, 32], strides = [1, 1]} : vector<2x96xf32> to vector<2x32xf32>
    %593 = math.tanh %588 : vector<2x32xf32>
    %594 = arith.mulf %592, %593 : vector<2x32xf32>
    %c10_198 = arith.constant 10 : index
    %c0_199 = arith.constant 0 : index
    %595 = vector.load %arg16[%c10_198, %c0_199] : memref<16x64xf32, #tpu.memory_space<vmem>>, vector<2x32xf32>
    tpu.vector_store %arg16[%c10_198, %c0_199], %591 {strides = array<i32>} : memref<16x64xf32, #tpu.memory_space<vmem>>, vector<2x32xf32>,
    %c4_200 = arith.constant 4 : index
    %c32_201 = arith.constant 32 : index
    %596 = vector.load %arg16[%c4_200, %c32_201] : memref<16x64xf32, #tpu.memory_space<vmem>>, vector<2x32xf32>
    tpu.vector_store %arg16[%c4_200, %c32_201], %594 {strides = array<i32>} : memref<16x64xf32, #tpu.memory_space<vmem>>, vector<2x32xf32>,
    %c12_202 = arith.constant 12 : index
    %c0_203 = arith.constant 0 : index
    %597 = vector.load %arg17[%c12_202, %c0_203] : memref<16x256xf32, #tpu.memory_space<vmem>>, vector<2x128xf32>
    %cst_204 = arith.constant dense<0.000000e+00> : vector<2x128xf32>
    %598 = tpu.matmul %591, %345, %cst_204 {dimension_numbers = #tpu.dot_dimension_numbers<[1], [0], [0], [1], [0, 0, 1, 1], [], []>} : vector<2x32xf32>, vector<32x128xf32>, vector<2x128xf32> -> vector<2x128xf32>
    %599 = arith.addf %597, %598 : vector<2x128xf32>
    %c2_205 = arith.constant 2 : index
    %c128_206 = arith.constant 128 : index
    %600 = vector.load %arg17[%c2_205, %c128_206] : memref<16x256xf32, #tpu.memory_space<vmem>>, vector<2x128xf32>
    %cst_207 = arith.constant dense<0.000000e+00> : vector<2x128xf32>
    %601 = tpu.matmul %594, %346, %cst_207 {dimension_numbers = #tpu.dot_dimension_numbers<[1], [0], [0], [1], [0, 0, 1, 1], [], []>} : vector<2x32xf32>, vector<32x128xf32>, vector<2x128xf32> -> vector<2x128xf32>
    %602 = arith.addf %600, %601 : vector<2x128xf32>
    %603 = vector.extract_strided_slice %599 {offsets = [0, 0], sizes = [2, 96], strides = [1, 1]} : vector<2x128xf32> to vector<2x96xf32>
    %604 = arith.negf %603 : vector<2x96xf32>
    %605 = math.exp %604 : vector<2x96xf32>
    %cst_208 = arith.constant 1.000000e+00 : f32
    %606 = vector.broadcast %cst_208 : f32 to vector<2x96xf32>
    %607 = arith.addf %606, %605 : vector<2x96xf32>
    %608 = arith.divf %606, %607 : vector<2x96xf32>
    %609 = vector.extract_strided_slice %602 {offsets = [0, 0], sizes = [2, 96], strides = [1, 1]} : vector<2x128xf32> to vector<2x96xf32>
    %610 = arith.negf %609 : vector<2x96xf32>
    %611 = math.exp %610 : vector<2x96xf32>
    %cst_209 = arith.constant 1.000000e+00 : f32
    %612 = vector.broadcast %cst_209 : f32 to vector<2x96xf32>
    %613 = arith.addf %612, %611 : vector<2x96xf32>
    %614 = arith.divf %612, %613 : vector<2x96xf32>
    %615 = vector.extract_strided_slice %599 {offsets = [0, 96], sizes = [2, 32], strides = [1, 1]} : vector<2x128xf32> to vector<2x32xf32>
    %616 = math.tanh %615 : vector<2x32xf32>
    %617 = vector.extract_strided_slice %602 {offsets = [0, 96], sizes = [2, 32], strides = [1, 1]} : vector<2x128xf32> to vector<2x32xf32>
    %618 = math.tanh %617 : vector<2x32xf32>
    %619 = vector.extract_strided_slice %608 {offsets = [0, 32], sizes = [2, 32], strides = [1, 1]} : vector<2x96xf32> to vector<2x32xf32>
    %620 = arith.mulf %619, %583 : vector<2x32xf32>
    %621 = vector.extract_strided_slice %608 {offsets = [0, 0], sizes = [2, 32], strides = [1, 1]} : vector<2x96xf32> to vector<2x32xf32>
    %622 = arith.mulf %621, %616 : vector<2x32xf32>
    %623 = arith.addf %620, %622 : vector<2x32xf32>
    %624 = vector.extract_strided_slice %614 {offsets = [0, 32], sizes = [2, 32], strides = [1, 1]} : vector<2x96xf32> to vector<2x32xf32>
    %625 = arith.mulf %624, %588 : vector<2x32xf32>
    %626 = vector.extract_strided_slice %614 {offsets = [0, 0], sizes = [2, 32], strides = [1, 1]} : vector<2x96xf32> to vector<2x32xf32>
    %627 = arith.mulf %626, %618 : vector<2x32xf32>
    %628 = arith.addf %625, %627 : vector<2x32xf32>
    %629 = vector.extract_strided_slice %608 {offsets = [0, 64], sizes = [2, 32], strides = [1, 1]} : vector<2x96xf32> to vector<2x32xf32>
    %630 = math.tanh %623 : vector<2x32xf32>
    %631 = arith.mulf %629, %630 : vector<2x32xf32>
    %632 = vector.extract_strided_slice %614 {offsets = [0, 64], sizes = [2, 32], strides = [1, 1]} : vector<2x96xf32> to vector<2x32xf32>
    %633 = math.tanh %628 : vector<2x32xf32>
    %634 = arith.mulf %632, %633 : vector<2x32xf32>
    %c12_210 = arith.constant 12 : index
    %c0_211 = arith.constant 0 : index
    %635 = vector.load %arg16[%c12_210, %c0_211] : memref<16x64xf32, #tpu.memory_space<vmem>>, vector<2x32xf32>
    tpu.vector_store %arg16[%c12_210, %c0_211], %631 {strides = array<i32>} : memref<16x64xf32, #tpu.memory_space<vmem>>, vector<2x32xf32>,
    %c2_212 = arith.constant 2 : index
    %c32_213 = arith.constant 32 : index
    %636 = vector.load %arg16[%c2_212, %c32_213] : memref<16x64xf32, #tpu.memory_space<vmem>>, vector<2x32xf32>
    tpu.vector_store %arg16[%c2_212, %c32_213], %634 {strides = array<i32>} : memref<16x64xf32, #tpu.memory_space<vmem>>, vector<2x32xf32>,
    %c14_214 = arith.constant 14 : index
    %c0_215 = arith.constant 0 : index
    %637 = vector.load %arg17[%c14_214, %c0_215] : memref<16x256xf32, #tpu.memory_space<vmem>>, vector<2x128xf32>
    %cst_216 = arith.constant dense<0.000000e+00> : vector<2x128xf32>
    %638 = tpu.matmul %631, %345, %cst_216 {dimension_numbers = #tpu.dot_dimension_numbers<[1], [0], [0], [1], [0, 0, 1, 1], [], []>} : vector<2x32xf32>, vector<32x128xf32>, vector<2x128xf32> -> vector<2x128xf32>
    %639 = arith.addf %637, %638 : vector<2x128xf32>
    %c0_217 = arith.constant 0 : index
    %c128_218 = arith.constant 128 : index
    %640 = vector.load %arg17[%c0_217, %c128_218] : memref<16x256xf32, #tpu.memory_space<vmem>>, vector<2x128xf32>
    %cst_219 = arith.constant dense<0.000000e+00> : vector<2x128xf32>
    %641 = tpu.matmul %634, %346, %cst_219 {dimension_numbers = #tpu.dot_dimension_numbers<[1], [0], [0], [1], [0, 0, 1, 1], [], []>} : vector<2x32xf32>, vector<32x128xf32>, vector<2x128xf32> -> vector<2x128xf32>
    %642 = arith.addf %640, %641 : vector<2x128xf32>
    %643 = vector.extract_strided_slice %639 {offsets = [0, 0], sizes = [2, 96], strides = [1, 1]} : vector<2x128xf32> to vector<2x96xf32>
    %644 = arith.negf %643 : vector<2x96xf32>
    %645 = math.exp %644 : vector<2x96xf32>
    %cst_220 = arith.constant 1.000000e+00 : f32
    %646 = vector.broadcast %cst_220 : f32 to vector<2x96xf32>
    %647 = arith.addf %646, %645 : vector<2x96xf32>
    %648 = arith.divf %646, %647 : vector<2x96xf32>
    %649 = vector.extract_strided_slice %642 {offsets = [0, 0], sizes = [2, 96], strides = [1, 1]} : vector<2x128xf32> to vector<2x96xf32>
    %650 = arith.negf %649 : vector<2x96xf32>
    %651 = math.exp %650 : vector<2x96xf32>
    %cst_221 = arith.constant 1.000000e+00 : f32
    %652 = vector.broadcast %cst_221 : f32 to vector<2x96xf32>
    %653 = arith.addf %652, %651 : vector<2x96xf32>
    %654 = arith.divf %652, %653 : vector<2x96xf32>
    %655 = vector.extract_strided_slice %639 {offsets = [0, 96], sizes = [2, 32], strides = [1, 1]} : vector<2x128xf32> to vector<2x32xf32>
    %656 = math.tanh %655 : vector<2x32xf32>
    %657 = vector.extract_strided_slice %642 {offsets = [0, 96], sizes = [2, 32], strides = [1, 1]} : vector<2x128xf32> to vector<2x32xf32>
    %658 = math.tanh %657 : vector<2x32xf32>
    %659 = vector.extract_strided_slice %648 {offsets = [0, 32], sizes = [2, 32], strides = [1, 1]} : vector<2x96xf32> to vector<2x32xf32>
    %660 = arith.mulf %659, %623 : vector<2x32xf32>
    %661 = vector.extract_strided_slice %648 {offsets = [0, 0], sizes = [2, 32], strides = [1, 1]} : vector<2x96xf32> to vector<2x32xf32>
    %662 = arith.mulf %661, %656 : vector<2x32xf32>
    %663 = arith.addf %660, %662 : vector<2x32xf32>
    %664 = vector.extract_strided_slice %654 {offsets = [0, 32], sizes = [2, 32], strides = [1, 1]} : vector<2x96xf32> to vector<2x32xf32>
    %665 = arith.mulf %664, %628 : vector<2x32xf32>
    %666 = vector.extract_strided_slice %654 {offsets = [0, 0], sizes = [2, 32], strides = [1, 1]} : vector<2x96xf32> to vector<2x32xf32>
    %667 = arith.mulf %666, %658 : vector<2x32xf32>
    %668 = arith.addf %665, %667 : vector<2x32xf32>
    %669 = vector.extract_strided_slice %648 {offsets = [0, 64], sizes = [2, 32], strides = [1, 1]} : vector<2x96xf32> to vector<2x32xf32>
    %670 = math.tanh %663 : vector<2x32xf32>
    %671 = arith.mulf %669, %670 : vector<2x32xf32>
    %672 = vector.extract_strided_slice %654 {offsets = [0, 64], sizes = [2, 32], strides = [1, 1]} : vector<2x96xf32> to vector<2x32xf32>
    %673 = math.tanh %668 : vector<2x32xf32>
    %674 = arith.mulf %672, %673 : vector<2x32xf32>
    %c14_222 = arith.constant 14 : index
    %c0_223 = arith.constant 0 : index
    %675 = vector.load %arg16[%c14_222, %c0_223] : memref<16x64xf32, #tpu.memory_space<vmem>>, vector<2x32xf32>
    tpu.vector_store %arg16[%c14_222, %c0_223], %671 {strides = array<i32>} : memref<16x64xf32, #tpu.memory_space<vmem>>, vector<2x32xf32>,
    %c0_224 = arith.constant 0 : index
    %c32_225 = arith.constant 32 : index
    %676 = vector.load %arg16[%c0_224, %c32_225] : memref<16x64xf32, #tpu.memory_space<vmem>>, vector<2x32xf32>
    tpu.vector_store %arg16[%c0_224, %c32_225], %674 {strides = array<i32>} : memref<16x64xf32, #tpu.memory_space<vmem>>, vector<2x32xf32>,
    %c0_226 = arith.constant 0 : index
    %c0_227 = arith.constant 0 : index
    %677 = vector.load %arg16[%c0_226, %c0_227] : memref<16x64xf32, #tpu.memory_space<vmem>>, vector<16x64xf32>
    %c0_228 = arith.constant 0 : index
    %c0_229 = arith.constant 0 : index
    %678 = vector.load %arg13[%c0_228, %c0_229] : memref<64x128xf32, #tpu.memory_space<vmem>>, vector<64x128xf32>
    %cst_230 = arith.constant dense<0.000000e+00> : vector<16x128xf32>
    %679 = tpu.matmul %677, %678, %cst_230 {dimension_numbers = #tpu.dot_dimension_numbers<[1], [0], [0], [1], [0, 0, 1, 1], [], []>} : vector<16x64xf32>, vector<64x128xf32>, vector<16x128xf32> -> vector<16x128xf32>
    %c0_231 = arith.constant 0 : index
    %c0_232 = arith.constant 0 : index
    %680 = vector.load %arg14[%c0_231, %c0_232] : memref<1x128xf32, #tpu.memory_space<vmem>>, vector<1x128xf32>
    %681 = vector.broadcast %680 : vector<1x128xf32> to vector<16x128xf32>
    %682 = arith.addf %679, %681 : vector<16x128xf32>
    %c0_233 = arith.constant 0 : index
    %c0_234 = arith.constant 0 : index
    %683 = vector.load %arg15[%c0_233, %c0_234] : memref<16x128xf32, #tpu.memory_space<vmem>>, vector<16x128xf32>
    tpu.vector_store %arg15[%c0_233, %c0_234], %682 {strides = array<i32>} : memref<16x128xf32, #tpu.memory_space<vmem>>, vector<16x128xf32>,
    return
  }
}

</mosaic_0001>

<bundles_post_ra>
// kernel: tpu_custom_call.1
= control target key start
LH: loop header
LB: loop body
LE: loop exit
PB: predicated region body
PF: predicated region fallthrough
CT: control target
= control target key end

     0   :  { %20 = vsyncpa [#allocation5], 0  ;;  %s4191_s0 = inlined_call_operand.vmem [shape: f32[16,6], index: 0, kind: input, shape index: {}]   ;;  %s4192_s1 = inlined_call_operand.vmem [shape: f32[16,4], index: 1, kind: input, shape index: {}]   ;;  %s4193_s2 = inlined_call_operand.vmem [shape: f32[6,32], index: 2, kind: input, shape index: {}]   ;;  %s4194_s3 = inlined_call_operand.hbm [shape: f32[4,32], index: 3, kind: input, shape index: {}]   ;;  %s4195_s4 = inlined_call_operand.hbm [shape: f32[1,32], index: 4, kind: input, shape index: {}]   ;;  %s4196_s5 = inlined_call_operand.hbm [shape: f32[32,256], index: 5, kind: input, shape index: {}]   ;;  %s4197_s6 = inlined_call_operand.vmem [shape: f32[32,128], index: 6, kind: input, shape index: {}]   ;;  %s4198_s7 = inlined_call_operand.hbm [shape: f32[32,128], index: 7, kind: input, shape index: {}]   ;;  %s4199_s8 = inlined_call_operand.vmem [shape: f32[1,256], index: 8, kind: input, shape index: {}]   ;;  %s4200_s9 = inlined_call_operand.hbm [shape: f32[64,256], index: 9, kind: input, shape index: {}]   ;;  %s4201_s10 = inlined_call_operand.hbm [shape: f32[32,128], index: 10, kind: input, shape index: {}]   ;;  %s4202_s11 = inlined_call_operand.hbm [shape: f32[32,128], index: 11, kind: input, shape index: {}]   ;;  %s4203_s12 = inlined_call_operand.vmem [shape: f32[1,256], index: 12, kind: input, shape index: {}]   ;;  %s4204_s13 = inlined_call_operand.hbm [shape: f32[64,128], index: 13, kind: input, shape index: {}]   ;;  %s4205_s14 = inlined_call_operand.vmem [shape: f32[1,128], index: 14, kind: input, shape index: {}]   ;;  %s4206_s15 = inlined_call_operand.hbm [shape: f32[16,128], index: 15, kind: output, shape index: {}]  }
   0x1   :  { %21 = vsyncpa [#allocation8], 0 }
   0x2   :  { %22 = vsyncpa [#allocation11], 0 }
   0x3   :  { %23 = vsyncpa [#allocation14], 0 }
   0x4   :  { %24 = vsyncpa [#allocation17], 0  ;;  %s48_s20 = sshll.u32 %s4195_s4, 4  ;;  %s49_s20 = int_to_ptr.hbm [resolvable:$true] %s48_s20 }
   0x5   :  { %25 = vsyncpa [#allocation6], 0  ;;  %s3414_s21 = smov [#allocation7]   ;;  %s73_s25 = sshll.u32 %s4198_s7, 4  ;;  %s74_s25 = int_to_ptr.hbm [resolvable:$true] %s73_s25 }
   0x6   :  { %s50_s22 = sshll.u32 %s3414_s21, 4  ;;  %s3415_s26 = smov [#allocation10]   ;;  %s51_s22 = int_to_ptr.vmem [resolvable:$true] %s50_s22 }
   0x7   :  { %53 = dma.hbm_to_vmem [thread:$0]  %s49_s20, 16, %s51_s22, [#allocation8]  }
   0x8   :  { %s75_s27 = sshll.u32 %s3415_s26, 4  ;;  %s3416_s28 = smov 128   ;;  %s76_s27 = int_to_ptr.vmem [resolvable:$true] %s75_s27 }
   0x9   :  { %s3417_s29 = smov 8   ;;  %s101_s16 = sshll.u32 %s4201_s10, 4  ;;  %s102_s16 = int_to_ptr.hbm [resolvable:$true] %s101_s16 }
   0xa   :  { %81 = dma.hbm_to_vmem [thread:$0]  %s74_s25, 512, %s76_s27, [#allocation11], %s3416_s28, %s3416_s28, %s3417_s29  }
   0xb   :  { %s3418_s17 = smov [#allocation13]   ;;  %s37_s20 = sshll.u32 %s4194_s3, 4  ;;  %s38_s20 = int_to_ptr.hbm [resolvable:$true] %s37_s20 }
   0xc   :  { %s103_s18 = sshll.u32 %s3418_s17, 4  ;;  %s3419_s21 = smov [#allocation4]   ;;  %s104_s18 = int_to_ptr.vmem [resolvable:$true] %s103_s18 }
   0xd   :  { %109 = dma.hbm_to_vmem [thread:$0]  %s102_s16, 512, %s104_s18, [#allocation14], %s3416_s28, %s3416_s28, %s3417_s29  }
   0xe   :  { %s39_s22 = sshll.u32 %s3419_s21, 4  ;;  %s58_s25 = sshll.u32 %s4196_s5, 4  ;;  %s40_s22 = int_to_ptr.vmem [resolvable:$true] %s39_s22  ;;  %s59_s25 = int_to_ptr.hbm [resolvable:$true] %s58_s25 }
   0xf   :  { %42 = dma.hbm_to_vmem [thread:$0]  %s38_s20, 64, %s40_s22, [#allocation5]  }
  0x10   :  { %s3420_s10 = smov [#allocation9]   ;;  %s88_s3 = sshll.u32 %s4200_s9, 4  ;;  %s89_s3 = int_to_ptr.hbm [resolvable:$true] %s88_s3 }
  0x11   :  { %s60_s26 = sshll.u32 %s3420_s10, 4  ;;  %s3421_s30 = smov 256   ;;  %s61_s26 = int_to_ptr.vmem [resolvable:$true] %s60_s26 }
  0x12   :  { %s3422_s17 = smov 16   ;;  %s3423_s16 = smov [#allocation12]  }
  0x13   :  { %66 = dma.hbm_to_vmem [thread:$0]  %s59_s25, 1024, %s61_s26, [#allocation8], %s3421_s30, %s3421_s30, %s3422_s17  }
  0x14   :  { %s90_s18 = sshll.u32 %s3423_s16, 4  ;;  %s114_s5 = sshll.u32 %s4202_s11, 4  ;;  %s91_s18 = int_to_ptr.vmem [resolvable:$true] %s90_s18  ;;  %s115_s5 = int_to_ptr.hbm [resolvable:$true] %s114_s5 }
  0x15   :  { %96 = dma.hbm_to_vmem [thread:$0]  %s89_s3, 2048, %s91_s18, [#allocation11], %s3421_s30, %s3421_s30, %s3422_s17  }
  0x16   :  { %s129_s22 = sshll.u32 %s4204_s13, 4  ;;  %s3424_s23 = smov [#allocation15]   ;;  %s130_s22 = int_to_ptr.hbm [resolvable:$true] %s129_s22 }
  0x17   :  { %s116_s24 = sshll.u32 %s3424_s23, 4  ;;  %s3425_s9 = smov [#allocation16]   ;;  %s117_s24 = int_to_ptr.vmem [resolvable:$true] %s116_s24 }
  0x18   :  { %122 = dma.hbm_to_vmem [thread:$0]  %s115_s5, 512, %s117_s24, [#allocation14], %s3416_s28, %s3416_s28, %s3417_s29  }
  0x19   :  { %s131_s25 = sshll.u32 %s3425_s9, 4  ;;  %s132_s25 = int_to_ptr.vmem [resolvable:$true] %s131_s25 }
  0x1a   :  { %137 = dma.hbm_to_vmem [thread:$0]  %s130_s22, 1024, %s132_s25, [#allocation17], %s3416_s28, %s3416_s28, %s3417_s29  }
  0x1b   :  { %3402 = dma.done.wait [#allocation5], 64  }
  0x1c   :  { %3403 = vsyncadd [#allocation5], 4294967232 }
  0x1d   :  { %3404 = dma.done.wait [#allocation8], 1040  }
  0x1e   :  { %3405 = vsyncadd [#allocation8], 4294966256 }
  0x1f   :  { %3406 = dma.done.wait [#allocation11], 2560  }
  0x20   :  { %3407 = vsyncadd [#allocation11], 4294964736 }
  0x21   :  { %3408 = dma.done.wait [#allocation14], 1024  }
  0x22   :  { %3409 = vsyncadd [#allocation14], 4294966272 }
  0x23   :  { %3410 = dma.done.wait [#allocation17], 1024  }
  0x24   :  { %3411 = vsyncadd [#allocation17], 4294966272  ;;  %vm185_vm0 = vcmask 1043456   ;;  %vm219_vm1 = vcmask 1045504   ;;  %vm178_vm2 = vcmask 31744   ;;  %vm212_vm3 = vcmask 48128  }
  0x25   :  { %v177_v0 = vld [vmem:[#allocation4] sm:$0xf]  ;;  %v174_v1 = vld [vmem:[%s4193_s2] sm:$0x3f]  ;;  %v176_v4 = vld [vmem:[%s4192_s1 + $0x8] sm:$0xff]  ;;  %vm276_vm4 = vcmask 261120  }
  0x26   :  { %v175_v2 = vld [vmem:[%s4192_s1] sm:$0xff]  ;;  %2831 = vmatpush.msk.msra.mxu0 %vm185_vm0, %v177_v0  ;;  %2834 = vmatpush.msk.msra.mxu1 %vm219_vm1, %v174_v1  ;;  %v173_v5 = vld [vmem:[%s4191_s0 + $0x8] sm:$0xff]  ;;  %v266_v7 = vld [vmem:[#allocation9 + $0x20] sm:$0xff]  ;;  %v3426_v28 = vmov 0.0   ;;  %s3428_s22 = smov 64   ;;  %vm461_vm13 = vcmask 254976  }
  0x27   :  { %v172_v3 = vld [vmem:[%s4191_s0] sm:$0xff]  ;;  %2832 = vmatmul.msk.f32.vlgmr.msra.gmra.mxu0 %vm178_vm2, %v175_v2  ;;  %v262_v9 = vld [vmem:[#allocation9] sm:$0xff]  ;;  %v3579_v12 = vld [vmem:[%s4197_s6 + $0x8] sm:$0xff]  ;;  %s3429_s23 = smov 96   ;;  %s3430_s11 = smov [#allocation18]  }
  0x28   :  { %2835 = vmatmul.msk.f32.vlgmr.msra.gmra.mxu1 %vm212_vm3, %v172_v3  ;;  %v268_v6 = vld [vmem:[#allocation9 + $0x30] sm:$0xff]  ;;  %v3565_v10 = vld [vmem:[%s4197_s6 + $0x18] sm:$0xff]  ;;  %v3572_v11 = vld [vmem:[%s4197_s6 + $0x10] sm:$0xff]  ;;  %s2812_s13 = sshll.u32 %s3430_s11, 4  ;;  %s2814_s27 = sshll.u32 %s4206_s15, 4  ;;  %s2813_s13 = int_to_ptr.vmem [resolvable:$true] %s2812_s13  ;;  %s2815_s27 = int_to_ptr.hbm [resolvable:$true] %s2814_s27 }
  0x29   :  { %295 = vmatpush.msrb.mxu0 %v268_v6  ;;  %2907 = vmatpush.msra.mxu3 %v268_v6  ;;  %v264_v8 = vld [vmem:[#allocation9 + $0x10] sm:$0xff]  ;;  %v269_v13 = vld [vmem:[#allocation9 + $0x38] sm:$0xff]  ;;  %v267_v15 = vld [vmem:[#allocation9 + $0x28] sm:$0xff] }
  0x2a   :  { %484 = vmatpush.msra.mxu2 %v3565_v10  ;;  %v3586_v14 = vld [vmem:[%s4197_s6] sm:$0xff]  ;;  %v265_v16 = vld [vmem:[#allocation9 + $0x18] sm:$0xff]  ;;  %v3602_v25 = vld [vmem:[#allocation10] sm:$0xff] }
  0x2b   :  { %296 = vmatpush.msrb.mxu0 %v266_v7  ;;  %2908 = vmatpush.msra.mxu3 %v266_v7  ;;  %v263_v17 = vld [vmem:[#allocation9 + $0x8] sm:$0xff]  ;;  %v3593_v18 = vld [vmem:[#allocation10 + $0x18] sm:$0xff]  ;;  %v3597_v20 = vld [vmem:[#allocation10 + $0x10] sm:$0xff] }
  0x2c   :  { %485 = vmatpush.msra.mxu2 %v3572_v11  ;;  %371 = vmatpush.msrb.mxu1 %v3593_v18  ;;  %v2928_v19 = vld [vmem:[#allocation7] ss:$0 sm:$0xff]  ;;  %v3599_v21 = vld [vmem:[#allocation10 + $0x8] sm:$0xff] }
  0x2d   :  { %297 = vmatpush.msrb.mxu0 %v264_v8  ;;  %2909 = vmatpush.msra.mxu3 %v264_v8  ;;  %v270_v34 = vld [vmem:[%s4199_s8] sm:$0x3]  ;;  %s3427_s8 = smov 32  }
  0x2e   :  { %486 = vmatpush.msra.mxu2 %v3579_v12  ;;  %372 = vmatpush.msrb.mxu1 %v3597_v20  ;;  %v272_v35 = vperm.slane %v270_v34, 0  ;;  %v273_v40 = vperm.slane %v270_v34, 1 }
  0x2f   :  { %2833 = vmatmul.msk.f32.gmra.mxu0 %vm178_vm2, %v176_v4  ;;  %2910 = vmatpush.msra.mxu3 %v262_v9 }
  0x30   :  { %2836 = vmatmul.msk.f32.gmra.mxu1 %vm212_vm3, %v173_v5  ;;  %298 = vmatpush.msrb.mxu0 %v262_v9 }
  0x31   :  { %318 = vmatpush.msrb.mxu3 %v269_v13  ;;  %487 = vmatpush.msra.mxu2 %v3586_v14 }
  0x32   :  { %349 = vmatpush.msra.mxu0 %v3565_v10  ;;  %373 = vmatpush.msrb.mxu1 %v3599_v21 }
  0x33   :  { %319 = vmatpush.msrb.mxu3 %v267_v15  ;;  %788 = vmatpush.msrb.mxu2 %v3565_v10 }
  0x34   :  { %350 = vmatpush.msra.mxu0 %v3572_v11  ;;  %374 = vmatpush.msrb.mxu1 %v3602_v25 }
  0x35   :  { %320 = vmatpush.msrb.mxu3 %v265_v16  ;;  %789 = vmatpush.msrb.mxu2 %v3572_v11 }
  0x36   :  { %351 = vmatpush.msra.mxu0 %v3579_v12  ;;  %666 = vmatpush.msra.mxu1 %v3593_v18 }
  0x37   :  { %321 = vmatpush.msrb.mxu3 %v263_v17  ;;  %790 = vmatpush.msrb.mxu2 %v3579_v12 }
  0x38   :  { %352 = vmatpush.msra.mxu0 %v3586_v14  ;;  %375 = vmatmul.f32.vlgmr.msrb.gmra.mxu1 %v3426_v28 }
  0x39   :  { %791 = vmatpush.msrb.mxu2 %v3586_v14  ;;  %667 = vmatpush.msra.mxu1 %v3597_v20 }
  0x3b   :  { %668 = vmatpush.msra.mxu1 %v3599_v21 }
  0x3d   :  { %669 = vmatpush.msra.mxu1 %v3602_v25 }
  0x3f   :  { %963 = vmatpush.msrb.mxu1 %v3593_v18 }
  0x41   :  { %964 = vmatpush.msrb.mxu1 %v3597_v20 }
  0x43   :  { %965 = vmatpush.msrb.mxu1 %v3599_v21 }
  0x45   :  { %966 = vmatpush.msrb.mxu1 %v3602_v25 }
  0xa4   :  { %v206_v22 = vpop.f32.mrf.mxu0 }
  0xa5   :  { %v240_v23 = vpop.f32.mrf.mxu1 }
  0xa6   :  { %v241_v24 = vadd.f32 %v240_v23, %v206_v22 }
  0xa8   :  { %v250_v26 = vadd.f32 %v2928_v19, %v241_v24 }
  0xaa   :  { %v252_v27 = vmax.f32 %v250_v26, 0.0 }
  0xac   :  { %2837 = vmatmul.msk.f32.vlgmr.msrb.gmra.mxu0 %vm276_vm4, %v252_v27  ;;  %v209_v29 = vpop.f32.mrf.mxu0 }
  0xad   :  { %v243_v30 = vpop.f32.mrf.mxu1  ;;  %636 = vmatpush.msrb.mxu0 %v3565_v10 }
  0xae   :  { %v244_v31 = vadd.f32 %v243_v30, %v209_v29 }
  0xaf   :  { %637 = vmatpush.msrb.mxu0 %v3572_v11 }
  0xb0   :  { %v251_v32 = vadd.f32 %v2928_v19, %v244_v31 }
  0xb1   :  { %638 = vmatpush.msrb.mxu0 %v3579_v12 }
  0xb2   :  { %v253_v33 = vmax.f32 %v251_v32, 0.0 }
  0xb3   :  { %639 = vmatpush.msrb.mxu0 %v3586_v14 }
  0xb4   :  { %2838 = vmatmul.msk.f32.vlgmr.msra.gmra.mxu3 %vm276_vm4, %v253_v33  ;;  %353 = vmatmul.f32.vlgmr.msra.gmra.mxu0 %v3426_v28 }
  0xb5   :  { %514 = vmatpush.msra.mxu3 %v3593_v18  ;;  %937 = vmatpush.msra.mxu0 %v3565_v10  ;;  %v376_v45 = vpop.f32.mrf.mxu1 }
  0xb6   :  { %v380_v46 = vrot.slane %v376_v45, 2 }
  0xb7   :  { %515 = vmatpush.msra.mxu3 %v3597_v20  ;;  %938 = vmatpush.msra.mxu0 %v3572_v11 }
  0xb9   :  { %516 = vmatpush.msra.mxu3 %v3599_v21  ;;  %939 = vmatpush.msra.mxu0 %v3579_v12 }
  0xbb   :  { %517 = vmatpush.msra.mxu3 %v3602_v25  ;;  %940 = vmatpush.msra.mxu0 %v3586_v14 }
  0xbc   :  { %2839 = vmatmul.msk.f32.vlgmr.msrb.gmra.mxu3 %vm276_vm4, %v252_v27 }
  0xbd   :  { %818 = vmatpush.msrb.mxu3 %v3593_v18 }
  0xbf   :  { %819 = vmatpush.msrb.mxu3 %v3597_v20 }
  0xc1   :  { %820 = vmatpush.msrb.mxu3 %v3599_v21 }
  0xc3   :  { %821 = vmatpush.msrb.mxu3 %v3602_v25 }
  0xc4   :  { %2840 = vmatmul.msk.f32.gmra.mxu3 %vm276_vm4, %v253_v33 }
 0x129   :  { %v300_v36 = vpop.f32.mrf.mxu0 }
 0x12a   :  { %v301_v37 = vadd.f32 %v300_v36, %v272_v35 }
 0x12c   :  { %329 = vst [vmem:[#allocation3 + $0x10] sm:$0xff] %v301_v37 }
 0x131   :  { %v354_v50 = vpop.f32.mrf.mxu0 }
 0x133   :  { %v333_v49 = vld [vmem:[#allocation3 + $0x10] sm:$0x3] }
 0x134   :  { %v357_v51 = vadd.f32 %v354_v50, %v333_v49  ;;  %v469_v50 = vld [vmem:[#allocation3 + $0x10] sm:$0xc] }
 0x136   :  { %v2841_v55 = vmul.f32 -1.442695, %v357_v51 }
 0x137   :  { %v303_v38 = vpop.f32.mrf.mxu3 }
 0x138   :  { %v304_v39 = vadd.f32 %v303_v38, %v272_v35 }
 0x13a   :  { %331 = vst [vmem:[#allocation3 + $0x18] sm:$0xff] %v304_v39 }
 0x13f   :  { %v323_v41 = vpop.f32.mrf.mxu3 }
 0x140   :  { %v324_v42 = vadd.f32 %v323_v41, %v273_v40 }
 0x142   :  { %330 = vst [vmem:[#allocation3] sm:$0xff] %v324_v42 }
 0x147   :  { %v326_v43 = vpop.f32.mrf.mxu3 }
 0x148   :  { %v327_v44 = vadd.f32 %v326_v43, %v273_v40 }
 0x14a   :  { %332 = vst [vmem:[#allocation3 + $0x8] sm:$0xff] %v327_v44 }
 0x151   :  { %v358_v47 = vld [vmem:[#allocation3 + $0x8] sm:$0xc0] }
 0x152   :  { %v382_v48 = vadd.f32 %v380_v46, %v358_v47  ;;  %v496_v46 = vld [vmem:[#allocation3 + $0x8] sm:$0x30] }
 0x154   :  { %2930 = vtanh.f32 %v382_v48  ;;  %v2842_v54 = vmul.f32 -1.442695, %v382_v48 }
 0x155   :  { %2932 = vtanh.f32 %v357_v51 }
 0x156   :  { %2934 = vpow2.f32 %v2842_v54 }
 0x157   :  { %2936 = vpow2.f32 %v2841_v55 }
 0x15a   :  { %v2931_v52 = vpop.eup %2930 }
 0x15b   :  { %436 = vrot.lane.b32.xlu0 %v2931_v52, %s3427_s8  ;;  %v2933_v53 = vpop.eup %2932 }
 0x15c   :  { %v2935_v56 = vpop.eup %2934 }
 0x15d   :  { %v405_v57 = vadd.f32 1.0, %v2935_v56  ;;  %v2937_v58 = vpop.eup %2936 }
 0x15e   :  { %v386_v59 = vadd.f32 1.0, %v2937_v58 }
 0x15f   :  { %2938 = vrcp.f32 %v405_v57  ;;  %v417_v4 = vand.u32 2147483648, %v405_v57  ;;  %vm411_vm6 = vweird.f32 %v405_v57  ;;  %v415_v5 = vand.u32 2147483647, %v405_v57 }
 0x160   :  { %2940 = vrcp.f32 %v386_v59  ;;  %v398_v17 = vand.u32 2147483648, %v386_v59  ;;  %vm392_vm10 = vweird.f32 %v386_v59  ;;  %v396_v19 = vand.u32 2147483647, %v386_v59 }
 0x161   :  { %v418_v8 = vor.u32 1.1754944e-38, %v417_v4  ;;  %vm416_vm8 = vcmp.eq.f32.partialorder %v415_v5, 8.507059e+37 }
 0x162   :  { %v399_v23 = vor.u32 1.1754944e-38, %v398_v17  ;;  %vm397_vm12 = vcmp.eq.f32.partialorder %v396_v19, 8.507059e+37 }
 0x163   :  { %425 = vrot.lane.b32.xlu0 %v2933_v53, %s3427_s8 }
 0x165   :  { %v2939_v60 = vpop.eup %2938 }
 0x166   :  { %v407_v61 = vmul.f32 %v2939_v60, %v405_v57  ;;  %v2941_v63 = vpop.eup %2940  ;;  %vm412_vm5 = vweird.f32 %v2939_v60 }
 0x167   :  { %v388_v1 = vmul.f32 %v2941_v63, %v386_v59  ;;  %vm413_vm7 = vmor %vm411_vm6, %vm412_vm5  ;;  %vm393_vm9 = vweird.f32 %v2941_v63 }
 0x168   :  { %v408_v62 = vsub.f32 1.0, %v407_v61  ;;  %vm394_vm11 = vmor %vm392_vm10, %vm393_vm9 }
 0x169   :  { %v389_v3 = vsub.f32 1.0, %v388_v1 }
 0x16a   :  { %v409_v0 = vmul.f32 %v2939_v60, %v408_v62 }
 0x16b   :  { %v390_v7 = vmul.f32 %v2941_v63, %v389_v3 }
 0x16c   :  { %v410_v2 = vadd.f32 %v2939_v60, %v409_v0 }
 0x16d   :  { %v391_v16 = vadd.f32 %v2941_v63, %v390_v7 }
 0x16e   :  { %v414_v6 = vsel %vm413_vm7, %v2939_v60, %v410_v2 }
 0x16f   :  { %v419_v13 = vsel %vm416_vm8, %v418_v8, %v414_v6  ;;  %v395_v22 = vsel %vm394_vm11, %v2941_v63, %v391_v16 }
 0x170   :  { %v400_v26 = vsel %vm397_vm12, %v399_v23, %v395_v22  ;;  %v434_v29 = vmul.f32 0.0, %v419_v13 }
 0x171   :  { %v423_v32 = vmul.f32 0.0, %v400_v26 }
 0x1cd   :  { %v437_v9 = vpop.permute.xlu0 %436 }
 0x1ce   :  { %v439_v15 = vmul.f32 %v437_v9, %v419_v13 }
 0x1d0   :  { %441 = vrot.lane.b32.xlu1 %v439_v15, %s3427_s8 }
 0x1d5   :  { %v426_v24 = vpop.permute.xlu0 %425 }
 0x1d6   :  { %v428_v27 = vmul.f32 %v426_v24, %v400_v26 }
 0x1d8   :  { %430 = vrot.lane.b32.xlu1 %v428_v27, %s3427_s8 }
 0x242   :  { %v442_v30 = vpop.permute.xlu1 %441 }
 0x243   :  { %v3643_v31 = vadd.f32 %v442_v30, %v434_v29 }
 0x245   :  { %2942 = vtanh.f32 %v3643_v31  ;;  %v581_v29 = vrot.slane %v3643_v31, 2 }
 0x24a   :  { %v431_v33 = vpop.permute.xlu1 %430 }
 0x24b   :  { %v2943_v34 = vpop.eup %2942  ;;  %v3646_v35 = vadd.f32 %v431_v33, %v423_v32 }
 0x24c   :  { %453 = vrot.lane.b32.xlu2 %v2943_v34, %s3427_s8 }
 0x24d   :  { %2944 = vtanh.f32 %v3646_v35  ;;  %v567_v34 = vrot.slane %v3646_v35, 6 }
 0x253   :  { %v2945_v36 = vpop.eup %2944 }
 0x254   :  { %447 = vrot.lane.b32.xlu2 %v2945_v36, %s3427_s8 }
 0x2a6   :  { %v454_v37 = vpop.permute.xlu2 %453 }
 0x2a7   :  { %v3651_v38 = vmul.f32 %v454_v37, %v419_v13 }
 0x2a9   :  { %v497_v39 = vrot.slane %v3651_v38, 6 }
 0x2ab   :  { %498 = vrot.lane.b32.xlu0 %v497_v39, %s3428_s22 }
 0x2ae   :  { %v448_v40 = vpop.permute.xlu2 %447 }
 0x2af   :  { %v450_v41 = vmul.f32 %v448_v40, %v400_v26 }
 0x2b1   :  { %458 = vrot.lane.b32.xlu1 %v450_v41, %s3428_s22 }
 0x31d   :  { %v499_v42 = vpop.permute.xlu0 %498 }
 0x31e   :  { %2844 = vmatmul.msk.f32.vlgmr.msra.gmra.mxu3 %vm276_vm4, %v499_v42 }
 0x31f   :  { %1110 = vmatpush.msra.mxu3 %v3593_v18 }
 0x321   :  { %1111 = vmatpush.msra.mxu3 %v3597_v20 }
 0x323   :  { %v459_v43 = vpop.permute.xlu1 %458  ;;  %1112 = vmatpush.msra.mxu3 %v3599_v21 }
 0x324   :  { %462 = vst.msk [vmem:[#allocation2] sm:$0x3] %vm461_vm13, %v459_v43  ;;  %2843 = vmatmul.msk.f32.vlgmr.msra.gmra.mxu2 %vm276_vm4, %v459_v43 }
 0x325   :  { %1113 = vmatpush.msra.mxu3 %v3602_v25  ;;  %1080 = vmatpush.msra.mxu2 %v3565_v10 }
 0x327   :  { %1081 = vmatpush.msra.mxu2 %v3572_v11 }
 0x329   :  { %1082 = vmatpush.msra.mxu2 %v3579_v12 }
 0x32b   :  { %1083 = vmatpush.msra.mxu2 %v3586_v14 }
 0x3a1   :  { %v519_v44 = vpop.f32.mrf.mxu3 }
 0x3a2   :  { %v523_v45 = vrot.slane %v519_v44, 4 }
 0x3a4   :  { %v525_v47 = vadd.f32 %v523_v45, %v496_v46 }
 0x3a6   :  { %2946 = vtanh.f32 %v525_v47  ;;  %v2846_v54 = vmul.f32 -1.442695, %v525_v47 }
 0x3a7   :  { %v489_v48 = vpop.f32.mrf.mxu2 }
 0x3a8   :  { %v493_v49 = vrot.slane %v489_v48, 6 }
 0x3aa   :  { %v495_v51 = vadd.f32 %v493_v49, %v469_v50  ;;  %v648_v50 = vld [vmem:[#allocation3 + $0x8] sm:$0xc] }
 0x3ac   :  { %v2947_v52 = vpop.eup %2946  ;;  %2948 = vtanh.f32 %v495_v51  ;;  %v2845_v59 = vmul.f32 -1.442695, %v495_v51 }
 0x3ad   :  { %585 = vrot.lane.b32.xlu2 %v2947_v52, %s3427_s8  ;;  %2950 = vpow2.f32 %v2846_v54 }
 0x3b2   :  { %v2949_v53 = vpop.eup %2948 }
 0x3b3   :  { %571 = vrot.lane.b32.xlu0 %v2949_v53, %s3427_s8  ;;  %v2951_v55 = vpop.eup %2950 }
 0x3b4   :  { %v548_v56 = vadd.f32 1.0, %v2951_v55  ;;  %v618_v55 = vld [vmem:[#allocation3 + $0x10] sm:$0x30] }
 0x3b6   :  { %2952 = vrcp.f32 %v548_v56  ;;  %v560_v63 = vand.u32 2147483648, %v548_v56  ;;  %vm554_vm15 = vweird.f32 %v548_v56  ;;  %v558_v1 = vand.u32 2147483647, %v548_v56 }
 0x3b7   :  { %2954 = vpow2.f32 %v2845_v59 }
 0x3b8   :  { %v561_v4 = vor.u32 1.1754944e-38, %v560_v63  ;;  %vm559_vm1 = vcmp.eq.f32.partialorder %v558_v1, 8.507059e+37 }
 0x3bc   :  { %v2953_v57 = vpop.eup %2952 }
 0x3bd   :  { %v550_v58 = vmul.f32 %v2953_v57, %v548_v56  ;;  %vm555_vm14 = vweird.f32 %v2953_v57  ;;  %v2955_v0 = vpop.eup %2954 }
 0x3be   :  { %vm556_vm0 = vmor %vm554_vm15, %vm555_vm14  ;;  %v529_v3 = vadd.f32 1.0, %v2955_v0 }
 0x3bf   :  { %v551_v60 = vsub.f32 1.0, %v550_v58 }
 0x3c0   :  { %2956 = vrcp.f32 %v529_v3  ;;  %v541_v17 = vand.u32 2147483648, %v529_v3  ;;  %vm535_vm3 = vweird.f32 %v529_v3  ;;  %v539_v19 = vand.u32 2147483647, %v529_v3 }
 0x3c1   :  { %v552_v61 = vmul.f32 %v2953_v57, %v551_v60 }
 0x3c2   :  { %v542_v23 = vor.u32 1.1754944e-38, %v541_v17  ;;  %vm540_vm6 = vcmp.eq.f32.partialorder %v539_v19, 8.507059e+37 }
 0x3c3   :  { %v553_v62 = vadd.f32 %v2953_v57, %v552_v61 }
 0x3c5   :  { %v557_v2 = vsel %vm556_vm0, %v2953_v57, %v553_v62 }
 0x3c6   :  { %v562_v5 = vsel %vm559_vm1, %v561_v4, %v557_v2  ;;  %v2957_v8 = vpop.eup %2956 }
 0x3c7   :  { %v531_v9 = vmul.f32 %v2957_v8, %v529_v3  ;;  %vm536_vm2 = vweird.f32 %v2957_v8  ;;  %v583_v30 = vmul.f32 %v581_v29, %v562_v5 }
 0x3c8   :  { %vm537_vm5 = vmor %vm535_vm3, %vm536_vm2 }
 0x3c9   :  { %v532_v13 = vsub.f32 1.0, %v531_v9 }
 0x3cb   :  { %v533_v15 = vmul.f32 %v2957_v8, %v532_v13 }
 0x3cd   :  { %v534_v16 = vadd.f32 %v2957_v8, %v533_v15 }
 0x3cf   :  { %v538_v22 = vsel %vm537_vm5, %v2957_v8, %v534_v16 }
 0x3d0   :  { %v543_v26 = vsel %vm540_vm6, %v542_v23, %v538_v22 }
 0x3d1   :  { %v569_v36 = vmul.f32 %v567_v34, %v543_v26 }
 0x407   :  { %v586_v6 = vpop.permute.xlu2 %585 }
 0x408   :  { %v588_v7 = vmul.f32 %v586_v6, %v562_v5 }
 0x40a   :  { %590 = vrot.lane.b32.xlu1 %v588_v7, %s3427_s8 }
 0x425   :  { %v572_v24 = vpop.permute.xlu0 %571 }
 0x426   :  { %v574_v27 = vmul.f32 %v572_v24, %v543_v26 }
 0x428   :  { %576 = vrot.lane.b32.xlu2 %v574_v27, %s3427_s8 }
 0x47c   :  { %v591_v32 = vpop.permute.xlu1 %590 }
 0x47d   :  { %v3672_v33 = vadd.f32 %v591_v32, %v583_v30 }
 0x47f   :  { %2958 = vtanh.f32 %v3672_v33 }
 0x482   :  { %v577_v37 = vpop.permute.xlu2 %576 }
 0x483   :  { %v3676_v39 = vadd.f32 %v577_v37, %v569_v36  ;;  %v733_v36 = vrot.slane %v3672_v33, 2 }
 0x485   :  { %v2959_v40 = vpop.eup %2958  ;;  %2960 = vtanh.f32 %v3676_v39 }
 0x486   :  { %602 = vrot.lane.b32.xlu0 %v2959_v40, %s3427_s8 }
 0x48b   :  { %v2961_v41 = vpop.eup %2960 }
 0x48c   :  { %596 = vrot.lane.b32.xlu1 %v2961_v41, %s3427_s8 }
 0x4f8   :  { %v603_v31 = vpop.permute.xlu0 %602 }
 0x4f9   :  { %v3681_v42 = vmul.f32 %v603_v31, %v562_v5  ;;  %v719_v31 = vrot.slane %v3676_v39, 6 }
 0x4fb   :  { %v649_v43 = vrot.slane %v3681_v42, 4 }
 0x4fd   :  { %650 = vrot.lane.b32.xlu2 %v649_v43, %s3428_s22 }
 0x4fe   :  { %v597_v35 = vpop.permute.xlu1 %596 }
 0x4ff   :  { %v3685_v44 = vmul.f32 %v597_v35, %v543_v26 }
 0x501   :  { %v619_v45 = vrot.slane %v3685_v44, 2 }
 0x503   :  { %620 = vrot.lane.b32.xlu0 %v619_v45, %s3428_s22 }
 0x557   :  { %v651_v46 = vpop.permute.xlu2 %650 }
 0x558   :  { %2848 = vmatmul.msk.f32.vlgmr.msra.gmra.mxu1 %vm276_vm4, %v651_v46 }
 0x559   :  { %1260 = vmatpush.msra.mxu1 %v3593_v18 }
 0x55b   :  { %1261 = vmatpush.msra.mxu1 %v3597_v20 }
 0x55d   :  { %1262 = vmatpush.msra.mxu1 %v3599_v21 }
 0x55f   :  { %1263 = vmatpush.msra.mxu1 %v3602_v25 }
 0x575   :  { %v621_v47 = vpop.permute.xlu0 %620 }
 0x576   :  { %2847 = vmatmul.msk.f32.vlgmr.msrb.gmra.mxu0 %vm276_vm4, %v621_v47 }
 0x577   :  { %1230 = vmatpush.msrb.mxu0 %v3565_v10 }
 0x579   :  { %1231 = vmatpush.msrb.mxu0 %v3572_v11 }
 0x57b   :  { %1232 = vmatpush.msrb.mxu0 %v3579_v12 }
 0x57d   :  { %1233 = vmatpush.msrb.mxu0 %v3586_v14 }
 0x5d5   :  { %v671_v48 = vpop.f32.mrf.mxu1 }
 0x5d6   :  { %v675_v49 = vrot.slane %v671_v48, 6 }
 0x5d8   :  { %v677_v51 = vadd.f32 %v675_v49, %v648_v50 }
 0x5da   :  { %2962 = vtanh.f32 %v677_v51  ;;  %v2850_v58 = vmul.f32 -1.442695, %v677_v51 }
 0x5e0   :  { %v2963_v52 = vpop.eup %2962 }
 0x5e1   :  { %737 = vrot.lane.b32.xlu1 %v2963_v52, %s3427_s8 }
 0x5f3   :  { %v641_v53 = vpop.f32.mrf.mxu0 }
 0x5f4   :  { %v645_v54 = vrot.slane %v641_v53, 4 }
 0x5f6   :  { %v647_v56 = vadd.f32 %v645_v54, %v618_v55  ;;  %v800_v54 = vld [vmem:[#allocation3 + $0x8] sm:$0x3] }
 0x5f8   :  { %2964 = vtanh.f32 %v647_v56  ;;  %v2849_v59 = vmul.f32 -1.442695, %v647_v56 }
 0x5f9   :  { %2966 = vpow2.f32 %v2850_v58 }
 0x5fa   :  { %2968 = vpow2.f32 %v2849_v59 }
 0x5fe   :  { %v2965_v57 = vpop.eup %2964 }
 0x5ff   :  { %723 = vrot.lane.b32.xlu2 %v2965_v57, %s3427_s8  ;;  %v2967_v60 = vpop.eup %2966  ;;  %v770_v57 = vld [vmem:[#allocation3 + $0x10] sm:$0xc0] }
 0x600   :  { %v700_v61 = vadd.f32 1.0, %v2967_v60  ;;  %v2969_v62 = vpop.eup %2968 }
 0x601   :  { %v681_v63 = vadd.f32 1.0, %v2969_v62 }
 0x602   :  { %2970 = vrcp.f32 %v700_v61  ;;  %v712_v8 = vand.u32 2147483648, %v700_v61  ;;  %vm706_vm8 = vweird.f32 %v700_v61  ;;  %v710_v9 = vand.u32 2147483647, %v700_v61 }
 0x603   :  { %2972 = vrcp.f32 %v681_v63  ;;  %v693_v23 = vand.u32 2147483648, %v681_v63  ;;  %vm687_vm12 = vweird.f32 %v681_v63  ;;  %v691_v26 = vand.u32 2147483647, %v681_v63 }
 0x604   :  { %v713_v16 = vor.u32 1.1754944e-38, %v712_v8  ;;  %vm711_vm10 = vcmp.eq.f32.partialorder %v710_v9, 8.507059e+37 }
 0x605   :  { %v694_v29 = vor.u32 1.1754944e-38, %v693_v23  ;;  %vm692_vm15 = vcmp.eq.f32.partialorder %v691_v26, 8.507059e+37 }
 0x608   :  { %v2971_v0 = vpop.eup %2970 }
 0x609   :  { %v702_v1 = vmul.f32 %v2971_v0, %v700_v61  ;;  %v2973_v2 = vpop.eup %2972  ;;  %vm707_vm7 = vweird.f32 %v2971_v0 }
 0x60a   :  { %v683_v4 = vmul.f32 %v2973_v2, %v681_v63  ;;  %vm708_vm9 = vmor %vm706_vm8, %vm707_vm7  ;;  %vm688_vm11 = vweird.f32 %v2973_v2 }
 0x60b   :  { %v703_v3 = vsub.f32 1.0, %v702_v1  ;;  %vm689_vm14 = vmor %vm687_vm12, %vm688_vm11 }
 0x60c   :  { %v684_v6 = vsub.f32 1.0, %v683_v4 }
 0x60d   :  { %v704_v5 = vmul.f32 %v2971_v0, %v703_v3 }
 0x60e   :  { %v685_v13 = vmul.f32 %v2973_v2, %v684_v6 }
 0x60f   :  { %v705_v7 = vadd.f32 %v2971_v0, %v704_v5 }
 0x610   :  { %v686_v17 = vadd.f32 %v2973_v2, %v685_v13 }
 0x611   :  { %v709_v15 = vsel %vm708_vm9, %v2971_v0, %v705_v7 }
 0x612   :  { %v714_v22 = vsel %vm711_vm10, %v713_v16, %v709_v15  ;;  %v690_v27 = vsel %vm689_vm14, %v2973_v2, %v686_v17 }
 0x613   :  { %v695_v30 = vsel %vm692_vm15, %v694_v29, %v690_v27  ;;  %v735_v37 = vmul.f32 %v733_v36, %v714_v22 }
 0x614   :  { %v721_v43 = vmul.f32 %v719_v31, %v695_v30 }
 0x653   :  { %v738_v19 = vpop.permute.xlu1 %737 }
 0x654   :  { %v740_v24 = vmul.f32 %v738_v19, %v714_v22 }
 0x656   :  { %742 = vrot.lane.b32.xlu0 %v740_v24, %s3427_s8 }
 0x659   :  { %v724_v32 = vpop.permute.xlu2 %723 }
 0x65a   :  { %v726_v34 = vmul.f32 %v724_v32, %v695_v30 }
 0x65c   :  { %728 = vrot.lane.b32.xlu1 %v726_v34, %s3427_s8 }
 0x6c8   :  { %v743_v40 = vpop.permute.xlu0 %742 }
 0x6c9   :  { %v3704_v41 = vadd.f32 %v743_v40, %v735_v37 }
 0x6cb   :  { %2974 = vtanh.f32 %v3704_v41 }
 0x6ce   :  { %v729_v35 = vpop.permute.xlu1 %728 }
 0x6cf   :  { %v3708_v45 = vadd.f32 %v729_v35, %v721_v43 }
 0x6d1   :  { %v2975_v46 = vpop.eup %2974  ;;  %2976 = vtanh.f32 %v3708_v45  ;;  %v868_v40 = vrot.slane %v3708_v45, 6 }
 0x6d2   :  { %754 = vrot.lane.b32.xlu2 %v2975_v46, %s3427_s8 }
 0x6d7   :  { %v2977_v47 = vpop.eup %2976 }
 0x6d8   :  { %748 = vrot.lane.b32.xlu0 %v2977_v47, %s3427_s8 }
 0x72c   :  { %v755_v33 = vpop.permute.xlu2 %754 }
 0x72d   :  { %v3713_v48 = vmul.f32 %v755_v33, %v714_v22 }
 0x72f   :  { %v801_v49 = vrot.slane %v3713_v48, 2 }
 0x731   :  { %802 = vrot.lane.b32.xlu1 %v801_v49, %s3428_s22 }
 0x74a   :  { %v749_v39 = vpop.permute.xlu0 %748 }
 0x74b   :  { %v3717_v50 = vmul.f32 %v749_v39, %v695_v30  ;;  %v882_v30 = vrot.slane %v3704_v41, 2 }
 0x74d   :  { %v771_v51 = vrot.slane %v3717_v50, 4 }
 0x74f   :  { %772 = vrot.lane.b32.xlu2 %v771_v51, %s3428_s22 }
 0x7a3   :  { %v803_v52 = vpop.permute.xlu1 %802 }
 0x7a4   :  { %2852 = vmatmul.msk.f32.vlgmr.msrb.gmra.mxu3 %vm276_vm4, %v803_v52 }
 0x7a5   :  { %1410 = vmatpush.msrb.mxu3 %v3593_v18 }
 0x7a7   :  { %1411 = vmatpush.msrb.mxu3 %v3597_v20 }
 0x7a9   :  { %v773_v53 = vpop.permute.xlu2 %772  ;;  %1412 = vmatpush.msrb.mxu3 %v3599_v21 }
 0x7aa   :  { %2851 = vmatmul.msk.f32.vlgmr.msrb.gmra.mxu2 %vm276_vm4, %v773_v53 }
 0x7ab   :  { %1380 = vmatpush.msrb.mxu2 %v3565_v10  ;;  %1413 = vmatpush.msrb.mxu3 %v3602_v25 }
 0x7ad   :  { %1381 = vmatpush.msrb.mxu2 %v3572_v11 }
 0x7af   :  { %1382 = vmatpush.msrb.mxu2 %v3579_v12 }
 0x7b1   :  { %1383 = vmatpush.msrb.mxu2 %v3586_v14 }
 0x827   :  { %v823_v55 = vpop.f32.mrf.mxu3 }
 0x828   :  { %v826_v18 = vadd.f32 %v823_v55, %v800_v54  ;;  %v946_v54 = vld [vmem:[#allocation3] sm:$0xc0] }
 0x82a   :  { %2978 = vtanh.f32 %v826_v18  ;;  %v2854_v11 = vmul.f32 -1.442695, %v826_v18  ;;  %v919_v18 = vld [vmem:[#allocation3 + $0x18] sm:$0x3] }
 0x82d   :  { %v793_v20 = vpop.f32.mrf.mxu2 }
 0x82e   :  { %v797_v56 = vrot.slane %v793_v20, 2 }
 0x830   :  { %v2979_v21 = vpop.eup %2978  ;;  %v799_v58 = vadd.f32 %v797_v56, %v770_v57 }
 0x831   :  { %886 = vrot.lane.b32.xlu0 %v2979_v21, %s3427_s8 }
 0x832   :  { %2980 = vtanh.f32 %v799_v58  ;;  %v2853_v12 = vmul.f32 -1.442695, %v799_v58 }
 0x833   :  { %2982 = vpow2.f32 %v2854_v11 }
 0x834   :  { %2984 = vpow2.f32 %v2853_v12 }
 0x838   :  { %v2981_v10 = vpop.eup %2980 }
 0x839   :  { %872 = vrot.lane.b32.xlu1 %v2981_v10, %s3427_s8  ;;  %v2983_v25 = vpop.eup %2982 }
 0x83a   :  { %v849_v14 = vadd.f32 1.0, %v2983_v25  ;;  %v2985_v59 = vpop.eup %2984 }
 0x83b   :  { %v830_v60 = vadd.f32 1.0, %v2985_v59 }
 0x83c   :  { %2986 = vrcp.f32 %v849_v14  ;;  %v861_v5 = vand.u32 2147483648, %v849_v14  ;;  %vm855_vm1 = vweird.f32 %v849_v14  ;;  %v859_v6 = vand.u32 2147483647, %v849_v14 }
 0x83d   :  { %2988 = vrcp.f32 %v830_v60  ;;  %v842_v19 = vand.u32 2147483648, %v830_v60  ;;  %vm836_vm6 = vweird.f32 %v830_v60  ;;  %v840_v22 = vand.u32 2147483647, %v830_v60 }
 0x83e   :  { %v862_v9 = vor.u32 1.1754944e-38, %v861_v5  ;;  %vm860_vm3 = vcmp.eq.f32.partialorder %v859_v6, 8.507059e+37 }
 0x83f   :  { %v843_v24 = vor.u32 1.1754944e-38, %v842_v19  ;;  %vm841_vm8 = vcmp.eq.f32.partialorder %v840_v22, 8.507059e+37 }
 0x842   :  { %v2987_v61 = vpop.eup %2986 }
 0x843   :  { %v851_v62 = vmul.f32 %v2987_v61, %v849_v14  ;;  %v2989_v0 = vpop.eup %2988  ;;  %vm856_vm0 = vweird.f32 %v2987_v61 }
 0x844   :  { %v832_v2 = vmul.f32 %v2989_v0, %v830_v60  ;;  %vm857_vm2 = vmor %vm855_vm1, %vm856_vm0  ;;  %vm837_vm5 = vweird.f32 %v2989_v0 }
 0x845   :  { %v852_v63 = vsub.f32 1.0, %v851_v62  ;;  %vm838_vm7 = vmor %vm836_vm6, %vm837_vm5 }
 0x846   :  { %v833_v4 = vsub.f32 1.0, %v832_v2 }
 0x847   :  { %v853_v1 = vmul.f32 %v2987_v61, %v852_v63 }
 0x848   :  { %v834_v8 = vmul.f32 %v2989_v0, %v833_v4 }
 0x849   :  { %v854_v3 = vadd.f32 %v2987_v61, %v853_v1 }
 0x84a   :  { %v835_v17 = vadd.f32 %v2989_v0, %v834_v8 }
 0x84b   :  { %v858_v7 = vsel %vm857_vm2, %v2987_v61, %v854_v3 }
 0x84c   :  { %v863_v15 = vsel %vm860_vm3, %v862_v9, %v858_v7  ;;  %v839_v23 = vsel %vm838_vm7, %v2989_v0, %v835_v17 }
 0x84d   :  { %v844_v27 = vsel %vm841_vm8, %v843_v24, %v839_v23  ;;  %v884_v32 = vmul.f32 %v882_v30, %v863_v15 }
 0x84e   :  { %v870_v31 = vmul.f32 %v868_v40, %v844_v27 }
 0x8a3   :  { %v887_v13 = vpop.permute.xlu0 %886 }
 0x8a4   :  { %v889_v16 = vmul.f32 %v887_v13, %v863_v15 }
 0x8a6   :  { %891 = vrot.lane.b32.xlu2 %v889_v16, %s3427_s8 }
 0x8ab   :  { %v873_v26 = vpop.permute.xlu1 %872 }
 0x8ac   :  { %v875_v29 = vmul.f32 %v873_v26, %v844_v27 }
 0x8ae   :  { %877 = vrot.lane.b32.xlu0 %v875_v29, %s3427_s8 }
 0x900   :  { %v892_v34 = vpop.permute.xlu2 %891 }
 0x901   :  { %v3736_v36 = vadd.f32 %v892_v34, %v884_v32 }
 0x903   :  { %2990 = vtanh.f32 %v3736_v36 }
 0x909   :  { %v2991_v37 = vpop.eup %2990 }
 0x90a   :  { %903 = vrot.lane.b32.xlu1 %v2991_v37, %s3427_s8 }
 0x920   :  { %v878_v43 = vpop.permute.xlu0 %877 }
 0x921   :  { %v3741_v35 = vadd.f32 %v878_v43, %v870_v31 }
 0x923   :  { %2992 = vtanh.f32 %v3741_v35  ;;  %v1016_v34 = vrot.slane %v3741_v35, 6 }
 0x929   :  { %v2993_v46 = vpop.eup %2992 }
 0x92a   :  { %897 = vrot.lane.b32.xlu2 %v2993_v46, %s3427_s8 }
 0x97c   :  { %v904_v41 = vpop.permute.xlu1 %903 }
 0x97d   :  { %v3745_v47 = vmul.f32 %v904_v41, %v863_v15 }
 0x97f   :  { %947 = vrot.lane.b32.xlu0 %v3745_v47, %s3428_s22 }
 0x984   :  { %v898_v33 = vpop.permute.xlu2 %897 }
 0x985   :  { %v3749_v49 = vmul.f32 %v898_v33, %v844_v27  ;;  %v1030_v27 = vrot.slane %v3736_v36, 2 }
 0x987   :  { %v920_v45 = vrot.slane %v3749_v49, 6 }
 0x989   :  { %921 = vrot.lane.b32.xlu1 %v920_v45, %s3428_s22 }
 0x9f1   :  { %v948_v39 = vpop.permute.xlu0 %947 }
 0x9f2   :  { %2856 = vmatmul.msk.f32.vlgmr.msrb.gmra.mxu1 %vm276_vm4, %v948_v39 }
 0x9fb   :  { %v922_v51 = vpop.permute.xlu1 %921 }
 0x9fc   :  { %2855 = vmatmul.msk.f32.vlgmr.msra.gmra.mxu0 %vm276_vm4, %v922_v51 }
 0xa6f   :  { %v968_v52 = vpop.f32.mrf.mxu1 }
 0xa70   :  { %v972_v53 = vrot.slane %v968_v52, 2 }
 0xa72   :  { %v974_v55 = vadd.f32 %v972_v53, %v946_v54  ;;  %v1092_v54 = vld [vmem:[#allocation3] sm:$0x30] }
 0xa74   :  { %2994 = vtanh.f32 %v974_v55  ;;  %v2858_v58 = vmul.f32 -1.442695, %v974_v55 }
 0xa79   :  { %v942_v20 = vpop.f32.mrf.mxu0 }
 0xa7a   :  { %v2995_v56 = vpop.eup %2994  ;;  %v945_v57 = vadd.f32 %v942_v20, %v919_v18 }
 0xa7b   :  { %1034 = vrot.lane.b32.xlu2 %v2995_v56, %s3427_s8 }
 0xa7c   :  { %2996 = vtanh.f32 %v945_v57  ;;  %v2857_v59 = vmul.f32 -1.442695, %v945_v57  ;;  %v1065_v57 = vld [vmem:[#allocation3 + $0x18] sm:$0xc] }
 0xa7d   :  { %2998 = vpow2.f32 %v2858_v58 }
 0xa82   :  { %v2997_v21 = vpop.eup %2996 }
 0xa83   :  { %1020 = vrot.lane.b32.xlu0 %v2997_v21, %s3427_s8  ;;  %v2999_v10 = vpop.eup %2998 }
 0xa84   :  { %v997_v11 = vadd.f32 1.0, %v2999_v10 }
 0xa86   :  { %3000 = vrcp.f32 %v997_v11  ;;  %v1009_v62 = vand.u32 2147483648, %v997_v11  ;;  %vm1003_vm10 = vweird.f32 %v997_v11  ;;  %v1007_v63 = vand.u32 2147483647, %v997_v11 }
 0xa87   :  { %3002 = vpow2.f32 %v2857_v59 }
 0xa88   :  { %v1010_v2 = vor.u32 1.1754944e-38, %v1009_v62  ;;  %vm1008_vm12 = vcmp.eq.f32.partialorder %v1007_v63, 8.507059e+37 }
 0xa8c   :  { %v3001_v12 = vpop.eup %3000 }
 0xa8d   :  { %v999_v25 = vmul.f32 %v3001_v12, %v997_v11  ;;  %vm1004_vm9 = vweird.f32 %v3001_v12  ;;  %v3003_v0 = vpop.eup %3002 }
 0xa8e   :  { %vm1005_vm11 = vmor %vm1003_vm10, %vm1004_vm9  ;;  %v978_v3 = vadd.f32 1.0, %v3003_v0 }
 0xa8f   :  { %v1000_v14 = vsub.f32 1.0, %v999_v25 }
 0xa90   :  { %3004 = vrcp.f32 %v978_v3  ;;  %v990_v16 = vand.u32 2147483648, %v978_v3  ;;  %vm984_vm15 = vweird.f32 %v978_v3  ;;  %v988_v17 = vand.u32 2147483647, %v978_v3 }
 0xa91   :  { %v1001_v60 = vmul.f32 %v3001_v12, %v1000_v14 }
 0xa92   :  { %v991_v22 = vor.u32 1.1754944e-38, %v990_v16  ;;  %vm989_vm1 = vcmp.eq.f32.partialorder %v988_v17, 8.507059e+37 }
 0xa93   :  { %v1002_v61 = vadd.f32 %v3001_v12, %v1001_v60 }
 0xa95   :  { %v1006_v1 = vsel %vm1005_vm11, %v3001_v12, %v1002_v61 }
 0xa96   :  { %v1011_v4 = vsel %vm1008_vm12, %v1010_v2, %v1006_v1  ;;  %v3005_v7 = vpop.eup %3004 }
 0xa97   :  { %v980_v8 = vmul.f32 %v3005_v7, %v978_v3  ;;  %vm985_vm14 = vweird.f32 %v3005_v7  ;;  %v1032_v29 = vmul.f32 %v1030_v27, %v1011_v4 }
 0xa98   :  { %vm986_vm0 = vmor %vm984_vm15, %vm985_vm14 }
 0xa99   :  { %v981_v9 = vsub.f32 1.0, %v980_v8 }
 0xa9b   :  { %v982_v13 = vmul.f32 %v3005_v7, %v981_v9 }
 0xa9d   :  { %v983_v15 = vadd.f32 %v3005_v7, %v982_v13 }
 0xa9f   :  { %v987_v19 = vsel %vm986_vm0, %v3005_v7, %v983_v15 }
 0xaa0   :  { %v992_v24 = vsel %vm989_vm1, %v991_v22, %v987_v19 }
 0xaa1   :  { %v1018_v37 = vmul.f32 %v1016_v34, %v992_v24 }
 0xad5   :  { %v1035_v5 = vpop.permute.xlu2 %1034 }
 0xad6   :  { %v1037_v6 = vmul.f32 %v1035_v5, %v1011_v4 }
 0xad8   :  { %1039 = vrot.lane.b32.xlu1 %v1037_v6, %s3427_s8 }
 0xaf5   :  { %v1021_v23 = vpop.permute.xlu0 %1020 }
 0xaf6   :  { %v1023_v26 = vmul.f32 %v1021_v23, %v992_v24 }
 0xaf8   :  { %1025 = vrot.lane.b32.xlu2 %v1023_v26, %s3427_s8 }
 0xb4a   :  { %v1040_v30 = vpop.permute.xlu1 %1039 }
 0xb4b   :  { %v3760_v32 = vadd.f32 %v1040_v30, %v1032_v29 }
 0xb4d   :  { %3006 = vtanh.f32 %v3760_v32  ;;  %v1177_v29 = vrot.slane %v3760_v32, 2 }
 0xb52   :  { %v1026_v40 = vpop.permute.xlu2 %1025 }
 0xb53   :  { %v3007_v31 = vpop.eup %3006  ;;  %v3764_v43 = vadd.f32 %v1026_v40, %v1018_v37 }
 0xb54   :  { %1051 = vrot.lane.b32.xlu0 %v3007_v31, %s3427_s8 }
 0xb55   :  { %3008 = vtanh.f32 %v3764_v43  ;;  %v1163_v40 = vrot.slane %v3764_v43, 6 }
 0xb5b   :  { %v3009_v46 = vpop.eup %3008 }
 0xb5c   :  { %1045 = vrot.lane.b32.xlu1 %v3009_v46, %s3427_s8 }
 0xbc6   :  { %v1052_v36 = vpop.permute.xlu0 %1051 }
 0xbc7   :  { %v3769_v41 = vmul.f32 %v1052_v36, %v1011_v4 }
 0xbc9   :  { %v1093_v33 = vrot.slane %v3769_v41, 6 }
 0xbcb   :  { %1094 = vrot.lane.b32.xlu2 %v1093_v33, %s3428_s22 }
 0xbce   :  { %v1046_v35 = vpop.permute.xlu1 %1045 }
 0xbcf   :  { %v1048_v45 = vmul.f32 %v1046_v35, %v992_v24 }
 0xbd1   :  { %1056 = vrot.lane.b32.xlu0 %v1048_v45, %s3428_s22 }
 0xc25   :  { %v1095_v39 = vpop.permute.xlu2 %1094 }
 0xc26   :  { %2860 = vmatmul.msk.f32.vlgmr.msra.gmra.mxu3 %vm276_vm4, %v1095_v39 }
 0xc43   :  { %v3775_v51 = vpop.permute.xlu0 %1056 }
 0xc44   :  { %2859 = vmatmul.msk.f32.vlgmr.msra.gmra.mxu2 %vm276_vm4, %v3775_v51 }
 0xca9   :  { %v1115_v52 = vpop.f32.mrf.mxu3 }
 0xcaa   :  { %v1119_v53 = vrot.slane %v1115_v52, 4 }
 0xcac   :  { %v1121_v55 = vadd.f32 %v1119_v53, %v1092_v54 }
 0xcae   :  { %3010 = vtanh.f32 %v1121_v55  ;;  %v2862_v10 = vmul.f32 -1.442695, %v1121_v55 }
 0xcb4   :  { %v3011_v18 = vpop.eup %3010 }
 0xcb5   :  { %1181 = vrot.lane.b32.xlu1 %v3011_v18, %s3427_s8 }
 0xcc7   :  { %v1085_v20 = vpop.f32.mrf.mxu2 }
 0xcc8   :  { %v1089_v56 = vrot.slane %v1085_v20, 6 }
 0xcca   :  { %v1091_v21 = vadd.f32 %v1089_v56, %v1065_v57  ;;  %v1242_v56 = vld [vmem:[#allocation3] sm:$0xc] }
 0xccc   :  { %3012 = vtanh.f32 %v1091_v21  ;;  %v2861_v11 = vmul.f32 -1.442695, %v1091_v21 }
 0xccd   :  { %3014 = vpow2.f32 %v2862_v10  ;;  %v1212_v10 = vld [vmem:[#allocation3 + $0x18] sm:$0x30] }
 0xcce   :  { %3016 = vpow2.f32 %v2861_v11 }
 0xcd2   :  { %v3013_v58 = vpop.eup %3012 }
 0xcd3   :  { %1167 = vrot.lane.b32.xlu2 %v3013_v58, %s3427_s8  ;;  %v3015_v12 = vpop.eup %3014 }
 0xcd4   :  { %v1144_v25 = vadd.f32 1.0, %v3015_v12  ;;  %v3017_v14 = vpop.eup %3016 }
 0xcd5   :  { %v1125_v59 = vadd.f32 1.0, %v3017_v14 }
 0xcd6   :  { %3018 = vrcp.f32 %v1144_v25  ;;  %v1156_v4 = vand.u32 2147483648, %v1144_v25  ;;  %vm1150_vm3 = vweird.f32 %v1144_v25  ;;  %v1154_v5 = vand.u32 2147483647, %v1144_v25 }
 0xcd7   :  { %3020 = vrcp.f32 %v1125_v59  ;;  %v1137_v16 = vand.u32 2147483648, %v1125_v59  ;;  %vm1131_vm8 = vweird.f32 %v1125_v59  ;;  %v1135_v19 = vand.u32 2147483647, %v1125_v59 }
 0xcd8   :  { %v1157_v8 = vor.u32 1.1754944e-38, %v1156_v4  ;;  %vm1155_vm6 = vcmp.eq.f32.partialorder %v1154_v5, 8.507059e+37 }
 0xcd9   :  { %v1138_v23 = vor.u32 1.1754944e-38, %v1137_v16  ;;  %vm1136_vm10 = vcmp.eq.f32.partialorder %v1135_v19, 8.507059e+37 }
 0xcdc   :  { %v3019_v60 = vpop.eup %3018 }
 0xcdd   :  { %v1146_v61 = vmul.f32 %v3019_v60, %v1144_v25  ;;  %v3021_v62 = vpop.eup %3020  ;;  %vm1151_vm2 = vweird.f32 %v3019_v60 }
 0xcde   :  { %v1127_v0 = vmul.f32 %v3021_v62, %v1125_v59  ;;  %vm1152_vm5 = vmor %vm1150_vm3, %vm1151_vm2  ;;  %vm1132_vm7 = vweird.f32 %v3021_v62 }
 0xcdf   :  { %v1147_v63 = vsub.f32 1.0, %v1146_v61  ;;  %vm1133_vm9 = vmor %vm1131_vm8, %vm1132_vm7 }
 0xce0   :  { %v1128_v2 = vsub.f32 1.0, %v1127_v0 }
 0xce1   :  { %v1148_v1 = vmul.f32 %v3019_v60, %v1147_v63 }
 0xce2   :  { %v1129_v6 = vmul.f32 %v3021_v62, %v1128_v2 }
 0xce3   :  { %v1149_v3 = vadd.f32 %v3019_v60, %v1148_v1 }
 0xce4   :  { %v1130_v9 = vadd.f32 %v3021_v62, %v1129_v6 }
 0xce5   :  { %v1153_v7 = vsel %vm1152_vm5, %v3019_v60, %v1149_v3 }
 0xce6   :  { %v1158_v15 = vsel %vm1155_vm6, %v1157_v8, %v1153_v7  ;;  %v1134_v22 = vsel %vm1133_vm9, %v3021_v62, %v1130_v9 }
 0xce7   :  { %v1139_v24 = vsel %vm1136_vm10, %v1138_v23, %v1134_v22  ;;  %v1179_v30 = vmul.f32 %v1177_v29, %v1158_v15 }
 0xce8   :  { %v1165_v31 = vmul.f32 %v1163_v40, %v1139_v24 }
 0xd27   :  { %v1182_v13 = vpop.permute.xlu1 %1181 }
 0xd28   :  { %v1184_v17 = vmul.f32 %v1182_v13, %v1158_v15 }
 0xd2a   :  { %1186 = vrot.lane.b32.xlu0 %v1184_v17, %s3427_s8 }
 0xd2d   :  { %v1168_v26 = vpop.permute.xlu2 %1167 }
 0xd2e   :  { %v1170_v27 = vmul.f32 %v1168_v26, %v1139_v24 }
 0xd30   :  { %1172 = vrot.lane.b32.xlu1 %v1170_v27, %s3427_s8 }
 0xd9c   :  { %v1187_v34 = vpop.permute.xlu0 %1186 }
 0xd9d   :  { %v3784_v37 = vadd.f32 %v1187_v34, %v1179_v30 }
 0xd9f   :  { %3022 = vtanh.f32 %v3784_v37 }
 0xda2   :  { %v1173_v46 = vpop.permute.xlu1 %1172 }
 0xda3   :  { %v3788_v36 = vadd.f32 %v1173_v46, %v1165_v31  ;;  %v1327_v31 = vrot.slane %v3784_v37, 2 }
 0xda5   :  { %v3023_v33 = vpop.eup %3022  ;;  %3024 = vtanh.f32 %v3788_v36 }
 0xda6   :  { %1198 = vrot.lane.b32.xlu2 %v3023_v33, %s3427_s8 }
 0xdab   :  { %v3025_v35 = vpop.eup %3024 }
 0xdac   :  { %1192 = vrot.lane.b32.xlu0 %v3025_v35, %s3427_s8 }
 0xe00   :  { %v1199_v32 = vpop.permute.xlu2 %1198 }
 0xe01   :  { %v3793_v45 = vmul.f32 %v1199_v32, %v1158_v15 }
 0xe03   :  { %v1243_v39 = vrot.slane %v3793_v45, 4 }
 0xe05   :  { %1244 = vrot.lane.b32.xlu1 %v1243_v39, %s3428_s22  ;;  %v1313_v39 = vrot.slane %v3788_v36, 6 }
 0xe1e   :  { %v1193_v43 = vpop.permute.xlu0 %1192 }
 0xe1f   :  { %v3797_v52 = vmul.f32 %v1193_v43, %v1139_v24 }
 0xe21   :  { %v1213_v53 = vrot.slane %v3797_v52, 2 }
 0xe23   :  { %1214 = vrot.lane.b32.xlu2 %v1213_v53, %s3428_s22 }
 0xe77   :  { %v1245_v54 = vpop.permute.xlu1 %1244 }
 0xe78   :  { %2864 = vmatmul.msk.f32.vlgmr.msra.gmra.mxu1 %vm276_vm4, %v1245_v54 }
 0xe7d   :  { %v1215_v55 = vpop.permute.xlu2 %1214 }
 0xe7e   :  { %2863 = vmatmul.msk.f32.vlgmr.msrb.gmra.mxu0 %vm276_vm4, %v1215_v55 }
 0xef5   :  { %v1265_v18 = vpop.f32.mrf.mxu1 }
 0xef6   :  { %v1269_v20 = vrot.slane %v1265_v18, 6 }
 0xef8   :  { %v1271_v57 = vadd.f32 %v1269_v20, %v1242_v56 }
 0xefa   :  { %3026 = vtanh.f32 %v1271_v57  ;;  %v2866_v14 = vmul.f32 -1.442695, %v1271_v57 }
 0xefb   :  { %v1235_v21 = vpop.f32.mrf.mxu0 }
 0xefc   :  { %v1239_v58 = vrot.slane %v1235_v21, 4 }
 0xefe   :  { %v1241_v11 = vadd.f32 %v1239_v58, %v1212_v10  ;;  %v1392_v10 = vld [vmem:[#allocation3] sm:$0x3] }
 0xf00   :  { %v3027_v12 = vpop.eup %3026  ;;  %3028 = vtanh.f32 %v1241_v11  ;;  %v2865_v59 = vmul.f32 -1.442695, %v1241_v11 }
 0xf01   :  { %1331 = vrot.lane.b32.xlu0 %v3027_v12, %s3427_s8  ;;  %3030 = vpow2.f32 %v2866_v14 }
 0xf02   :  { %3032 = vpow2.f32 %v2865_v59  ;;  %v1362_v59 = vld [vmem:[#allocation3 + $0x18] sm:$0xc0] }
 0xf06   :  { %v3029_v25 = vpop.eup %3028 }
 0xf07   :  { %1317 = vrot.lane.b32.xlu1 %v3029_v25, %s3427_s8  ;;  %v3031_v60 = vpop.eup %3030 }
 0xf08   :  { %v1294_v61 = vadd.f32 1.0, %v3031_v60  ;;  %v3033_v62 = vpop.eup %3032 }
 0xf09   :  { %v1275_v63 = vadd.f32 1.0, %v3033_v62 }
 0xf0a   :  { %3034 = vrcp.f32 %v1294_v61  ;;  %v1306_v8 = vand.u32 2147483648, %v1294_v61  ;;  %vm1300_vm12 = vweird.f32 %v1294_v61  ;;  %v1304_v9 = vand.u32 2147483647, %v1294_v61 }
 0xf0b   :  { %3036 = vrcp.f32 %v1275_v63  ;;  %v1287_v23 = vand.u32 2147483648, %v1275_v63  ;;  %vm1281_vm1 = vweird.f32 %v1275_v63  ;;  %v1285_v26 = vand.u32 2147483647, %v1275_v63 }
 0xf0c   :  { %v1307_v16 = vor.u32 1.1754944e-38, %v1306_v8  ;;  %vm1305_vm15 = vcmp.eq.f32.partialorder %v1304_v9, 8.507059e+37 }
 0xf0d   :  { %v1288_v29 = vor.u32 1.1754944e-38, %v1287_v23  ;;  %vm1286_vm3 = vcmp.eq.f32.partialorder %v1285_v26, 8.507059e+37 }
 0xf10   :  { %v3035_v0 = vpop.eup %3034 }
 0xf11   :  { %v1296_v1 = vmul.f32 %v3035_v0, %v1294_v61  ;;  %v3037_v2 = vpop.eup %3036  ;;  %vm1301_vm11 = vweird.f32 %v3035_v0 }
 0xf12   :  { %v1277_v4 = vmul.f32 %v3037_v2, %v1275_v63  ;;  %vm1302_vm14 = vmor %vm1300_vm12, %vm1301_vm11  ;;  %vm1282_vm0 = vweird.f32 %v3037_v2 }
 0xf13   :  { %v1297_v3 = vsub.f32 1.0, %v1296_v1  ;;  %vm1283_vm2 = vmor %vm1281_vm1, %vm1282_vm0  ;;  %vm762_vm0 = vcmask 259076   ;;  %vm616_vm1 = vcmask 521476  }
 0xf14   :  { %v1278_v6 = vsub.f32 1.0, %v1277_v4 }
 0xf15   :  { %v1298_v5 = vmul.f32 %v3035_v0, %v1297_v3 }
 0xf16   :  { %v1279_v13 = vmul.f32 %v3037_v2, %v1278_v6 }
 0xf17   :  { %v1299_v7 = vadd.f32 %v3035_v0, %v1298_v5 }
 0xf18   :  { %v1280_v17 = vadd.f32 %v3037_v2, %v1279_v13 }
 0xf19   :  { %v1303_v15 = vsel %vm1302_vm14, %v3035_v0, %v1299_v7  ;;  %vm610_vm14 = vcmask 257026  }
 0xf1a   :  { %v1308_v22 = vsel %vm1305_vm15, %v1307_v16, %v1303_v15  ;;  %v1284_v27 = vsel %vm1283_vm2, %v3037_v2, %v1280_v17  ;;  %vm768_vm15 = vcmask 519426   ;;  %vm911_vm2 = vcmask 261126  }
 0xf1b   :  { %v1289_v34 = vsel %vm1286_vm3, %v1288_v29, %v1284_v27  ;;  %v1329_v46 = vmul.f32 %v1327_v31, %v1308_v22  ;;  %vm467_vm3 = vcmask 523526  }
 0xf1c   :  { %v1315_v43 = vmul.f32 %v1313_v39, %v1289_v34 }
 0xf73   :  { %v1332_v19 = vpop.permute.xlu0 %1331 }
 0xf74   :  { %v1334_v24 = vmul.f32 %v1332_v19, %v1308_v22 }
 0xf76   :  { %1336 = vrot.lane.b32.xlu2 %v1334_v24, %s3427_s8 }
 0xf79   :  { %v1318_v30 = vpop.permute.xlu1 %1317 }
 0xf7a   :  { %v1320_v40 = vmul.f32 %v1318_v30, %v1289_v34 }
 0xf7c   :  { %1322 = vrot.lane.b32.xlu0 %v1320_v40, %s3427_s8 }
 0xfd0   :  { %v1337_v33 = vpop.permute.xlu2 %1336 }
 0xfd1   :  { %v3808_v35 = vadd.f32 %v1337_v33, %v1329_v46 }
 0xfd3   :  { %3038 = vtanh.f32 %v3808_v35 }
 0xfd9   :  { %v3039_v32 = vpop.eup %3038 }
 0xfda   :  { %1348 = vrot.lane.b32.xlu1 %v3039_v32, %s3427_s8 }
 0xfee   :  { %v1323_v53 = vpop.permute.xlu0 %1322 }
 0xfef   :  { %v3813_v54 = vadd.f32 %v1323_v53, %v1315_v43  ;;  %v1474_v43 = vrot.slane %v3808_v35, 2 }
 0xff1   :  { %3040 = vtanh.f32 %v3813_v54 }
 0xff7   :  { %v3041_v55 = vpop.eup %3040 }
 0xff8   :  { %1342 = vrot.lane.b32.xlu2 %v3041_v55, %s3427_s8 }
0x104c   :  { %v1349_v37 = vpop.permute.xlu1 %1348 }
0x104d   :  { %v3817_v18 = vmul.f32 %v1349_v37, %v1308_v22 }
0x104f   :  { %v1393_v20 = vrot.slane %v3817_v18, 2 }
0x1051   :  { %1394 = vrot.lane.b32.xlu0 %v1393_v20, %s3428_s22  ;;  %v1460_v20 = vrot.slane %v3813_v54, 6 }
0x1052   :  { %v1343_v56 = vpop.permute.xlu2 %1342 }
0x1053   :  { %v3821_v57 = vmul.f32 %v1343_v56, %v1289_v34 }
0x1055   :  { %v1363_v36 = vrot.slane %v3821_v57, 4 }
0x1057   :  { %1364 = vrot.lane.b32.xlu1 %v1363_v36, %s3428_s22 }
0x10c3   :  { %v1395_v21 = vpop.permute.xlu0 %1394 }
0x10c4   :  { %2868 = vmatmul.msk.f32.vlgmr.msrb.gmra.mxu3 %vm276_vm4, %v1395_v21 }
0x10c9   :  { %v1365_v58 = vpop.permute.xlu1 %1364 }
0x10ca   :  { %2867 = vmatmul.msk.f32.vlgmr.msrb.gmra.mxu2 %vm276_vm4, %v1365_v58 }
0x1147   :  { %v1415_v11 = vpop.f32.mrf.mxu3 }
0x1148   :  { %v1418_v12 = vadd.f32 %v1415_v11, %v1392_v10  ;;  %v1534_v10 = vld [vmem:[#allocation12 + $0x78] sm:$0xff]  ;;  %v1531_v11 = vld [vmem:[#allocation12 + $0x60] sm:$0xff] }
0x1149   :  { %1579 = vmatpush.msrb.mxu1 %v1534_v10 }
0x114a   :  { %3042 = vtanh.f32 %v1418_v12  ;;  %v2870_v63 = vmul.f32 -1.442695, %v1418_v12  ;;  %v1527_v12 = vld [vmem:[#allocation12 + $0x40] sm:$0xff] }
0x114d   :  { %v1385_v25 = vpop.f32.mrf.mxu2 }
0x114e   :  { %v1389_v14 = vrot.slane %v1385_v25, 2  ;;  %v1528_v25 = vld [vmem:[#allocation12 + $0x48] sm:$0xff] }
0x1150   :  { %v3043_v60 = vpop.eup %3042  ;;  %v1391_v61 = vadd.f32 %v1389_v14, %v1362_v59 }
0x1151   :  { %1478 = vrot.lane.b32.xlu2 %v3043_v60, %s3427_s8 }
0x1152   :  { %3044 = vtanh.f32 %v1391_v61  ;;  %v2869_v5 = vmul.f32 -1.442695, %v1391_v61 }
0x1153   :  { %3046 = vpow2.f32 %v2870_v63 }
0x1158   :  { %v3045_v62 = vpop.eup %3044 }
0x1159   :  { %1464 = vrot.lane.b32.xlu0 %v3045_v62, %s3427_s8  ;;  %v3047_v0 = vpop.eup %3046 }
0x115a   :  { %v1441_v1 = vadd.f32 1.0, %v3047_v0  ;;  %v1525_v0 = vld [vmem:[#allocation12 + $0x30] sm:$0xff] }
0x115c   :  { %3048 = vrcp.f32 %v1441_v1  ;;  %v1453_v8 = vand.u32 2147483648, %v1441_v1  ;;  %vm1447_vm6 = vweird.f32 %v1441_v1  ;;  %v1451_v9 = vand.u32 2147483647, %v1441_v1 }
0x115d   :  { %3050 = vpow2.f32 %v2869_v5  ;;  %v1522_v5 = vld [vmem:[#allocation12 + $0x18] sm:$0xff] }
0x115e   :  { %v1454_v16 = vor.u32 1.1754944e-38, %v1453_v8  ;;  %vm1452_vm8 = vcmp.eq.f32.partialorder %v1451_v9, 8.507059e+37  ;;  %v1520_v8 = vld [vmem:[#allocation12 + $0x8] sm:$0xff] }
0x115f   :  { %v3880_v9 = vld [vmem:[#allocation13 + $0x8] sm:$0xff] }
0x1162   :  { %v3049_v2 = vpop.eup %3048 }
0x1163   :  { %v1443_v3 = vmul.f32 %v3049_v2, %v1441_v1  ;;  %vm1448_vm5 = vweird.f32 %v3049_v2  ;;  %v3051_v13 = vpop.eup %3050  ;;  %v1526_v1 = vld [vmem:[#allocation12 + $0x38] sm:$0xff] }
0x1164   :  { %vm1449_vm7 = vmor %vm1447_vm6, %vm1448_vm5  ;;  %v1422_v17 = vadd.f32 1.0, %v3051_v13  ;;  %vm917_vm5 = vcmask 517376   ;;  %v3882_v13 = vld [vmem:[#allocation13] sm:$0xff]  ;;  %vm1541_vm6 = vcmask 523264  }
0x1165   :  { %v1444_v4 = vsub.f32 1.0, %v1443_v3  ;;  %v1524_v3 = vld [vmem:[#allocation12 + $0x28] sm:$0xff] }
0x1166   :  { %3052 = vrcp.f32 %v1422_v17  ;;  %v1434_v34 = vand.u32 2147483648, %v1422_v17  ;;  %vm1428_vm10 = vweird.f32 %v1422_v17  ;;  %v1432_v40 = vand.u32 2147483647, %v1422_v17 }
0x1167   :  { %v1445_v6 = vmul.f32 %v3049_v2, %v1444_v4  ;;  %v1521_v4 = vld [vmem:[#allocation12 + $0x10] sm:$0xff] }
0x1168   :  { %v1435_v46 = vor.u32 1.1754944e-38, %v1434_v34  ;;  %vm1433_vm12 = vcmp.eq.f32.partialorder %v1432_v40, 8.507059e+37 }
0x1169   :  { %v1446_v7 = vadd.f32 %v3049_v2, %v1445_v6  ;;  %v3874_v6 = vld [vmem:[#allocation13 + $0x18] sm:$0xff] }
0x116a   :  { %1611 = vmatpush.msra.mxu2 %v3874_v6 }
0x116b   :  { %v1450_v15 = vsel %vm1449_vm7, %v3049_v2, %v1446_v7  ;;  %v1523_v2 = vld [vmem:[#allocation12 + $0x20] sm:$0xff]  ;;  %v3876_v7 = vld [vmem:[#allocation13 + $0x10] sm:$0xff] }
0x116c   :  { %v1455_v19 = vsel %vm1452_vm8, %v1454_v16, %v1450_v15  ;;  %v3053_v24 = vpop.eup %3052  ;;  %1612 = vmatpush.msra.mxu2 %v3876_v7  ;;  %v3900_v16 = vld [vmem:[#allocation15 + $0x18] sm:$0xff] }
0x116d   :  { %v1424_v26 = vmul.f32 %v3053_v24, %v1422_v17  ;;  %vm1429_vm9 = vweird.f32 %v3053_v24  ;;  %v1476_v53 = vmul.f32 %v1474_v43, %v1455_v19  ;;  %v3902_v17 = vld [vmem:[#allocation15 + $0x10] sm:$0xff]  ;;  %1633 = vmatpush.msra.mxu3 %v3900_v16 }
0x116e   :  { %vm1430_vm11 = vmor %vm1428_vm10, %vm1429_vm9  ;;  %1613 = vmatpush.msra.mxu2 %v3880_v9 }
0x116f   :  { %v1425_v27 = vsub.f32 1.0, %v1424_v26  ;;  %1634 = vmatpush.msra.mxu3 %v3902_v17 }
0x1170   :  { %1614 = vmatpush.msra.mxu2 %v3882_v13 }
0x1171   :  { %v1426_v29 = vmul.f32 %v3053_v24, %v1425_v27  ;;  %1615 = vmatmul.f32.vlgmr.msra.gmra.mxu2 %v3426_v28  ;;  %v1535_v27 = vld [vmem:[%s4203_s12] sm:$0x3] }
0x1172   :  { %1744 = vmatpush.msrb.mxu2 %v3874_v6 }
0x1173   :  { %v1427_v30 = vadd.f32 %v3053_v24, %v1426_v29  ;;  %v1537_v29 = vperm.slane %v1535_v27, 0 }
0x1174   :  { %1745 = vmatpush.msrb.mxu2 %v3876_v7 }
0x1175   :  { %v1431_v31 = vsel %vm1430_vm11, %v3053_v24, %v1427_v30  ;;  %v3915_v24 = vld [vmem:[#allocation15] sm:$0xff]  ;;  %v1538_v30 = vperm.slane %v1535_v27, 1 }
0x1176   :  { %v1436_v32 = vsel %vm1433_vm12, %v1435_v46, %v1431_v31  ;;  %1746 = vmatpush.msrb.mxu2 %v3880_v9 }
0x1177   :  { %v1462_v56 = vmul.f32 %v1460_v20, %v1436_v32 }
0x1178   :  { %1747 = vmatpush.msrb.mxu2 %v3882_v13 }
0x117a   :  { %1894 = vmatpush.msra.mxu2 %v3874_v6 }
0x117c   :  { %1895 = vmatpush.msra.mxu2 %v3876_v7 }
0x117e   :  { %1896 = vmatpush.msra.mxu2 %v3880_v9 }
0x1180   :  { %1897 = vmatpush.msra.mxu2 %v3882_v13 }
0x11ab   :  { %v1479_v22 = vpop.permute.xlu2 %1478 }
0x11ac   :  { %v1481_v23 = vmul.f32 %v1479_v22, %v1455_v19 }
0x11ae   :  { %1483 = vrot.lane.b32.xlu1 %v1481_v23, %s3427_s8 }
0x11cb   :  { %v1465_v33 = vpop.permute.xlu0 %1464 }
0x11cc   :  { %v1467_v39 = vmul.f32 %v1465_v33, %v1436_v32 }
0x11ce   :  { %1469 = vrot.lane.b32.xlu2 %v1467_v39, %s3427_s8 }
0x11d6   :  { %607 = vrot.lane.b32.xlu2 %v3685_v44, %s3428_s22 }
0x11de   :  { %1061 = vrot.lane.b32.xlu2 %v3769_v41, %s3429_s23 }
0x11e6   :  { %765 = vrot.lane.b32.xlu2 %v3713_v48, %s3429_s23 }
0x11f4   :  { %v1616_v33 = vpop.f32.mrf.mxu2 }
0x1220   :  { %v1484_v55 = vpop.permute.xlu1 %1483 }
0x1221   :  { %v1486_v37 = vadd.f32 %v1484_v55, %v1476_v53 }
0x1223   :  { %3054 = vtanh.f32 %v1486_v37 }
0x1228   :  { %v1470_v36 = vpop.permute.xlu2 %1469 }
0x1229   :  { %v3055_v21 = vpop.eup %3054  ;;  %v1472_v58 = vadd.f32 %v1470_v36, %v1462_v56 }
0x122a   :  { %1495 = vrot.lane.b32.xlu0 %v3055_v21, %s3427_s8 }
0x122b   :  { %3056 = vtanh.f32 %v1472_v58 }
0x1230   :  { %v608_v44 = vpop.permute.xlu2 %607 }
0x1231   :  { %v3057_v41 = vpop.eup %3056  ;;  %611 = vst.msk [vmem:[#allocation2] sm:$0xc] %vm610_vm14, %v608_v44 }
0x1232   :  { %759 = vrot.lane.b32.xlu0 %v3717_v50, %s3428_s22  ;;  %1489 = vrot.lane.b32.xlu1 %v3057_v41, %s3427_s8 }
0x1238   :  { %v1062_v48 = vpop.permute.xlu2 %1061 }
0x123a   :  { %1208 = vrot.lane.b32.xlu0 %v3793_v45, %s3429_s23  ;;  %908 = vrot.lane.b32.xlu1 %v3749_v49, %s3428_s22 }
0x1240   :  { %v766_v35 = vpop.permute.xlu2 %765 }
0x1241   :  { %769 = vst.msk [vmem:[#allocation2 + $0x8] sm:$0xc] %vm768_vm15, %v766_v35 }
0x1242   :  { %464 = vrot.lane.b32.xlu0 %v3651_v38, %s3429_s23  ;;  %1358 = vrot.lane.b32.xlu1 %v3817_v18, %s3429_s23  ;;  %v1533_v18 = vld [vmem:[#allocation12 + $0x70] sm:$0xff] }
0x1243   :  { %1556 = vmatpush.msra.mxu0 %v1533_v18 }
0x1245   :  { %1557 = vmatpush.msra.mxu0 %v1531_v11 }
0x124a   :  { %914 = vrot.lane.b32.xlu0 %v3745_v47, %s3429_s23  ;;  %613 = vrot.lane.b32.xlu1 %v3681_v42, %s3429_s23  ;;  %v1532_v47 = vld [vmem:[#allocation12 + $0x68] sm:$0xff]  ;;  %v1529_v42 = vld [vmem:[#allocation12 + $0x50] sm:$0xff] }
0x124b   :  { %1580 = vmatpush.msrb.mxu1 %v1532_v47  ;;  %1558 = vmatpush.msra.mxu0 %v1529_v42 }
0x124d   :  { %1559 = vmatpush.msra.mxu0 %v1527_v12 }
0x124f   :  { %1560 = vmatpush.msra.mxu0 %v1525_v0 }
0x1251   :  { %1561 = vmatpush.msra.mxu0 %v1523_v2 }
0x1252   :  { %1203 = vrot.lane.b32.xlu1 %v3797_v52, %s3428_s22  ;;  %v1530_v52 = vld [vmem:[#allocation12 + $0x58] sm:$0xff] }
0x1253   :  { %1581 = vmatpush.msrb.mxu1 %v1530_v52  ;;  %1562 = vmatpush.msra.mxu0 %v1521_v4 }
0x1255   :  { %1582 = vmatpush.msrb.mxu1 %v1528_v25 }
0x1257   :  { %1583 = vmatpush.msrb.mxu1 %v1526_v1 }
0x1259   :  { %1584 = vmatpush.msrb.mxu1 %v1524_v3 }
0x125b   :  { %1585 = vmatpush.msrb.mxu1 %v1522_v5 }
0x125d   :  { %1586 = vmatpush.msrb.mxu1 %v1520_v8 }
0x125f   :  { %2074 = vmatpush.msra.mxu1 %v3900_v16 }
0x1261   :  { %2075 = vmatpush.msra.mxu1 %v3902_v17 }
0x129c   :  { %v1496_v50 = vpop.permute.xlu0 %1495 }
0x129d   :  { %v1498_v49 = vmul.f32 %v1496_v50, %v1455_v19  ;;  %v3906_v19 = vld [vmem:[#allocation15 + $0x8] sm:$0xff] }
0x129e   :  { %1635 = vmatpush.msra.mxu3 %v3906_v19  ;;  %2076 = vmatpush.msra.mxu1 %v3906_v19 }
0x129f   :  { %1505 = vrot.lane.b32.xlu2 %v1498_v49, %s3429_s23 }
0x12a0   :  { %1636 = vmatpush.msra.mxu3 %v3915_v24  ;;  %2077 = vmatpush.msra.mxu1 %v3915_v24 }
0x12a1   :  { %1637 = vmatmul.f32.vlgmr.msra.gmra.mxu3 %v3426_v28 }
0x12a2   :  { %1774 = vmatpush.msrb.mxu3 %v3900_v16 }
0x12a4   :  { %v760_v45 = vpop.permute.xlu0 %759  ;;  %v1490_v54 = vpop.permute.xlu1 %1489  ;;  %1775 = vmatpush.msrb.mxu3 %v3902_v17 }
0x12a5   :  { %763 = vst.msk [vmem:[#allocation2] sm:$0x30] %vm762_vm0, %v760_v45  ;;  %v1492_v38 = vmul.f32 %v1490_v54, %v1436_v32 }
0x12a6   :  { %1776 = vmatpush.msrb.mxu3 %v3906_v19 }
0x12a7   :  { %1353 = vrot.lane.b32.xlu2 %v3821_v57, %s3428_s22  ;;  %1500 = vrot.lane.b32.xlu0 %v1492_v38, %s3428_s22 }
0x12a8   :  { %1777 = vmatpush.msrb.mxu3 %v3915_v24 }
0x12aa   :  { %1924 = vmatpush.msra.mxu3 %v3900_v16 }
0x12ac   :  { %v1209_v14 = vpop.permute.xlu0 %1208  ;;  %v909_v59 = vpop.permute.xlu1 %908  ;;  %1925 = vmatpush.msra.mxu3 %v3902_v17 }
0x12ad   :  { %1211 = vst.msk [vmem:[#allocation2] sm:$0x30] %vm616_vm1, %v1209_v14 }
0x12ae   :  { %912 = vst.msk [vmem:[#allocation2] sm:$0xc0] %vm911_vm2, %v909_v59  ;;  %1926 = vmatpush.msra.mxu3 %v3906_v19 }
0x12af   :  { %1064 = vst.msk [vmem:[#allocation2] sm:$0xc0] %vm467_vm3, %v1062_v48 }
0x12b0   :  { %1927 = vmatpush.msra.mxu3 %v3915_v24 }
0x12b4   :  { %v465_v57 = vpop.permute.xlu0 %464  ;;  %v1359_v60 = vpop.permute.xlu1 %1358 }
0x12b5   :  { %468 = vst.msk [vmem:[#allocation2 + $0x8] sm:$0xc0] %vm467_vm3, %v465_v57 }
0x12b6   :  { %1361 = vst.msk [vmem:[#allocation2] sm:$0xc] %vm768_vm15, %v1359_v60 }
0x12bc   :  { %v915_v61 = vpop.permute.xlu0 %914  ;;  %v614_v62 = vpop.permute.xlu1 %613 }
0x12bd   :  { %918 = vst.msk [vmem:[#allocation2 + $0x8] sm:$0x3] %vm917_vm5, %v915_v61 }
0x12be   :  { %1059 = vst.msk [vmem:[#allocation2 + $0x8] sm:$0x3] %vm461_vm13, %v3775_v51  ;;  %v1519_v51 = vld [vmem:[#allocation12] sm:$0xff] }
0x12bf   :  { %617 = vst.msk [vmem:[#allocation2 + $0x8] sm:$0x30] %vm616_vm1, %v614_v62  ;;  %1563 = vmatpush.msra.mxu0 %v1519_v51 }
0x12c1   :  { %2044 = vmatpush.msrb.mxu0 %v3874_v6 }
0x12c3   :  { %2045 = vmatpush.msrb.mxu0 %v3876_v7 }
0x12c4   :  { %v1204_v63 = vpop.permute.xlu1 %1203 }
0x12c5   :  { %1206 = vst.msk [vmem:[#allocation2 + $0x8] sm:$0xc] %vm610_vm14, %v1204_v63  ;;  %2046 = vmatpush.msrb.mxu0 %v3880_v9 }
0x12c7   :  { %2047 = vmatpush.msrb.mxu0 %v3882_v13 }
0x12f9   :  { %v1506_v15 = vpop.permute.xlu2 %1505 }
0x12fa   :  { %1508 = vst.msk [vmem:[#allocation2] sm:$0x3] %vm917_vm5, %v1506_v15 }
0x1301   :  { %v1354_v22 = vpop.permute.xlu2 %1353  ;;  %v1509_v23 = vld [vmem:[#allocation2] sm:$0xff] }
0x1302   :  { %1356 = vst.msk [vmem:[#allocation2 + $0x8] sm:$0x30] %vm762_vm0, %v1354_v22  ;;  %2871 = vmatmul.msk.f32.vlgmr.msra.gmra.mxu0 %vm1541_vm6, %v1509_v23  ;;  %2873 = vmatmul.msk.f32.vlgmr.msrb.gmra.mxu1 %vm1541_vm6, %v1509_v23 }
0x1303   :  { %2334 = vmatpush.msra.mxu0 %v3874_v6  ;;  %2364 = vmatpush.msrb.mxu1 %v3900_v16 }
0x1305   :  { %2335 = vmatpush.msra.mxu0 %v3876_v7  ;;  %2365 = vmatpush.msrb.mxu1 %v3902_v17 }
0x1307   :  { %2336 = vmatpush.msra.mxu0 %v3880_v9  ;;  %2366 = vmatpush.msrb.mxu1 %v3906_v19 }
0x1309   :  { %2337 = vmatpush.msra.mxu0 %v3882_v13  ;;  %2367 = vmatpush.msrb.mxu1 %v3915_v24 }
0x1319   :  { %v1501_v28 = vpop.permute.xlu0 %1500 }
0x131a   :  { %1503 = vst.msk [vmem:[#allocation2 + $0x8] sm:$0xc0] %vm911_vm2, %v1501_v28 }
0x1321   :  { %v1510_v26 = vld [vmem:[#allocation2 + $0x8] sm:$0xff] }
0x1322   :  { %2872 = vmatmul.msk.f32.gmra.mxu0 %vm1541_vm6, %v1510_v26  ;;  %2874 = vmatmul.msk.f32.gmra.mxu1 %vm1541_vm6, %v1510_v26 }
0x1324   :  { %v1638_v56 = vpop.f32.mrf.mxu3 }
0x1325   :  { %v1642_v36 = vrot.slane %v1638_v56, 2 }
0x137f   :  { %v1565_v34 = vpop.f32.mrf.mxu0  ;;  %v1588_v40 = vpop.f32.mrf.mxu1 }
0x1380   :  { %v1566_v31 = vadd.f32 %v1565_v34, %v1537_v29  ;;  %v1589_v46 = vadd.f32 %v1588_v40, %v1538_v30 }
0x1382   :  { %1594 = vst [vmem:[#allocation3 + $0x10] sm:$0xff] %v1566_v31 }
0x1383   :  { %1595 = vst [vmem:[#allocation3] sm:$0xff] %v1589_v46 }
0x1389   :  { %v1598_v32 = vld [vmem:[#allocation3 + $0x10] sm:$0x3] }
0x138a   :  { %v1619_v39 = vadd.f32 %v1616_v33, %v1598_v32 }
0x138c   :  { %3058 = vtanh.f32 %v1619_v39  ;;  %v2875_v41 = vmul.f32 -1.442695, %v1619_v39 }
0x1392   :  { %v3059_v43 = vpop.eup %3058 }
0x1393   :  { %1687 = vrot.lane.b32.xlu2 %v3059_v43, %s3427_s8 }
0x139f   :  { %v1568_v53 = vpop.f32.mrf.mxu0  ;;  %v1591_v55 = vpop.f32.mrf.mxu1 }
0x13a0   :  { %v1569_v37 = vadd.f32 %v1568_v53, %v1537_v29  ;;  %v1592_v20 = vadd.f32 %v1591_v55, %v1538_v30  ;;  %v1729_v53 = vld [vmem:[#allocation3 + $0x10] sm:$0xc] }
0x13a2   :  { %1596 = vst [vmem:[#allocation3 + $0x18] sm:$0xff] %v1569_v37 }
0x13a3   :  { %1597 = vst [vmem:[#allocation3 + $0x8] sm:$0xff] %v1592_v20 }
0x13aa   :  { %v1620_v21 = vld [vmem:[#allocation3 + $0x8] sm:$0xc0] }
0x13ab   :  { %v1644_v58 = vadd.f32 %v1642_v36, %v1620_v21  ;;  %v1756_v36 = vld [vmem:[#allocation3 + $0x8] sm:$0x30] }
0x13ad   :  { %3060 = vtanh.f32 %v1644_v58  ;;  %v2876_v25 = vmul.f32 -1.442695, %v1644_v58 }
0x13ae   :  { %3062 = vpow2.f32 %v2875_v41 }
0x13b3   :  { %v3061_v44 = vpop.eup %3060 }
0x13b4   :  { %1698 = vrot.lane.b32.xlu1 %v3061_v44, %s3427_s8  ;;  %v3063_v48 = vpop.eup %3062 }
0x13b5   :  { %v1648_v35 = vadd.f32 1.0, %v3063_v48 }
0x13b7   :  { %3064 = vrcp.f32 %v1648_v35  ;;  %v1660_v18 = vand.u32 2147483648, %v1648_v35  ;;  %vm1654_vm8 = vweird.f32 %v1648_v35  ;;  %v1658_v10 = vand.u32 2147483647, %v1648_v35 }
0x13b8   :  { %3066 = vpow2.f32 %v2876_v25 }
0x13b9   :  { %v1661_v47 = vor.u32 1.1754944e-38, %v1660_v18  ;;  %vm1659_vm10 = vcmp.eq.f32.partialorder %v1658_v10, 8.507059e+37 }
0x13bd   :  { %v3065_v50 = vpop.eup %3064 }
0x13be   :  { %v1650_v49 = vmul.f32 %v3065_v50, %v1648_v35  ;;  %vm1655_vm7 = vweird.f32 %v3065_v50  ;;  %v3067_v14 = vpop.eup %3066 }
0x13bf   :  { %vm1656_vm9 = vmor %vm1654_vm8, %vm1655_vm7  ;;  %v1667_v59 = vadd.f32 1.0, %v3067_v14 }
0x13c0   :  { %v1651_v45 = vsub.f32 1.0, %v1650_v49 }
0x13c1   :  { %3068 = vrcp.f32 %v1667_v59  ;;  %v1679_v0 = vand.u32 2147483648, %v1667_v59  ;;  %vm1673_vm12 = vweird.f32 %v1667_v59  ;;  %v1677_v1 = vand.u32 2147483647, %v1667_v59 }
0x13c2   :  { %v1652_v54 = vmul.f32 %v3065_v50, %v1651_v45 }
0x13c3   :  { %v1680_v3 = vor.u32 1.1754944e-38, %v1679_v0  ;;  %vm1678_vm8 = vcmp.eq.f32.partialorder %v1677_v1, 8.507059e+37 }
0x13c4   :  { %v1653_v38 = vadd.f32 %v3065_v50, %v1652_v54 }
0x13c6   :  { %v1657_v11 = vsel %vm1656_vm9, %v3065_v50, %v1653_v38 }
0x13c7   :  { %v1662_v42 = vsel %vm1659_vm10, %v1661_v47, %v1657_v11  ;;  %v3069_v57 = vpop.eup %3068 }
0x13c8   :  { %v1669_v60 = vmul.f32 %v3069_v57, %v1667_v59  ;;  %vm1674_vm11 = vweird.f32 %v3069_v57  ;;  %v1685_v8 = vmul.f32 0.0, %v1662_v42 }
0x13c9   :  { %vm1675_vm7 = vmor %vm1673_vm12, %vm1674_vm11 }
0x13ca   :  { %v1670_v61 = vsub.f32 1.0, %v1669_v60 }
0x13cc   :  { %v1671_v62 = vmul.f32 %v3069_v57, %v1670_v61 }
0x13ce   :  { %v1672_v63 = vadd.f32 %v3069_v57, %v1671_v62 }
0x13d0   :  { %v1676_v2 = vsel %vm1675_vm7, %v3069_v57, %v1672_v63 }
0x13d1   :  { %v1681_v5 = vsel %vm1678_vm8, %v1680_v3, %v1676_v2 }
0x13d2   :  { %v1696_v28 = vmul.f32 0.0, %v1681_v5 }
0x13ed   :  { %v1688_v52 = vpop.permute.xlu2 %1687 }
0x13ee   :  { %v1690_v12 = vmul.f32 %v1688_v52, %v1662_v42 }
0x13f0   :  { %1692 = vrot.lane.b32.xlu1 %v1690_v12, %s3427_s8 }
0x1426   :  { %v1699_v4 = vpop.permute.xlu1 %1698 }
0x1427   :  { %v1701_v51 = vmul.f32 %v1699_v4, %v1681_v5 }
0x1429   :  { %1703 = vrot.lane.b32.xlu0 %v1701_v51, %s3427_s8 }
0x1462   :  { %v1693_v15 = vpop.permute.xlu1 %1692 }
0x1463   :  { %v3946_v22 = vadd.f32 %v1693_v15, %v1685_v8 }
0x1465   :  { %3070 = vtanh.f32 %v3946_v22  ;;  %v1827_v51 = vrot.slane %v3946_v22, 6 }
0x146b   :  { %v3071_v23 = vpop.eup %3070 }
0x146c   :  { %1709 = vrot.lane.b32.xlu0 %v3071_v23, %s3427_s8 }
0x149b   :  { %v1704_v26 = vpop.permute.xlu0 %1703 }
0x149c   :  { %v3950_v27 = vadd.f32 %v1704_v26, %v1696_v28 }
0x149e   :  { %3072 = vtanh.f32 %v3950_v27  ;;  %v1841_v26 = vrot.slane %v3950_v27, 2 }
0x14a4   :  { %v3073_v29 = vpop.eup %3072 }
0x14a5   :  { %1715 = vrot.lane.b32.xlu2 %v3073_v29, %s3427_s8 }
0x14de   :  { %v1710_v30 = vpop.permute.xlu0 %1709 }
0x14df   :  { %v1712_v34 = vmul.f32 %v1710_v30, %v1662_v42 }
0x14e1   :  { %1720 = vrot.lane.b32.xlu2 %v1712_v34, %s3428_s22 }
0x14ff   :  { %v1716_v40 = vpop.permute.xlu2 %1715 }
0x1500   :  { %v3955_v31 = vmul.f32 %v1716_v40, %v1681_v5 }
0x1502   :  { %v1757_v46 = vrot.slane %v3955_v31, 6 }
0x1504   :  { %1758 = vrot.lane.b32.xlu1 %v1757_v46, %s3428_s22 }
0x153b   :  { %v1721_v33 = vpop.permute.xlu2 %1720 }
0x153c   :  { %1723 = vst.msk [vmem:[#allocation2] sm:$0x3] %vm461_vm13, %v1721_v33  ;;  %2877 = vmatmul.msk.f32.vlgmr.msrb.gmra.mxu2 %vm276_vm4, %v1721_v33 }
0x153d   :  { %2191 = vmatpush.msrb.mxu2 %v3874_v6 }
0x153f   :  { %2192 = vmatpush.msrb.mxu2 %v3876_v7 }
0x1541   :  { %2193 = vmatpush.msrb.mxu2 %v3880_v9 }
0x1543   :  { %2194 = vmatpush.msrb.mxu2 %v3882_v13 }
0x1576   :  { %v1759_v32 = vpop.permute.xlu1 %1758 }
0x1577   :  { %2878 = vmatmul.msk.f32.vlgmr.msrb.gmra.mxu3 %vm276_vm4, %v1759_v32 }
0x1578   :  { %2217 = vmatpush.msrb.mxu3 %v3900_v16 }
0x157a   :  { %2218 = vmatpush.msrb.mxu3 %v3902_v17 }
0x157c   :  { %2219 = vmatpush.msrb.mxu3 %v3906_v19 }
0x157e   :  { %2220 = vmatpush.msrb.mxu3 %v3915_v24 }
0x15bf   :  { %v1749_v39 = vpop.f32.mrf.mxu2 }
0x15c0   :  { %v1753_v43 = vrot.slane %v1749_v39, 6 }
0x15c2   :  { %v1755_v55 = vadd.f32 %v1753_v43, %v1729_v53 }
0x15c4   :  { %3074 = vtanh.f32 %v1755_v55  ;;  %v2879_v44 = vmul.f32 -1.442695, %v1755_v55 }
0x15ca   :  { %v3075_v37 = vpop.eup %3074 }
0x15cb   :  { %1831 = vrot.lane.b32.xlu1 %v3075_v37, %s3427_s8 }
0x15fa   :  { %v1779_v20 = vpop.f32.mrf.mxu3 }
0x15fb   :  { %v1783_v56 = vrot.slane %v1779_v20, 4  ;;  %v1876_v20 = vld [vmem:[#allocation3 + $0x10] sm:$0x30] }
0x15fd   :  { %v1785_v21 = vadd.f32 %v1783_v56, %v1756_v36 }
0x15ff   :  { %3076 = vtanh.f32 %v1785_v21  ;;  %v2880_v12 = vmul.f32 -1.442695, %v1785_v21 }
0x1600   :  { %3078 = vpow2.f32 %v2879_v44  ;;  %v1906_v44 = vld [vmem:[#allocation3 + $0x8] sm:$0xc] }
0x1605   :  { %v3077_v58 = vpop.eup %3076 }
0x1606   :  { %1845 = vrot.lane.b32.xlu0 %v3077_v58, %s3427_s8  ;;  %v3079_v41 = vpop.eup %3078 }
0x1607   :  { %v1789_v48 = vadd.f32 1.0, %v3079_v41 }
0x1609   :  { %3080 = vrcp.f32 %v1789_v48  ;;  %v1801_v38 = vand.u32 2147483648, %v1789_v48  ;;  %vm1795_vm10 = vweird.f32 %v1789_v48  ;;  %v1799_v18 = vand.u32 2147483647, %v1789_v48 }
0x160a   :  { %3082 = vpow2.f32 %v2880_v12 }
0x160b   :  { %v1802_v11 = vor.u32 1.1754944e-38, %v1801_v38  ;;  %vm1800_vm12 = vcmp.eq.f32.partialorder %v1799_v18, 8.507059e+37 }
0x160f   :  { %v3081_v35 = vpop.eup %3080 }
0x1610   :  { %v1791_v50 = vmul.f32 %v3081_v35, %v1789_v48  ;;  %vm1796_vm9 = vweird.f32 %v3081_v35  ;;  %v3083_v25 = vpop.eup %3082 }
0x1611   :  { %vm1797_vm11 = vmor %vm1795_vm10, %vm1796_vm9  ;;  %v1808_v14 = vadd.f32 1.0, %v3083_v25 }
0x1612   :  { %v1792_v49 = vsub.f32 1.0, %v1791_v50 }
0x1613   :  { %3084 = vrcp.f32 %v1808_v14  ;;  %v1820_v63 = vand.u32 2147483648, %v1808_v14  ;;  %vm1814_vm8 = vweird.f32 %v1808_v14  ;;  %v1818_v0 = vand.u32 2147483647, %v1808_v14 }
0x1614   :  { %v1793_v45 = vmul.f32 %v3081_v35, %v1792_v49 }
0x1615   :  { %v1821_v2 = vor.u32 1.1754944e-38, %v1820_v63  ;;  %vm1819_vm10 = vcmp.eq.f32.partialorder %v1818_v0, 8.507059e+37 }
0x1616   :  { %v1794_v54 = vadd.f32 %v3081_v35, %v1793_v45 }
0x1618   :  { %v1798_v10 = vsel %vm1797_vm11, %v3081_v35, %v1794_v54 }
0x1619   :  { %v1803_v42 = vsel %vm1800_vm12, %v1802_v11, %v1798_v10  ;;  %v3085_v59 = vpop.eup %3084 }
0x161a   :  { %v1810_v57 = vmul.f32 %v3085_v59, %v1808_v14  ;;  %vm1815_vm7 = vweird.f32 %v3085_v59  ;;  %v1829_v8 = vmul.f32 %v1827_v51, %v1803_v42 }
0x161b   :  { %vm1816_vm9 = vmor %vm1814_vm8, %vm1815_vm7 }
0x161c   :  { %v1811_v60 = vsub.f32 1.0, %v1810_v57 }
0x161e   :  { %v1812_v61 = vmul.f32 %v3085_v59, %v1811_v60 }
0x1620   :  { %v1813_v62 = vadd.f32 %v3085_v59, %v1812_v61 }
0x1622   :  { %v1817_v1 = vsel %vm1816_vm9, %v3085_v59, %v1813_v62 }
0x1623   :  { %v1822_v4 = vsel %vm1819_vm10, %v1821_v2, %v1817_v1 }
0x1624   :  { %v1843_v29 = vmul.f32 %v1841_v26, %v1822_v4 }
0x163d   :  { %v1832_v47 = vpop.permute.xlu1 %1831 }
0x163e   :  { %v1834_v52 = vmul.f32 %v1832_v47, %v1803_v42 }
0x1640   :  { %1836 = vrot.lane.b32.xlu0 %v1834_v52, %s3427_s8 }
0x1678   :  { %v1846_v3 = vpop.permute.xlu0 %1845 }
0x1679   :  { %v1848_v5 = vmul.f32 %v1846_v3, %v1822_v4 }
0x167b   :  { %1850 = vrot.lane.b32.xlu2 %v1848_v5, %s3427_s8 }
0x16b2   :  { %v1837_v15 = vpop.permute.xlu0 %1836 }
0x16b3   :  { %v3975_v23 = vadd.f32 %v1837_v15, %v1829_v8 }
0x16b5   :  { %3086 = vtanh.f32 %v3975_v23 }
0x16bb   :  { %v3087_v28 = vpop.eup %3086 }
0x16bc   :  { %1856 = vrot.lane.b32.xlu2 %v3087_v28, %s3427_s8  ;;  %v1977_v28 = vrot.slane %v3975_v23, 6 }
0x16d5   :  { %v1851_v30 = vpop.permute.xlu2 %1850 }
0x16d6   :  { %v3980_v34 = vadd.f32 %v1851_v30, %v1843_v29 }
0x16d8   :  { %3088 = vtanh.f32 %v3980_v34 }
0x16de   :  { %v3089_v40 = vpop.eup %3088 }
0x16df   :  { %1862 = vrot.lane.b32.xlu1 %v3089_v40, %s3427_s8 }
0x1716   :  { %v1857_v22 = vpop.permute.xlu2 %1856 }
0x1717   :  { %v3984_v46 = vmul.f32 %v1857_v22, %v1803_v42  ;;  %v1991_v22 = vrot.slane %v3980_v34, 2 }
0x1719   :  { %v1877_v33 = vrot.slane %v3984_v46, 2 }
0x171b   :  { %1878 = vrot.lane.b32.xlu1 %v1877_v33, %s3428_s22 }
0x1751   :  { %v1863_v32 = vpop.permute.xlu1 %1862 }
0x1752   :  { %v3988_v39 = vmul.f32 %v1863_v32, %v1822_v4 }
0x1754   :  { %v1907_v27 = vrot.slane %v3988_v39, 4 }
0x1756   :  { %1908 = vrot.lane.b32.xlu0 %v1907_v27, %s3428_s22 }
0x178d   :  { %v1879_v43 = vpop.permute.xlu1 %1878 }
0x178e   :  { %2881 = vmatmul.msk.f32.vlgmr.msra.gmra.mxu2 %vm276_vm4, %v1879_v43 }
0x178f   :  { %2484 = vmatpush.msra.mxu2 %v3874_v6 }
0x1791   :  { %2485 = vmatpush.msra.mxu2 %v3876_v7 }
0x1793   :  { %2486 = vmatpush.msra.mxu2 %v3880_v9 }
0x1795   :  { %2487 = vmatpush.msra.mxu2 %v3882_v13 }
0x17c8   :  { %v1909_v53 = vpop.permute.xlu0 %1908 }
0x17c9   :  { %2882 = vmatmul.msk.f32.vlgmr.msra.gmra.mxu3 %vm276_vm4, %v1909_v53 }
0x17ca   :  { %2514 = vmatpush.msra.mxu3 %v3900_v16 }
0x17cc   :  { %2515 = vmatpush.msra.mxu3 %v3902_v17 }
0x17ce   :  { %2516 = vmatpush.msra.mxu3 %v3906_v19 }
0x17d0   :  { %2517 = vmatpush.msra.mxu3 %v3915_v24 }
0x1811   :  { %v1899_v55 = vpop.f32.mrf.mxu2 }
0x1812   :  { %v1903_v37 = vrot.slane %v1899_v55, 4 }
0x1814   :  { %v1905_v56 = vadd.f32 %v1903_v37, %v1876_v20 }
0x1816   :  { %3090 = vtanh.f32 %v1905_v56  ;;  %v2883_v35 = vmul.f32 -1.442695, %v1905_v56 }
0x181c   :  { %v3091_v36 = vpop.eup %3090 }
0x181d   :  { %1981 = vrot.lane.b32.xlu0 %v3091_v36, %s3427_s8 }
0x184c   :  { %v1929_v21 = vpop.f32.mrf.mxu3 }
0x184d   :  { %v1933_v58 = vrot.slane %v1929_v21, 6 }
0x184f   :  { %v1935_v41 = vadd.f32 %v1933_v58, %v1906_v44 }
0x1851   :  { %3092 = vtanh.f32 %v1935_v41  ;;  %v2884_v10 = vmul.f32 -1.442695, %v1935_v41 }
0x1852   :  { %3094 = vpow2.f32 %v2883_v35 }
0x1857   :  { %v3093_v48 = vpop.eup %3092 }
0x1858   :  { %1995 = vrot.lane.b32.xlu2 %v3093_v48, %s3427_s8  ;;  %v3095_v50 = vpop.eup %3094 }
0x1859   :  { %v1939_v49 = vadd.f32 1.0, %v3095_v50 }
0x185b   :  { %3096 = vrcp.f32 %v1939_v49  ;;  %v1951_v47 = vand.u32 2147483648, %v1939_v49  ;;  %vm1945_vm12 = vweird.f32 %v1939_v49  ;;  %v1949_v42 = vand.u32 2147483647, %v1939_v49 }
0x185c   :  { %3098 = vpow2.f32 %v2884_v10 }
0x185d   :  { %v1952_v12 = vor.u32 1.1754944e-38, %v1951_v47  ;;  %vm1950_vm8 = vcmp.eq.f32.partialorder %v1949_v42, 8.507059e+37 }
0x1861   :  { %v3097_v45 = vpop.eup %3096 }
0x1862   :  { %v1941_v54 = vmul.f32 %v3097_v45, %v1939_v49  ;;  %vm1946_vm11 = vweird.f32 %v3097_v45  ;;  %v3099_v25 = vpop.eup %3098 }
0x1863   :  { %vm1947_vm7 = vmor %vm1945_vm12, %vm1946_vm11  ;;  %v1958_v60 = vadd.f32 1.0, %v3099_v25 }
0x1864   :  { %v1942_v38 = vsub.f32 1.0, %v1941_v54 }
0x1865   :  { %3100 = vrcp.f32 %v1958_v60  ;;  %v1970_v2 = vand.u32 2147483648, %v1958_v60  ;;  %vm1964_vm10 = vweird.f32 %v1958_v60  ;;  %v1968_v3 = vand.u32 2147483647, %v1958_v60 }
0x1866   :  { %v1943_v18 = vmul.f32 %v3097_v45, %v1942_v38 }
0x1867   :  { %v1971_v5 = vor.u32 1.1754944e-38, %v1970_v2  ;;  %vm1969_vm12 = vcmp.eq.f32.partialorder %v1968_v3, 8.507059e+37 }
0x1868   :  { %v1944_v11 = vadd.f32 %v3097_v45, %v1943_v18 }
0x186a   :  { %v1948_v52 = vsel %vm1947_vm7, %v3097_v45, %v1944_v11 }
0x186b   :  { %v1953_v59 = vsel %vm1950_vm8, %v1952_v12, %v1948_v52  ;;  %v3101_v61 = vpop.eup %3100 }
0x186c   :  { %v1960_v62 = vmul.f32 %v3101_v61, %v1958_v60  ;;  %vm1965_vm9 = vweird.f32 %v3101_v61  ;;  %v1979_v26 = vmul.f32 %v1977_v28, %v1953_v59 }
0x186d   :  { %vm1966_vm11 = vmor %vm1964_vm10, %vm1965_vm9 }
0x186e   :  { %v1961_v63 = vsub.f32 1.0, %v1960_v62 }
0x1870   :  { %v1962_v0 = vmul.f32 %v3101_v61, %v1961_v63 }
0x1872   :  { %v1963_v1 = vadd.f32 %v3101_v61, %v1962_v0 }
0x1874   :  { %v1967_v4 = vsel %vm1966_vm11, %v3101_v61, %v1963_v1 }
0x1875   :  { %v1972_v51 = vsel %vm1969_vm12, %v1971_v5, %v1967_v4 }
0x1876   :  { %v1993_v33 = vmul.f32 %v1991_v22, %v1972_v51 }
0x188f   :  { %v1982_v14 = vpop.permute.xlu0 %1981 }
0x1890   :  { %v1984_v57 = vmul.f32 %v1982_v14, %v1953_v59 }
0x1892   :  { %1986 = vrot.lane.b32.xlu2 %v1984_v57, %s3427_s8 }
0x18b2   :  { %v1996_v8 = vpop.permute.xlu2 %1995 }
0x18b3   :  { %v1998_v15 = vmul.f32 %v1996_v8, %v1972_v51 }
0x18b5   :  { %2000 = vrot.lane.b32.xlu1 %v1998_v15, %s3427_s8 }
0x18ec   :  { %v1987_v29 = vpop.permute.xlu2 %1986 }
0x18ed   :  { %v4007_v30 = vadd.f32 %v1987_v29, %v1979_v26 }
0x18ef   :  { %3102 = vtanh.f32 %v4007_v30  ;;  %v2124_v5 = vrot.slane %v4007_v30, 6 }
0x18f5   :  { %v3103_v40 = vpop.eup %3102 }
0x18f6   :  { %2006 = vrot.lane.b32.xlu1 %v3103_v40, %s3427_s8 }
0x1927   :  { %v2001_v32 = vpop.permute.xlu1 %2000 }
0x1928   :  { %v4012_v27 = vadd.f32 %v2001_v32, %v1993_v33 }
0x192a   :  { %3104 = vtanh.f32 %v4012_v27  ;;  %v2138_v26 = vrot.slane %v4012_v27, 2 }
0x1930   :  { %v3105_v43 = vpop.eup %3104 }
0x1931   :  { %2012 = vrot.lane.b32.xlu0 %v3105_v43, %s3427_s8 }
0x1968   :  { %v2007_v23 = vpop.permute.xlu1 %2006 }
0x1969   :  { %v4016_v53 = vmul.f32 %v2007_v23, %v1953_v59 }
0x196b   :  { %v2027_v55 = vrot.slane %v4016_v53, 4 }
0x196d   :  { %2028 = vrot.lane.b32.xlu0 %v2027_v55, %s3428_s22 }
0x19a3   :  { %v2013_v37 = vpop.permute.xlu0 %2012 }
0x19a4   :  { %v4020_v20 = vmul.f32 %v2013_v37, %v1972_v51 }
0x19a6   :  { %v2057_v34 = vrot.slane %v4020_v20, 2 }
0x19a8   :  { %2058 = vrot.lane.b32.xlu2 %v2057_v34, %s3428_s22  ;;  %v2173_v34 = vld [vmem:[#allocation3 + $0x18] sm:$0x3] }
0x19df   :  { %v2029_v56 = vpop.permute.xlu0 %2028 }
0x19e0   :  { %2885 = vmatmul.msk.f32.vlgmr.msrb.gmra.mxu0 %vm276_vm4, %v2029_v56 }
0x19e1   :  { %2634 = vmatpush.msrb.mxu0 %v3874_v6  ;;  %v2026_v6 = vld [vmem:[#allocation3 + $0x10] sm:$0xc0] }
0x19e3   :  { %2635 = vmatpush.msrb.mxu0 %v3876_v7 }
0x19e5   :  { %2636 = vmatpush.msrb.mxu0 %v3880_v9  ;;  %v2056_v9 = vld [vmem:[#allocation3 + $0x8] sm:$0x3] }
0x19e7   :  { %2637 = vmatpush.msrb.mxu0 %v3882_v13 }
0x1a02   :  { %v2059_v36 = vpop.permute.xlu2 %2058 }
0x1a03   :  { %2886 = vmatmul.msk.f32.vlgmr.msra.gmra.mxu1 %vm276_vm4, %v2059_v36 }
0x1a04   :  { %2664 = vmatpush.msra.mxu1 %v3900_v16 }
0x1a06   :  { %2665 = vmatpush.msra.mxu1 %v3902_v17 }
0x1a08   :  { %2666 = vmatpush.msra.mxu1 %v3906_v19 }
0x1a0a   :  { %2667 = vmatpush.msra.mxu1 %v3915_v24 }
0x1a5d   :  { %v2049_v21 = vpop.f32.mrf.mxu0 }
0x1a5e   :  { %v2053_v58 = vrot.slane %v2049_v21, 2 }
0x1a60   :  { %v2055_v44 = vadd.f32 %v2053_v58, %v2026_v6 }
0x1a62   :  { %3106 = vtanh.f32 %v2055_v44  ;;  %v2887_v16 = vmul.f32 -1.442695, %v2055_v44  ;;  %v2200_v44 = vld [vmem:[#allocation3] sm:$0xc0] }
0x1a68   :  { %v3107_v7 = vpop.eup %3106 }
0x1a69   :  { %2128 = vrot.lane.b32.xlu2 %v3107_v7, %s3427_s8 }
0x1a80   :  { %v2079_v13 = vpop.f32.mrf.mxu1 }
0x1a81   :  { %v2082_v41 = vadd.f32 %v2079_v13, %v2056_v9 }
0x1a83   :  { %3108 = vtanh.f32 %v2082_v41  ;;  %v2888_v52 = vmul.f32 -1.442695, %v2082_v41 }
0x1a84   :  { %3110 = vpow2.f32 %v2887_v16 }
0x1a89   :  { %v3109_v48 = vpop.eup %3108 }
0x1a8a   :  { %2142 = vrot.lane.b32.xlu1 %v3109_v48, %s3427_s8  ;;  %v3111_v17 = vpop.eup %3110 }
0x1a8b   :  { %v2086_v19 = vadd.f32 1.0, %v3111_v17 }
0x1a8d   :  { %3112 = vrcp.f32 %v2086_v19  ;;  %v2098_v54 = vand.u32 2147483648, %v2086_v19  ;;  %vm2092_vm8 = vweird.f32 %v2086_v19  ;;  %v2096_v38 = vand.u32 2147483647, %v2086_v19 }
0x1a8e   :  { %3114 = vpow2.f32 %v2888_v52 }
0x1a8f   :  { %v2099_v10 = vor.u32 1.1754944e-38, %v2098_v54  ;;  %vm2097_vm10 = vcmp.eq.f32.partialorder %v2096_v38, 8.507059e+37 }
0x1a93   :  { %v3113_v24 = vpop.eup %3112 }
0x1a94   :  { %v2088_v35 = vmul.f32 %v3113_v24, %v2086_v19  ;;  %vm2093_vm7 = vweird.f32 %v3113_v24  ;;  %v3115_v12 = vpop.eup %3114 }
0x1a95   :  { %vm2094_vm9 = vmor %vm2092_vm8, %vm2093_vm7  ;;  %v2105_v25 = vadd.f32 1.0, %v3115_v12 }
0x1a96   :  { %v2089_v50 = vsub.f32 1.0, %v2088_v35 }
0x1a97   :  { %3116 = vrcp.f32 %v2105_v25  ;;  %v2117_v62 = vand.u32 2147483648, %v2105_v25  ;;  %vm2111_vm12 = vweird.f32 %v2105_v25  ;;  %v2115_v63 = vand.u32 2147483647, %v2105_v25 }
0x1a98   :  { %v2090_v49 = vmul.f32 %v3113_v24, %v2089_v50 }
0x1a99   :  { %v2118_v1 = vor.u32 1.1754944e-38, %v2117_v62  ;;  %vm2116_vm8 = vcmp.eq.f32.partialorder %v2115_v63, 8.507059e+37 }
0x1a9a   :  { %v2091_v45 = vadd.f32 %v3113_v24, %v2090_v49 }
0x1a9c   :  { %v2095_v18 = vsel %vm2094_vm9, %v3113_v24, %v2091_v45 }
0x1a9d   :  { %v2100_v11 = vsel %vm2097_vm10, %v2099_v10, %v2095_v18  ;;  %v3117_v14 = vpop.eup %3116 }
0x1a9e   :  { %v2107_v59 = vmul.f32 %v3117_v14, %v2105_v25  ;;  %vm2112_vm11 = vweird.f32 %v3117_v14  ;;  %v2126_v51 = vmul.f32 %v2124_v5, %v2100_v11 }
0x1a9f   :  { %vm2113_vm7 = vmor %vm2111_vm12, %vm2112_vm11 }
0x1aa0   :  { %v2108_v57 = vsub.f32 1.0, %v2107_v59 }
0x1aa2   :  { %v2109_v60 = vmul.f32 %v3117_v14, %v2108_v57 }
0x1aa4   :  { %v2110_v61 = vadd.f32 %v3117_v14, %v2109_v60 }
0x1aa6   :  { %v2114_v0 = vsel %vm2113_vm7, %v3117_v14, %v2110_v61 }
0x1aa7   :  { %v2119_v3 = vsel %vm2116_vm8, %v2118_v1, %v2114_v0 }
0x1aa8   :  { %v2140_v29 = vmul.f32 %v2138_v26, %v2119_v3 }
0x1ac3   :  { %v2129_v47 = vpop.permute.xlu2 %2128 }
0x1ac4   :  { %v2131_v42 = vmul.f32 %v2129_v47, %v2100_v11 }
0x1ac6   :  { %2133 = vrot.lane.b32.xlu1 %v2131_v42, %s3427_s8 }
0x1afc   :  { %v2143_v2 = vpop.permute.xlu1 %2142 }
0x1afd   :  { %v2145_v4 = vmul.f32 %v2143_v2, %v2119_v3 }
0x1aff   :  { %2147 = vrot.lane.b32.xlu0 %v2145_v4, %s3427_s8 }
0x1b38   :  { %v2134_v8 = vpop.permute.xlu1 %2133 }
0x1b39   :  { %v4039_v15 = vadd.f32 %v2134_v8, %v2126_v51 }
0x1b3b   :  { %3118 = vtanh.f32 %v4039_v15  ;;  %v2270_v2 = vrot.slane %v4039_v15, 6 }
0x1b41   :  { %v3119_v28 = vpop.eup %3118 }
0x1b42   :  { %2153 = vrot.lane.b32.xlu0 %v3119_v28, %s3427_s8 }
0x1b71   :  { %v2148_v40 = vpop.permute.xlu0 %2147 }
0x1b72   :  { %v4044_v22 = vadd.f32 %v2148_v40, %v2140_v29 }
0x1b74   :  { %3120 = vtanh.f32 %v4044_v22  ;;  %v2284_v8 = vrot.slane %v4044_v22, 2 }
0x1b7a   :  { %v3121_v33 = vpop.eup %3120 }
0x1b7b   :  { %2159 = vrot.lane.b32.xlu2 %v3121_v33, %s3427_s8 }
0x1bb4   :  { %v2154_v30 = vpop.permute.xlu0 %2153 }
0x1bb5   :  { %v4048_v32 = vmul.f32 %v2154_v30, %v2100_v11 }
0x1bb7   :  { %v2174_v43 = vrot.slane %v4048_v32, 6 }
0x1bb9   :  { %2175 = vrot.lane.b32.xlu2 %v2174_v43, %s3428_s22 }
0x1bd5   :  { %v2160_v23 = vpop.permute.xlu2 %2159 }
0x1bd6   :  { %v4052_v55 = vmul.f32 %v2160_v23, %v2119_v3 }
0x1bd8   :  { %2201 = vrot.lane.b32.xlu1 %v4052_v55, %s3428_s22 }
0x1c13   :  { %v2176_v27 = vpop.permute.xlu2 %2175 }
0x1c14   :  { %2889 = vmatmul.msk.f32.vlgmr.msrb.gmra.mxu2 %vm276_vm4, %v2176_v27 }
0x1c4a   :  { %v2202_v37 = vpop.permute.xlu1 %2201 }
0x1c4b   :  { %2890 = vmatmul.msk.f32.vlgmr.msrb.gmra.mxu3 %vm276_vm4, %v2202_v37 }
0x1c97   :  { %v2196_v56 = vpop.f32.mrf.mxu2 }
0x1c98   :  { %v2199_v36 = vadd.f32 %v2196_v56, %v2173_v34  ;;  %v2319_v56 = vld [vmem:[#allocation3 + $0x18] sm:$0xc] }
0x1c9a   :  { %3122 = vtanh.f32 %v2199_v36  ;;  %v2891_v13 = vmul.f32 -1.442695, %v2199_v36 }
0x1ca0   :  { %v3123_v21 = vpop.eup %3122 }
0x1ca1   :  { %2274 = vrot.lane.b32.xlu1 %v3123_v21, %s3427_s8 }
0x1cce   :  { %v2222_v58 = vpop.f32.mrf.mxu3 }
0x1ccf   :  { %v2226_v6 = vrot.slane %v2222_v58, 2 }
0x1cd1   :  { %v2228_v7 = vadd.f32 %v2226_v6, %v2200_v44  ;;  %v2346_v44 = vld [vmem:[#allocation3] sm:$0x30] }
0x1cd3   :  { %3124 = vtanh.f32 %v2228_v7  ;;  %v2892_v11 = vmul.f32 -1.442695, %v2228_v7 }
0x1cd4   :  { %3126 = vpow2.f32 %v2891_v13 }
0x1cd9   :  { %v3125_v9 = vpop.eup %3124 }
0x1cda   :  { %2288 = vrot.lane.b32.xlu0 %v3125_v9, %s3427_s8  ;;  %v3127_v41 = vpop.eup %3126 }
0x1cdb   :  { %v2232_v48 = vadd.f32 1.0, %v3127_v41 }
0x1cdd   :  { %3128 = vrcp.f32 %v2232_v48  ;;  %v2244_v50 = vand.u32 2147483648, %v2232_v48  ;;  %vm2238_vm10 = vweird.f32 %v2232_v48  ;;  %v2242_v49 = vand.u32 2147483647, %v2232_v48 }
0x1cde   :  { %3130 = vpow2.f32 %v2892_v11 }
0x1cdf   :  { %v2245_v54 = vor.u32 1.1754944e-38, %v2244_v50  ;;  %vm2243_vm12 = vcmp.eq.f32.partialorder %v2242_v49, 8.507059e+37 }
0x1ce3   :  { %v3129_v16 = vpop.eup %3128 }
0x1ce4   :  { %v2234_v17 = vmul.f32 %v3129_v16, %v2232_v48  ;;  %vm2239_vm9 = vweird.f32 %v3129_v16  ;;  %v3131_v47 = vpop.eup %3130 }
0x1ce5   :  { %vm2240_vm11 = vmor %vm2238_vm10, %vm2239_vm9  ;;  %v2251_v42 = vadd.f32 1.0, %v3131_v47 }
0x1ce6   :  { %v2235_v19 = vsub.f32 1.0, %v2234_v17 }
0x1ce7   :  { %3132 = vrcp.f32 %v2251_v42  ;;  %v2263_v57 = vand.u32 2147483648, %v2251_v42  ;;  %vm2257_vm8 = vweird.f32 %v2251_v42  ;;  %v2261_v60 = vand.u32 2147483647, %v2251_v42 }
0x1ce8   :  { %v2236_v24 = vmul.f32 %v3129_v16, %v2235_v19 }
0x1ce9   :  { %v2264_v62 = vor.u32 1.1754944e-38, %v2263_v57  ;;  %vm2262_vm10 = vcmp.eq.f32.partialorder %v2261_v60, 8.507059e+37 }
0x1cea   :  { %v2237_v35 = vadd.f32 %v3129_v16, %v2236_v24 }
0x1cec   :  { %v2241_v45 = vsel %vm2240_vm11, %v3129_v16, %v2237_v35 }
0x1ced   :  { %v2246_v18 = vsel %vm2243_vm12, %v2245_v54, %v2241_v45  ;;  %v3133_v52 = vpop.eup %3132 }
0x1cee   :  { %v2253_v12 = vmul.f32 %v3133_v52, %v2251_v42  ;;  %vm2258_vm7 = vweird.f32 %v3133_v52  ;;  %v2272_v3 = vmul.f32 %v2270_v2, %v2246_v18 }
0x1cef   :  { %vm2259_vm9 = vmor %vm2257_vm8, %vm2258_vm7 }
0x1cf0   :  { %v2254_v25 = vsub.f32 1.0, %v2253_v12 }
0x1cf2   :  { %v2255_v14 = vmul.f32 %v3133_v52, %v2254_v25 }
0x1cf4   :  { %v2256_v59 = vadd.f32 %v3133_v52, %v2255_v14 }
0x1cf6   :  { %v2260_v61 = vsel %vm2259_vm9, %v3133_v52, %v2256_v59 }
0x1cf7   :  { %v2265_v0 = vsel %vm2262_vm10, %v2264_v62, %v2260_v61 }
0x1cf8   :  { %v2286_v28 = vmul.f32 %v2284_v8, %v2265_v0 }
0x1d13   :  { %v2275_v38 = vpop.permute.xlu1 %2274 }
0x1d14   :  { %v2277_v10 = vmul.f32 %v2275_v38, %v2246_v18 }
0x1d16   :  { %2279 = vrot.lane.b32.xlu0 %v2277_v10, %s3427_s8 }
0x1d4c   :  { %v2289_v63 = vpop.permute.xlu0 %2288 }
0x1d4d   :  { %v2291_v1 = vmul.f32 %v2289_v63, %v2265_v0 }
0x1d4f   :  { %2293 = vrot.lane.b32.xlu2 %v2291_v1, %s3427_s8 }
0x1d88   :  { %v2280_v4 = vpop.permute.xlu0 %2279 }
0x1d89   :  { %v4063_v5 = vadd.f32 %v2280_v4, %v2272_v3 }
0x1d8b   :  { %3134 = vtanh.f32 %v4063_v5  ;;  %v2417_v2 = vrot.slane %v4063_v5, 6 }
0x1d91   :  { %v3135_v51 = vpop.eup %3134 }
0x1d92   :  { %2299 = vrot.lane.b32.xlu2 %v3135_v51, %s3427_s8 }
0x1da9   :  { %v2294_v26 = vpop.permute.xlu2 %2293 }
0x1daa   :  { %v4068_v29 = vadd.f32 %v2294_v26, %v2286_v28 }
0x1dac   :  { %3136 = vtanh.f32 %v4068_v29  ;;  %v2431_v28 = vrot.slane %v4068_v29, 2 }
0x1db2   :  { %v3137_v40 = vpop.eup %3136 }
0x1db3   :  { %2305 = vrot.lane.b32.xlu1 %v3137_v40, %s3427_s8 }
0x1dec   :  { %v2300_v15 = vpop.permute.xlu2 %2299 }
0x1ded   :  { %v2302_v33 = vmul.f32 %v2300_v15, %v2246_v18 }
0x1def   :  { %2310 = vrot.lane.b32.xlu1 %v2302_v33, %s3428_s22 }
0x1e25   :  { %v2306_v30 = vpop.permute.xlu1 %2305 }
0x1e26   :  { %v4073_v43 = vmul.f32 %v2306_v30, %v2265_v0 }
0x1e28   :  { %v2347_v23 = vrot.slane %v4073_v43, 6 }
0x1e2a   :  { %2348 = vrot.lane.b32.xlu0 %v2347_v23, %s3428_s22 }
0x1e61   :  { %v4077_v22 = vpop.permute.xlu1 %2310 }
0x1e62   :  { %2893 = vmatmul.msk.f32.vlgmr.msra.gmra.mxu0 %vm276_vm4, %v4077_v22 }
0x1e9c   :  { %v2349_v27 = vpop.permute.xlu0 %2348 }
0x1e9d   :  { %2894 = vmatmul.msk.f32.vlgmr.msrb.gmra.mxu1 %vm276_vm4, %v2349_v27 }
0x1edf   :  { %v2339_v37 = vpop.f32.mrf.mxu0 }
0x1ee0   :  { %v2343_v34 = vrot.slane %v2339_v37, 6 }
0x1ee2   :  { %v2345_v36 = vadd.f32 %v2343_v34, %v2319_v56 }
0x1ee4   :  { %3138 = vtanh.f32 %v2345_v36  ;;  %v2895_v13 = vmul.f32 -1.442695, %v2345_v36 }
0x1eea   :  { %v3139_v21 = vpop.eup %3138 }
0x1eeb   :  { %2421 = vrot.lane.b32.xlu0 %v3139_v21, %s3427_s8 }
0x1f1a   :  { %v2369_v58 = vpop.f32.mrf.mxu1 }
0x1f1b   :  { %v2373_v6 = vrot.slane %v2369_v58, 4  ;;  %v2466_v58 = vld [vmem:[#allocation3 + $0x18] sm:$0x30] }
0x1f1d   :  { %v2375_v7 = vadd.f32 %v2373_v6, %v2346_v44 }
0x1f1f   :  { %3140 = vtanh.f32 %v2375_v7  ;;  %v2896_v35 = vmul.f32 -1.442695, %v2375_v7 }
0x1f20   :  { %3142 = vpow2.f32 %v2895_v13  ;;  %v2496_v13 = vld [vmem:[#allocation3] sm:$0xc] }
0x1f25   :  { %v3141_v9 = vpop.eup %3140 }
0x1f26   :  { %2435 = vrot.lane.b32.xlu2 %v3141_v9, %s3427_s8  ;;  %v3143_v41 = vpop.eup %3142 }
0x1f27   :  { %v2379_v48 = vadd.f32 1.0, %v3143_v41 }
0x1f29   :  { %3144 = vrcp.f32 %v2379_v48  ;;  %v2391_v49 = vand.u32 2147483648, %v2379_v48  ;;  %vm2385_vm12 = vweird.f32 %v2379_v48  ;;  %v2389_v45 = vand.u32 2147483647, %v2379_v48 }
0x1f2a   :  { %3146 = vpow2.f32 %v2896_v35 }
0x1f2b   :  { %v2392_v38 = vor.u32 1.1754944e-38, %v2391_v49  ;;  %vm2390_vm8 = vcmp.eq.f32.partialorder %v2389_v45, 8.507059e+37 }
0x1f2f   :  { %v3145_v16 = vpop.eup %3144 }
0x1f30   :  { %v2381_v17 = vmul.f32 %v3145_v16, %v2379_v48  ;;  %vm2386_vm11 = vweird.f32 %v3145_v16  ;;  %v3147_v18 = vpop.eup %3146 }
0x1f31   :  { %vm2387_vm7 = vmor %vm2385_vm12, %vm2386_vm11  ;;  %v2398_v42 = vadd.f32 1.0, %v3147_v18 }
0x1f32   :  { %v2382_v19 = vsub.f32 1.0, %v2381_v17 }
0x1f33   :  { %3148 = vrcp.f32 %v2398_v42  ;;  %v2410_v57 = vand.u32 2147483648, %v2398_v42  ;;  %vm2404_vm10 = vweird.f32 %v2398_v42  ;;  %v2408_v60 = vand.u32 2147483647, %v2398_v42 }
0x1f34   :  { %v2383_v24 = vmul.f32 %v3145_v16, %v2382_v19 }
0x1f35   :  { %v2411_v62 = vor.u32 1.1754944e-38, %v2410_v57  ;;  %vm2409_vm12 = vcmp.eq.f32.partialorder %v2408_v60, 8.507059e+37 }
0x1f36   :  { %v2384_v50 = vadd.f32 %v3145_v16, %v2383_v24 }
0x1f38   :  { %v2388_v54 = vsel %vm2387_vm7, %v3145_v16, %v2384_v50 }
0x1f39   :  { %v2393_v11 = vsel %vm2390_vm8, %v2392_v38, %v2388_v54  ;;  %v3149_v52 = vpop.eup %3148 }
0x1f3a   :  { %v2400_v12 = vmul.f32 %v3149_v52, %v2398_v42  ;;  %vm2405_vm9 = vweird.f32 %v3149_v52  ;;  %v2419_v3 = vmul.f32 %v2417_v2, %v2393_v11 }
0x1f3b   :  { %vm2406_vm11 = vmor %vm2404_vm10, %vm2405_vm9 }
0x1f3c   :  { %v2401_v25 = vsub.f32 1.0, %v2400_v12 }
0x1f3e   :  { %v2402_v14 = vmul.f32 %v3149_v52, %v2401_v25 }
0x1f40   :  { %v2403_v59 = vadd.f32 %v3149_v52, %v2402_v14 }
0x1f42   :  { %v2407_v61 = vsel %vm2406_vm11, %v3149_v52, %v2403_v59 }
0x1f43   :  { %v2412_v63 = vsel %vm2409_vm12, %v2411_v62, %v2407_v61 }
0x1f44   :  { %v2433_v26 = vmul.f32 %v2431_v28, %v2412_v63 }
0x1f5d   :  { %v2422_v10 = vpop.permute.xlu0 %2421 }
0x1f5e   :  { %v2424_v47 = vmul.f32 %v2422_v10, %v2393_v11 }
0x1f60   :  { %2426 = vrot.lane.b32.xlu2 %v2424_v47, %s3427_s8 }
0x1f80   :  { %v2436_v0 = vpop.permute.xlu2 %2435 }
0x1f81   :  { %v2438_v1 = vmul.f32 %v2436_v0, %v2412_v63 }
0x1f83   :  { %2440 = vrot.lane.b32.xlu1 %v2438_v1, %s3427_s8 }
0x1fba   :  { %v2427_v4 = vpop.permute.xlu2 %2426 }
0x1fbb   :  { %v4087_v51 = vadd.f32 %v2427_v4, %v2419_v3 }
0x1fbd   :  { %3150 = vtanh.f32 %v4087_v51 }
0x1fc3   :  { %v3151_v8 = vpop.eup %3150 }
0x1fc4   :  { %2446 = vrot.lane.b32.xlu1 %v3151_v8, %s3427_s8  ;;  %v2567_v8 = vrot.slane %v4087_v51, 6 }
0x1ff5   :  { %v2441_v40 = vpop.permute.xlu1 %2440 }
0x1ff6   :  { %v4092_v15 = vadd.f32 %v2441_v40, %v2433_v26 }
0x1ff8   :  { %3152 = vtanh.f32 %v4092_v15 }
0x1ffe   :  { %v3153_v33 = vpop.eup %3152 }
0x1fff   :  { %2452 = vrot.lane.b32.xlu0 %v3153_v33, %s3427_s8 }
0x2036   :  { %v2447_v5 = vpop.permute.xlu1 %2446 }
0x2037   :  { %v4096_v30 = vmul.f32 %v2447_v5, %v2393_v11  ;;  %v2581_v5 = vrot.slane %v4092_v15, 2 }
0x2039   :  { %v2467_v23 = vrot.slane %v4096_v30, 2 }
0x203b   :  { %2468 = vrot.lane.b32.xlu0 %v2467_v23, %s3428_s22 }
0x2071   :  { %v2453_v27 = vpop.permute.xlu0 %2452 }
0x2072   :  { %v4100_v37 = vmul.f32 %v2453_v27, %v2412_v63 }
0x2074   :  { %v2497_v29 = vrot.slane %v4100_v37, 4 }
0x2076   :  { %2498 = vrot.lane.b32.xlu2 %v2497_v29, %s3428_s22 }
0x20ad   :  { %v2469_v34 = vpop.permute.xlu0 %2468 }
0x20ae   :  { %2897 = vmatmul.msk.f32.vlgmr.msra.gmra.mxu2 %vm276_vm4, %v2469_v34 }
0x20d0   :  { %v2499_v56 = vpop.permute.xlu2 %2498 }
0x20d1   :  { %2898 = vmatmul.msk.f32.vlgmr.msra.gmra.mxu3 %vm276_vm4, %v2499_v56 }
0x2131   :  { %v2489_v36 = vpop.f32.mrf.mxu2 }
0x2132   :  { %v2493_v21 = vrot.slane %v2489_v36, 4 }
0x2134   :  { %v2495_v6 = vadd.f32 %v2493_v21, %v2466_v58 }
0x2136   :  { %3154 = vtanh.f32 %v2495_v6  ;;  %v2899_v16 = vmul.f32 -1.442695, %v2495_v6 }
0x213c   :  { %v3155_v44 = vpop.eup %3154 }
0x213d   :  { %2571 = vrot.lane.b32.xlu2 %v3155_v44, %s3427_s8 }
0x2154   :  { %v2519_v7 = vpop.f32.mrf.mxu3 }
0x2155   :  { %v2523_v9 = vrot.slane %v2519_v7, 6 }
0x2157   :  { %v2525_v41 = vadd.f32 %v2523_v9, %v2496_v13  ;;  %v2616_v13 = vld [vmem:[#allocation3 + $0x18] sm:$0xc0] }
0x2159   :  { %3156 = vtanh.f32 %v2525_v41  ;;  %v2900_v52 = vmul.f32 -1.442695, %v2525_v41 }
0x215a   :  { %3158 = vpow2.f32 %v2899_v16  ;;  %v2646_v16 = vld [vmem:[#allocation3] sm:$0x3] }
0x215f   :  { %v3157_v48 = vpop.eup %3156 }
0x2160   :  { %2585 = vrot.lane.b32.xlu1 %v3157_v48, %s3427_s8  ;;  %v3159_v17 = vpop.eup %3158 }
0x2161   :  { %v2529_v19 = vadd.f32 1.0, %v3159_v17 }
0x2163   :  { %3160 = vrcp.f32 %v2529_v19  ;;  %v2541_v54 = vand.u32 2147483648, %v2529_v19  ;;  %vm2535_vm8 = vweird.f32 %v2529_v19  ;;  %v2539_v38 = vand.u32 2147483647, %v2529_v19 }
0x2164   :  { %3162 = vpow2.f32 %v2900_v52 }
0x2165   :  { %v2542_v10 = vor.u32 1.1754944e-38, %v2541_v54  ;;  %vm2540_vm10 = vcmp.eq.f32.partialorder %v2539_v38, 8.507059e+37 }
0x2169   :  { %v3161_v24 = vpop.eup %3160 }
0x216a   :  { %v2531_v35 = vmul.f32 %v3161_v24, %v2529_v19  ;;  %vm2536_vm7 = vweird.f32 %v3161_v24  ;;  %v3163_v12 = vpop.eup %3162 }
0x216b   :  { %vm2537_vm9 = vmor %vm2535_vm8, %vm2536_vm7  ;;  %v2548_v25 = vadd.f32 1.0, %v3163_v12 }
0x216c   :  { %v2532_v50 = vsub.f32 1.0, %v2531_v35 }
0x216d   :  { %3164 = vrcp.f32 %v2548_v25  ;;  %v2560_v62 = vand.u32 2147483648, %v2548_v25  ;;  %vm2554_vm12 = vweird.f32 %v2548_v25  ;;  %v2558_v63 = vand.u32 2147483647, %v2548_v25 }
0x216e   :  { %v2533_v49 = vmul.f32 %v3161_v24, %v2532_v50 }
0x216f   :  { %v2561_v1 = vor.u32 1.1754944e-38, %v2560_v62  ;;  %vm2559_vm8 = vcmp.eq.f32.partialorder %v2558_v63, 8.507059e+37 }
0x2170   :  { %v2534_v45 = vadd.f32 %v3161_v24, %v2533_v49 }
0x2172   :  { %v2538_v18 = vsel %vm2537_vm9, %v3161_v24, %v2534_v45 }
0x2173   :  { %v2543_v11 = vsel %vm2540_vm10, %v2542_v10, %v2538_v18  ;;  %v3165_v14 = vpop.eup %3164 }
0x2174   :  { %v2550_v59 = vmul.f32 %v3165_v14, %v2548_v25  ;;  %vm2555_vm11 = vweird.f32 %v3165_v14  ;;  %v2569_v28 = vmul.f32 %v2567_v8, %v2543_v11 }
0x2175   :  { %vm2556_vm7 = vmor %vm2554_vm12, %vm2555_vm11 }
0x2176   :  { %v2551_v57 = vsub.f32 1.0, %v2550_v59 }
0x2178   :  { %v2552_v60 = vmul.f32 %v3165_v14, %v2551_v57 }
0x217a   :  { %v2553_v61 = vadd.f32 %v3165_v14, %v2552_v60 }
0x217c   :  { %v2557_v0 = vsel %vm2556_vm7, %v3165_v14, %v2553_v61 }
0x217d   :  { %v2562_v3 = vsel %vm2559_vm8, %v2561_v1, %v2557_v0 }
0x217e   :  { %v2583_v23 = vmul.f32 %v2581_v5, %v2562_v3 }
0x2197   :  { %v2572_v47 = vpop.permute.xlu2 %2571 }
0x2198   :  { %v2574_v42 = vmul.f32 %v2572_v47, %v2543_v11 }
0x219a   :  { %2576 = vrot.lane.b32.xlu1 %v2574_v42, %s3427_s8 }
0x21d2   :  { %v2586_v2 = vpop.permute.xlu1 %2585 }
0x21d3   :  { %v2588_v4 = vmul.f32 %v2586_v2, %v2562_v3 }
0x21d5   :  { %2590 = vrot.lane.b32.xlu0 %v2588_v4, %s3427_s8 }
0x220c   :  { %v2577_v26 = vpop.permute.xlu1 %2576 }
0x220d   :  { %v4111_v40 = vadd.f32 %v2577_v26, %v2569_v28 }
0x220f   :  { %3166 = vtanh.f32 %v4111_v40 }
0x2215   :  { %v3167_v33 = vpop.eup %3166 }
0x2216   :  { %2596 = vrot.lane.b32.xlu0 %v3167_v33, %s3427_s8 }
0x2247   :  { %v2591_v27 = vpop.permute.xlu0 %2590 }
0x2248   :  { %v4116_v29 = vadd.f32 %v2591_v27, %v2583_v23 }
0x224a   :  { %3168 = vtanh.f32 %v4116_v29 }
0x2250   :  { %v3169_v34 = vpop.eup %3168 }
0x2251   :  { %2602 = vrot.lane.b32.xlu2 %v3169_v34, %s3427_s8 }
0x2288   :  { %v2597_v51 = vpop.permute.xlu0 %2596 }
0x2289   :  { %v4120_v56 = vmul.f32 %v2597_v51, %v2543_v11 }
0x228b   :  { %v2617_v36 = vrot.slane %v4120_v56, 4 }
0x228d   :  { %2618 = vrot.lane.b32.xlu2 %v2617_v36, %s3428_s22 }
0x22ab   :  { %v2603_v21 = vpop.permute.xlu2 %2602 }
0x22ac   :  { %v4124_v58 = vmul.f32 %v2603_v21, %v2562_v3 }
0x22ae   :  { %v2647_v15 = vrot.slane %v4124_v58, 2 }
0x22b0   :  { %2648 = vrot.lane.b32.xlu1 %v2647_v15, %s3428_s22 }
0x22e7   :  { %v2619_v6 = vpop.permute.xlu2 %2618 }
0x22e8   :  { %2901 = vmatmul.msk.f32.vlgmr.msrb.gmra.mxu0 %vm276_vm4, %v2619_v6 }
0x2322   :  { %v2649_v44 = vpop.permute.xlu1 %2648 }
0x2323   :  { %2902 = vmatmul.msk.f32.vlgmr.msra.gmra.mxu1 %vm276_vm4, %v2649_v44 }
0x2365   :  { %v2639_v7 = vpop.f32.mrf.mxu0 }
0x2366   :  { %v2643_v9 = vrot.slane %v2639_v7, 2 }
0x2368   :  { %v2645_v41 = vadd.f32 %v2643_v9, %v2616_v13  ;;  %v2772_v9 = vld [vmem:[#allocation16 + $0x38] sm:$0xff]  ;;  %v2771_v13 = vld [vmem:[#allocation16 + $0x30] sm:$0xff] }
0x2369   :  { %2791 = vmatpush.msrb.mxu2 %v2772_v9 }
0x236a   :  { %3170 = vtanh.f32 %v2645_v41  ;;  %v2903_v35 = vmul.f32 -1.442695, %v2645_v41  ;;  %v2770_v41 = vld [vmem:[#allocation16 + $0x28] sm:$0xff] }
0x236b   :  { %2792 = vmatpush.msrb.mxu2 %v2771_v13 }
0x236d   :  { %2793 = vmatpush.msrb.mxu2 %v2770_v41 }
0x2370   :  { %v3171_v48 = vpop.eup %3170 }
0x2371   :  { %2718 = vrot.lane.b32.xlu1 %v3171_v48, %s3427_s8 }
0x23a0   :  { %v2669_v17 = vpop.f32.mrf.mxu1 }
0x23a1   :  { %v2672_v19 = vadd.f32 %v2669_v17, %v2646_v16  ;;  %v2769_v16 = vld [vmem:[#allocation16 + $0x20] sm:$0xff]  ;;  %v2768_v17 = vld [vmem:[#allocation16 + $0x18] sm:$0xff] }
0x23a2   :  { %2794 = vmatpush.msrb.mxu2 %v2769_v16 }
0x23a3   :  { %3172 = vtanh.f32 %v2672_v19  ;;  %v2904_v59 = vmul.f32 -1.442695, %v2672_v19  ;;  %v2767_v19 = vld [vmem:[#allocation16 + $0x10] sm:$0xff] }
0x23a4   :  { %3174 = vpow2.f32 %v2903_v35  ;;  %2795 = vmatpush.msrb.mxu2 %v2768_v17  ;;  %v2765_v35 = vld [vmem:[#allocation16] sm:$0xff] }
0x23a6   :  { %2796 = vmatpush.msrb.mxu2 %v2767_v19 }
0x23a9   :  { %v3173_v24 = vpop.eup %3172 }
0x23aa   :  { %2732 = vrot.lane.b32.xlu0 %v3173_v24, %s3427_s8  ;;  %v3175_v50 = vpop.eup %3174  ;;  %v2766_v24 = vld [vmem:[#allocation16 + $0x8] sm:$0xff] }
0x23ab   :  { %v2676_v49 = vadd.f32 1.0, %v3175_v50  ;;  %2797 = vmatpush.msrb.mxu2 %v2766_v24 }
0x23ad   :  { %3176 = vrcp.f32 %v2676_v49  ;;  %v2688_v11 = vand.u32 2147483648, %v2676_v49  ;;  %vm2682_vm9 = vweird.f32 %v2676_v49  ;;  %v2686_v47 = vand.u32 2147483647, %v2676_v49  ;;  %2798 = vmatpush.msrb.mxu2 %v2765_v35 }
0x23ae   :  { %3178 = vpow2.f32 %v2904_v59 }
0x23af   :  { %v2689_v52 = vor.u32 1.1754944e-38, %v2688_v11  ;;  %vm2687_vm11 = vcmp.eq.f32.partialorder %v2686_v47, 8.507059e+37 }
0x23b3   :  { %v3177_v45 = vpop.eup %3176 }
0x23b4   :  { %v2678_v54 = vmul.f32 %v3177_v45, %v2676_v49  ;;  %vm2683_vm4 = vweird.f32 %v3177_v45  ;;  %v3179_v57 = vpop.eup %3178 }
0x23b5   :  { %vm2684_vm10 = vmor %vm2682_vm9, %vm2683_vm4  ;;  %v2695_v60 = vadd.f32 1.0, %v3179_v57 }
0x23b6   :  { %v2679_v38 = vsub.f32 1.0, %v2678_v54  ;;  %v2929_v54 = vld [vmem:[%s4205_s14] ss:$0 sm:$0xff] }
0x23b7   :  { %3180 = vrcp.f32 %v2695_v60  ;;  %v2707_v2 = vand.u32 2147483648, %v2695_v60  ;;  %vm2701_vm7 = vweird.f32 %v2695_v60 }
0x23b8   :  { %v2680_v18 = vmul.f32 %v3177_v45, %v2679_v38 }
0x23b9   :  { %v2708_v4 = vor.u32 1.1754944e-38, %v2707_v2 }
0x23ba   :  { %v2681_v10 = vadd.f32 %v3177_v45, %v2680_v18 }
0x23bc   :  { %v2685_v42 = vsel %vm2684_vm10, %v3177_v45, %v2681_v10 }
0x23bd   :  { %v2690_v25 = vsel %vm2687_vm11, %v2689_v52, %v2685_v42  ;;  %v3181_v61 = vpop.eup %3180 }
0x23be   :  { %v2697_v62 = vmul.f32 %v3181_v61, %v2695_v60  ;;  %vm2702_vm12 = vweird.f32 %v3181_v61 }
0x23bf   :  { %vm2703_vm8 = vmor %vm2701_vm7, %vm2702_vm12 }
0x23c0   :  { %v2698_v63 = vsub.f32 1.0, %v2697_v62 }
0x23c2   :  { %v2699_v0 = vmul.f32 %v3181_v61, %v2698_v63 }
0x23c4   :  { %v2700_v1 = vadd.f32 %v3181_v61, %v2699_v0 }
0x23c6   :  { %v2704_v3 = vsel %vm2703_vm8, %v3181_v61, %v2700_v1 }
0x23e3   :  { %v2719_v12 = vpop.permute.xlu1 %2718 }
0x23e4   :  { %v2721_v14 = vmul.f32 %v2719_v12, %v2690_v25 }
0x23e6   :  { %2723 = vrot.lane.b32.xlu0 %v2721_v14, %s3427_s8 }
0x23ee   :  { %1867 = vrot.lane.b32.xlu0 %v3984_v46, %s3428_s22  ;;  %v2705_v46 = vand.u32 2147483647, %v2695_v60 }
0x23f0   :  { %vm2706_vm4 = vcmp.eq.f32.partialorder %v2705_v46, 8.507059e+37 }
0x23f1   :  { %v2709_v8 = vsel %vm2706_vm4, %v2708_v4, %v2704_v3 }
0x23f6   :  { %2315 = vrot.lane.b32.xlu0 %v4073_v43, %s3429_s23 }
0x23fe   :  { %2022 = vrot.lane.b32.xlu0 %v4020_v20, %s3429_s23  ;;  %v2714_v20 = vrot.slane %v4111_v40, 6  ;;  %v2728_v40 = vrot.slane %v4116_v29, 2 }
0x2400   :  { %v2716_v26 = vmul.f32 %v2714_v20, %v2690_v25  ;;  %v2730_v36 = vmul.f32 %v2728_v40, %v2709_v8 }
0x241c   :  { %v2733_v43 = vpop.permute.xlu0 %2732 }
0x241d   :  { %v2735_v28 = vmul.f32 %v2733_v43, %v2709_v8 }
0x241f   :  { %2737 = vrot.lane.b32.xlu2 %v2735_v28, %s3427_s8 }
0x2458   :  { %v2724_v33 = vpop.permute.xlu0 %2723 }
0x2459   :  { %v2726_v5 = vadd.f32 %v2724_v33, %v2716_v26 }
0x245b   :  { %3182 = vtanh.f32 %v2726_v5 }
0x2460   :  { %v1868_v23 = vpop.permute.xlu0 %1867 }
0x2461   :  { %v3183_v27 = vpop.eup %3182  ;;  %1870 = vst.msk [vmem:[#allocation2] sm:$0xc] %vm610_vm14, %v1868_v23 }
0x2462   :  { %2743 = vrot.lane.b32.xlu2 %v3183_v27, %s3427_s8 }
0x2468   :  { %v2316_v34 = vpop.permute.xlu0 %2315 }
0x246a   :  { %2164 = vrot.lane.b32.xlu2 %v4048_v32, %s3428_s22 }
0x2470   :  { %v2023_v51 = vpop.permute.xlu0 %2022 }
0x2471   :  { %2025 = vst.msk [vmem:[#allocation2 + $0x8] sm:$0xc] %vm768_vm15, %v2023_v51 }
0x2472   :  { %2612 = vrot.lane.b32.xlu2 %v4124_v58, %s3429_s23 }
0x2479   :  { %v2738_v21 = vpop.permute.xlu2 %2737 }
0x247a   :  { %v2740_v15 = vadd.f32 %v2738_v21, %v2730_v36  ;;  %1872 = vrot.lane.b32.xlu2 %v3988_v39, %s3429_s23 }
0x247c   :  { %3184 = vtanh.f32 %v2740_v15 }
0x2482   :  { %v3185_v6 = vpop.eup %3184  ;;  %2457 = vrot.lane.b32.xlu2 %v4096_v30, %s3428_s22 }
0x2483   :  { %2749 = vrot.lane.b32.xlu1 %v3185_v6, %s3427_s8 }
0x248b   :  { %2017 = vrot.lane.b32.xlu1 %v4016_v53, %s3428_s22 }
0x2493   :  { %2462 = vrot.lane.b32.xlu1 %v4100_v37, %s3429_s23 }
0x249b   :  { %1725 = vrot.lane.b32.xlu1 %v3955_v31, %s3429_s23 }
0x24a3   :  { %2169 = vrot.lane.b32.xlu1 %v4052_v55, %s3429_s23 }
0x24bc   :  { %v2744_v39 = vpop.permute.xlu2 %2743 }
0x24bd   :  { %v2746_v32 = vmul.f32 %v2744_v39, %v2690_v25 }
0x24bf   :  { %2754 = vrot.lane.b32.xlu1 %v2746_v32, %s3428_s22 }
0x24c4   :  { %v2165_v29 = vpop.permute.xlu2 %2164 }
0x24c5   :  { %2167 = vst.msk [vmem:[#allocation2] sm:$0xc0] %vm911_vm2, %v2165_v29 }
0x24c6   :  { %2318 = vst.msk [vmem:[#allocation2] sm:$0xc0] %vm467_vm3, %v2316_v34 }
0x24cc   :  { %v2613_v30 = vpop.permute.xlu2 %2612 }
0x24cd   :  { %2615 = vst.msk [vmem:[#allocation2] sm:$0xc] %vm768_vm15, %v2613_v30 }
0x24d4   :  { %v1873_v53 = vpop.permute.xlu2 %1872 }
0x24d5   :  { %1875 = vst.msk [vmem:[#allocation2 + $0x8] sm:$0x30] %vm616_vm1, %v1873_v53 }
0x24dc   :  { %v2458_v37 = vpop.permute.xlu2 %2457 }
0x24dd   :  { %2460 = vst.msk [vmem:[#allocation2 + $0x8] sm:$0xc] %vm610_vm14, %v2458_v37 }
0x24f5   :  { %v2750_v31 = vpop.permute.xlu1 %2749 }
0x24f6   :  { %v2752_v55 = vmul.f32 %v2750_v31, %v2709_v8 }
0x24f8   :  { %2759 = vrot.lane.b32.xlu0 %v2752_v55, %s3429_s23 }
0x24fd   :  { %v2018_v58 = vpop.permute.xlu1 %2017 }
0x24fe   :  { %2020 = vst.msk [vmem:[#allocation2] sm:$0x30] %vm762_vm0, %v2018_v58 }
0x2500   :  { %2607 = vrot.lane.b32.xlu0 %v4120_v56, %s3428_s22 }
0x2505   :  { %v2463_v44 = vpop.permute.xlu1 %2462 }
0x2506   :  { %2465 = vst.msk [vmem:[#allocation2] sm:$0x30] %vm616_vm1, %v2463_v44 }
0x250d   :  { %v1726_v7 = vpop.permute.xlu1 %1725 }
0x250e   :  { %1728 = vst.msk [vmem:[#allocation2 + $0x8] sm:$0xc0] %vm467_vm3, %v1726_v7 }
0x2515   :  { %v2170_v48 = vpop.permute.xlu1 %2169 }
0x2516   :  { %2172 = vst.msk [vmem:[#allocation2 + $0x8] sm:$0x3] %vm917_vm5, %v2170_v48 }
0x2517   :  { %2313 = vst.msk [vmem:[#allocation2 + $0x8] sm:$0x3] %vm461_vm13, %v4077_v22 }
0x2531   :  { %v2755_v56 = vpop.permute.xlu1 %2754 }
0x2532   :  { %2757 = vst.msk [vmem:[#allocation2 + $0x8] sm:$0xc0] %vm911_vm2, %v2755_v56 }
0x256a   :  { %v2760_v50 = vpop.permute.xlu0 %2759 }
0x256b   :  { %2762 = vst.msk [vmem:[#allocation2] sm:$0x3] %vm917_vm5, %v2760_v50 }
0x2572   :  { %v2608_v49 = vpop.permute.xlu0 %2607  ;;  %v2763_v45 = vld [vmem:[#allocation2] sm:$0xff] }
0x2573   :  { %2610 = vst.msk [vmem:[#allocation2 + $0x8] sm:$0x30] %vm762_vm0, %v2608_v49  ;;  %2905 = vmatmul.msk.f32.vlgmr.msrb.gmra.mxu2 %vm1541_vm6, %v2763_v45 }
0x257a   :  { %v2764_v22 = vld [vmem:[#allocation2 + $0x8] sm:$0xff] }
0x257b   :  { %2906 = vmatmul.msk.f32.gmra.mxu2 %vm1541_vm6, %v2764_v22 }
0x25f6   :  { %v2800_v38 = vpop.f32.mrf.mxu2 }
0x25f7   :  { %v2801_v18 = vadd.f32 %v2929_v54, %v2800_v38 }
0x25f9   :  { %2806 = vst [vmem:[#allocation18] sm:$0xff] %v2801_v18 }
0x25fe   :  { %v2803_v10 = vpop.f32.mrf.mxu2 }
0x25ff   :  { %v2804_v11 = vadd.f32 %v2929_v54, %v2803_v10 }
0x2601   :  { %2807 = vst [vmem:[#allocation18 + $0x8] sm:$0xff] %v2804_v11 }
0x2602   :  { %2820 = dma.vmem_to_hbm [thread:$0]  %s2813_s13, 256, %s2815_s27, [#allocation6], %s3416_s28, %s3416_s28, %s3417_s29  }
0x2603   :  { %3412 = dma.done.wait [#allocation6], 256  }
0x2604   :  { %3413 = vsyncadd [#allocation6], 4294967040 }
0x2605   :  { %2825 = vsyncpa [#allocation5], 1 }
0x2606   :  { %2826 = vsyncpa [#allocation8], 1 }
0x2607   :  { %2827 = vsyncpa [#allocation11], 1 }
0x2608   :  { %2828 = vsyncpa [#allocation14], 1 }
0x2609   :  { %2829 = vsyncpa [#allocation17], 1 }
0x260a   :  { %2830 = vsyncpa [#allocation6], 1 }

</bundles_post_ra>
